<compile_context>
chip_gen: v7x
topology: tpu7x:2x2x1
jax: 0.10.0
libtpu: 0.0.40
codegen_flags: <defaults>
</compile_context>

<pallas_src>
import functools

import jax
import jax.numpy as jnp
import numpy as np
from jax.experimental import pallas as pl
from jax.experimental.pallas import tpu as pltpu

LANE = 128


# --------------------------------------------------------------------------------------
# Fused Pallas kernel: whole CA3_AF_LSTM forward in one invocation, all VMEM-resident.
# --------------------------------------------------------------------------------------
def _ca3_fused_kernel(hiddens, n_beta, bn_scale_ref, bn_shift_ref, xb_ref, xf_ref, *refs):
    out_ref = refs[-1]
    w_refs = refs[:-1]                        # 5 refs per AF_LSTM layer: Wx, Wh, b, wlin, blin
    layers = [w_refs[5 * i:5 * i + 5] for i in range(len(w_refs) // 5)]

    B, T_beta, _ = xb_ref.shape
    _, T_factor, _ = xf_ref.shape

    def af_lstm(x_ts, H, Wx_ref, Wh_ref, b_ref, wlin_ref, blin_ref):
        """Packed-gate LSTM (PyTorch i,f,g,o order) + output Linear, hoisted projections."""
        T = len(x_ts)
        Wx = Wx_ref[...]        # (128,128) bf16: rows 0:d_in, cols g*H:(g+1)*H
        Wh = Wh_ref[...]        # (128,128) bf16: rows 0:H,    cols g*H:(g+1)*H
        b = b_ref[...]          # (1,128)   f32
        wlin = wlin_ref[...]    # (128,128) bf16: rows 0:H, cols 0:d_out
        blin = blin_ref[...]    # (1,128)   f32

        # Hoisted input projection: one (T*B,128)x(128,128) bf16 matmul for all timesteps.
        x_all = jnp.concatenate(x_ts, axis=0).astype(jnp.bfloat16)            # (T*B,128)
        xg = jnp.dot(x_all, Wx, preferred_element_type=jnp.float32) + b       # (T*B,128) f32

        lane = jax.lax.broadcasted_iota(jnp.int32, (B, LANE), 1)
        g_mask = (lane >= 2 * H) & (lane < 3 * H)                             # tanh-gate lanes

        h = jnp.zeros((B, LANE), jnp.float32)
        c = jnp.zeros((B, LANE), jnp.float32)
        hs = []
        for t in range(T):                    # T <= 4, static -> fully unrolled
            gates = xg[t * B:(t + 1) * B, :] + jnp.dot(
                h.astype(jnp.bfloat16), Wh, preferred_element_type=jnp.float32)
            # One sigmoid + one tanh over the whole packed 128-lane gate vreg.
            act = jnp.where(g_mask, jnp.tanh(gates), jax.nn.sigmoid(gates))
            # Realign f/g/o blocks to lanes [0:H) with XLU rotates (i is already aligned).
            f_a = pltpu.roll(act, LANE - H, axis=1)
            g_a = pltpu.roll(act, LANE - 2 * H, axis=1)
            o_a = pltpu.roll(act, LANE - 3 * H, axis=1)
            c = f_a * c + act * g_a           # lanes >= H carry bounded garbage (masked by
            h = o_a * jnp.tanh(c)             # zero weight rows / zero wlin rows downstream)
            hs.append(h)

        # Hoisted output projection: one (T*B,128)x(128,128) matmul after the recurrence.
        h_all = jnp.concatenate(hs, axis=0).astype(jnp.bfloat16)
        y = jnp.dot(h_all, wlin, preferred_element_type=jnp.float32) + blin   # (T*B,128) f32
        return [y[t * B:(t + 1) * B, :] for t in range(T)]

    # ---- beta network: 3x (AF_LSTM -> dropout(eval) -> BN1d(2) -> ReLU) -> AF_LSTM ----
    cur = [xb_ref[:, t, :] for t in range(T_beta)]
    for li in range(n_beta - 1):
        ys = af_lstm(cur, hiddens[li], *layers[li])
        # TODO(synk): nn.Dropout is stochastic; eval-mode identity semantics applied here.
        cur = [jnp.maximum(ys[t] * bn_scale_ref[li, t, :] + bn_shift_ref[li, t, :], 0.0)
               for t in range(T_beta)]
    beta_ts = af_lstm(cur, hiddens[n_beta - 1], *layers[n_beta - 1])   # T_beta x (B,128)

    # ---- factor network: single AF_LSTM ----
    # TODO(synk): on v7x this independent branch could be placed on the second TensorCore.
    xf_ts = [xf_ref[:, t, :] for t in range(T_factor)]
    factor_ts = af_lstm(xf_ts, hiddens[n_beta], *layers[n_beta])       # T_factor x (B,128)

    # ---- beta_network(x_beta)[0] @ factor_network(x_factor)[0] ----
    # Per-batch MXU matmul against a zero-padded (128,128) factor matrix (lanes of beta
    # beyond out_b are exactly zero, and the padded factor rows are zero).
    zpad = jnp.zeros((LANE - T_factor, LANE), jnp.float32)
    for b_i in range(B):
        beta_b = jnp.concatenate([beta_ts[t][b_i:b_i + 1, :] for t in range(T_beta)],
                                 axis=0)                               # (T_beta, 128)
        fac_b = jnp.concatenate(
            [factor_ts[k][b_i:b_i + 1, :] for k in range(T_factor)] + [zpad],
            axis=0)                                                    # (128, 128)
        out_ref[b_i, :, :] = jnp.dot(beta_b, fac_b, preferred_element_type=jnp.float32)


# --------------------------------------------------------------------------------------
# Wrapper: pad inputs, pass everything to one pallas_call (no grid, whole arrays in VMEM)
# --------------------------------------------------------------------------------------
def pad_features(x):
    B, T, D = x.shape
    return jnp.zeros((B, T, LANE), jnp.float32).at[:, :, :D].set(x.astype(jnp.float32))


def ca3_forward(x_beta, x_factor, params):
    B, T_beta, _ = x_beta.shape
    out_f = params["out_f"]
    assert x_factor.shape[1] == params["out_b"], "factor seq len must equal output_dim_beta"

    xb = pad_features(x_beta)
    xf = pad_features(x_factor)

    all_layers = params["beta_lstms"] + [params["factor_lstm"]]
    hiddens = tuple(p["hidden"] for p in all_layers)
    n_beta = len(params["beta_lstms"])

    weight_args = []
    for p in all_layers:
        weight_args += [p["Wx"], p["Wh"], p["b"], p["wlin"], p["blin"]]

    vmem = pl.BlockSpec(memory_space=pltpu.MemorySpace.VMEM)
    kernel = functools.partial(_ca3_fused_kernel, hiddens, n_beta)
    out = pl.pallas_call(
        kernel,
        out_shape=jax.ShapeDtypeStruct((B, T_beta, LANE), jnp.float32),
        in_specs=[vmem] * (4 + len(weight_args)),
        out_specs=vmem,
    )(params["bn_scale"], params["bn_shift"], xb, xf, *weight_args)
    return out[:, :, :out_f]


# --------------------------------------------------------------------------------------
# Deterministic parameter construction (packed gates, bf16 weights, f32 biases).
# --------------------------------------------------------------------------------------
def make_af_lstm_params(key, d_in, hidden, d_out):
    H = hidden
    assert d_in <= LANE and 4 * H <= LANE and d_out <= LANE
    k = jax.random.split(key, 5)
    s = 1.0 / np.sqrt(hidden)
    Wx = jnp.zeros((LANE, LANE), jnp.float32)      # rows 0:d_in, gate g at cols g*H:(g+1)*H
    Wh = jnp.zeros((LANE, LANE), jnp.float32)      # rows 0:H
    b = jnp.zeros((1, LANE), jnp.float32)
    for g in range(4):
        Wx = Wx.at[:d_in, g * H:(g + 1) * H].set(
            jax.random.uniform(jax.random.fold_in(k[0], g), (d_in, H), minval=-s, maxval=s))
        Wh = Wh.at[:H, g * H:(g + 1) * H].set(
            jax.random.uniform(jax.random.fold_in(k[1], g), (H, H), minval=-s, maxval=s))
        b = b.at[0, g * H:(g + 1) * H].set(
            jax.random.uniform(jax.random.fold_in(k[2], g), (H,), minval=-s, maxval=s))
    wlin = jnp.zeros((LANE, LANE), jnp.float32).at[:H, :d_out].set(
        jax.random.uniform(k[3], (H, d_out), minval=-s, maxval=s))
    blin = jnp.zeros((1, LANE), jnp.float32).at[0, :d_out].set(
        jax.random.uniform(k[4], (d_out,), minval=-s, maxval=s))
    return dict(Wx=Wx.astype(jnp.bfloat16), Wh=Wh.astype(jnp.bfloat16), b=b,
                wlin=wlin.astype(jnp.bfloat16), blin=blin,
                d_in=d_in, hidden=hidden, d_out=d_out)


def make_bn_params(key, C=2):
    k1, k2, k3, k4 = jax.random.split(key, 4)
    return dict(
        gamma=1.0 + 0.1 * jax.random.normal(k1, (C,), jnp.float32),
        beta=0.1 * jax.random.normal(k2, (C,), jnp.float32),
        mean=0.1 * jax.random.normal(k3, (C,), jnp.float32),
        var=jax.random.uniform(k4, (C,), jnp.float32, minval=0.5, maxval=1.5),
    )


def fold_bn(bns, T, widths, eps=1e-5):
    """Fold eval-mode BatchNorm1d(T) to per-time scale/shift -> (n_bn, T, 128).

    Shift is zeroed on padded lanes so padded activation lanes stay exactly 0 after ReLU.
    """
    scales, shifts = [], []
    for bn, w in zip(bns, widths):
        s = (bn["gamma"] * jax.lax.rsqrt(bn["var"] + eps)).astype(jnp.float32)   # (T,)
        sh = (bn["beta"] - bn["mean"] * s).astype(jnp.float32)                   # (T,)
        scales.append(jnp.broadcast_to(s[:, None], (T, LANE)))
        shifts.append(jnp.zeros((T, LANE), jnp.float32).at[:, :w].set(
            jnp.broadcast_to(sh[:, None], (T, w))))
    return jnp.stack(scales), jnp.stack(shifts)


# --------------------------------------------------------------------------------------
# Pure-JAX f32 reference (unpacked math, same bf16-stored weight values) for correctness.
# --------------------------------------------------------------------------------------
def ref_af_lstm(x, p):
    d_in, H, d_out = p["d_in"], p["hidden"], p["d_out"]
    Wx = p["Wx"].astype(jnp.float32)
    Wh = p["Wh"].astype(jnp.float32)
    wlin = p["wlin"].astype(jnp.float32)
    wih = [Wx[:d_in, g * H:(g + 1) * H] for g in range(4)]
    whh = [Wh[:H, g * H:(g + 1) * H] for g in range(4)]
    bg = [p["b"][0, g * H:(g + 1) * H] for g in range(4)]
    wl, bl = wlin[:H, :d_out], p["blin"][0, :d_out]
    B, T, _ = x.shape
    h = jnp.zeros((B, H)); c = jnp.zeros((B, H))
    ys = []
    for t in range(T):
        xt = x[:, t, :]
        i = jax.nn.sigmoid(xt @ wih[0] + h @ whh[0] + bg[0])
        f = jax.nn.sigmoid(xt @ wih[1] + h @ whh[1] + bg[1])
        g = jnp.tanh(xt @ wih[2] + h @ whh[2] + bg[2])
        o = jax.nn.sigmoid(xt @ wih[3] + h @ whh[3] + bg[3])
        c = f * c + i * g
        h = o * jnp.tanh(c)
        ys.append(h @ wl + bl)
    return jnp.stack(ys, axis=1)


def ref_bn_relu(x, bn, eps=1e-5):
    scale = bn["gamma"] * jax.lax.rsqrt(bn["var"] + eps)
    shift = bn["beta"] - bn["mean"] * scale
    return jnp.maximum(x * scale.reshape(1, -1, 1) + shift.reshape(1, -1, 1), 0.0)


def ref_forward(x_beta, x_factor, params):
    h = x_beta
    for lstm_p, bn_p in zip(params["beta_lstms"][:-1], params["beta_bns"]):
        h = ref_bn_relu(ref_af_lstm(h, lstm_p), bn_p)
    beta = ref_af_lstm(h, params["beta_lstms"][-1])
    factor = ref_af_lstm(x_factor, params["factor_lstm"])
    return jnp.einsum("bik,bkj->bij", beta, factor)


# --------------------------------------------------------------------------------------
if __name__ == "__main__":
    key = jax.random.PRNGKey(0)
    keys = jax.random.split(key, 10)

    # ParamsIO_AF_LSTM: small, consistent shapes
    in_b, out_b, in_f, out_f = 6, 4, 5, 3
    B = 2
    T_beta = 2          # BatchNorm1d(2) in the beta network forces seq len 2
    T_factor = out_b    # factor seq len must equal output_dim_beta for the final matmul

    params = dict(
        beta_lstms=[
            make_af_lstm_params(keys[0], in_b, 32, 32),      # hidden1: AF_LSTM(in_b, 32, 1000, 32)
            make_af_lstm_params(keys[1], 32, 16, 16),        # hidden2: AF_LSTM(32, 16, 1000, 16)
            make_af_lstm_params(keys[2], 16, 8, 8),          # hidden3: AF_LSTM(16, 8, 1000, 8)
            make_af_lstm_params(keys[3], 8, out_b, out_b),   # af lstm3: AF_LSTM(8, out_b, 1000, out_b)
        ],
        beta_bns=[make_bn_params(keys[4]), make_bn_params(keys[5]), make_bn_params(keys[6])],
        factor_lstm=make_af_lstm_params(keys[7], in_f, out_f, out_f),
        out_b=out_b, out_f=out_f,
    )
    params["bn_scale"], params["bn_shift"] = fold_bn(params["beta_bns"], T_beta,
                                                     widths=[32, 16, 8])

    x_beta = jax.random.normal(keys[8], (B, T_beta, in_b), jnp.float32)
    x_factor = jax.random.normal(keys[9], (B, T_factor, in_f), jnp.float32)

    out = jax.block_until_ready(ca3_forward(x_beta, x_factor, params))
    ref = jax.block_until_ready(ref_forward(x_beta, x_factor, params))

    assert out.shape == (B, T_beta, out_f), out.shape
    # bf16 matmul operands with f32 accumulation vs the f32 reference.
    np.testing.assert_allclose(np.asarray(out), np.asarray(ref), rtol=2e-2, atol=2e-2)
    print("KERNEL_OK")
</pallas_src>

<mosaic_0001>
module attributes {stable_mosaic.version = 11 : i64} {
  func.func @_ca3_fused_kernel(%arg0: memref<3x2x128xf32, #tpu.memory_space<vmem>>, %arg1: memref<3x2x128xf32, #tpu.memory_space<vmem>>, %arg2: memref<2x2x128xf32, #tpu.memory_space<vmem>>, %arg3: memref<2x4x128xf32, #tpu.memory_space<vmem>>, %arg4: memref<128x128xbf16, #tpu.memory_space<vmem>>, %arg5: memref<128x128xbf16, #tpu.memory_space<vmem>>, %arg6: memref<1x128xf32, #tpu.memory_space<vmem>>, %arg7: memref<128x128xbf16, #tpu.memory_space<vmem>>, %arg8: memref<1x128xf32, #tpu.memory_space<vmem>>, %arg9: memref<128x128xbf16, #tpu.memory_space<vmem>>, %arg10: memref<128x128xbf16, #tpu.memory_space<vmem>>, %arg11: memref<1x128xf32, #tpu.memory_space<vmem>>, %arg12: memref<128x128xbf16, #tpu.memory_space<vmem>>, %arg13: memref<1x128xf32, #tpu.memory_space<vmem>>, %arg14: memref<128x128xbf16, #tpu.memory_space<vmem>>, %arg15: memref<128x128xbf16, #tpu.memory_space<vmem>>, %arg16: memref<1x128xf32, #tpu.memory_space<vmem>>, %arg17: memref<128x128xbf16, #tpu.memory_space<vmem>>, %arg18: memref<1x128xf32, #tpu.memory_space<vmem>>, %arg19: memref<128x128xbf16, #tpu.memory_space<vmem>>, %arg20: memref<128x128xbf16, #tpu.memory_space<vmem>>, %arg21: memref<1x128xf32, #tpu.memory_space<vmem>>, %arg22: memref<128x128xbf16, #tpu.memory_space<vmem>>, %arg23: memref<1x128xf32, #tpu.memory_space<vmem>>, %arg24: memref<128x128xbf16, #tpu.memory_space<vmem>>, %arg25: memref<128x128xbf16, #tpu.memory_space<vmem>>, %arg26: memref<1x128xf32, #tpu.memory_space<vmem>>, %arg27: memref<128x128xbf16, #tpu.memory_space<vmem>>, %arg28: memref<1x128xf32, #tpu.memory_space<vmem>>, %arg29: memref<2x2x128xf32, #tpu.memory_space<vmem>>) attributes {dimension_semantics = [], scalar_prefetch = 0 : i64, scratch_operands = 0 : i64, tpu.core_type = #tpu.core_type<tc>} {
    %c0 = arith.constant 0 : index
    %c0_0 = arith.constant 0 : index
    %c0_1 = arith.constant 0 : index
    %0 = vector.load %arg2[%c0, %c0_0, %c0_1] : memref<2x2x128xf32, #tpu.memory_space<vmem>>, vector<2x1x128xf32>
    %1 = vector.shape_cast %0 : vector<2x1x128xf32> to vector<2x128xf32>
    %c0_2 = arith.constant 0 : index
    %c1 = arith.constant 1 : index
    %c0_3 = arith.constant 0 : index
    %2 = vector.load %arg2[%c0_2, %c1, %c0_3] : memref<2x2x128xf32, #tpu.memory_space<vmem>>, vector<2x1x128xf32>
    %3 = vector.shape_cast %2 : vector<2x1x128xf32> to vector<2x128xf32>
    %c0_4 = arith.constant 0 : index
    %c0_5 = arith.constant 0 : index
    %4 = vector.load %arg4[%c0_4, %c0_5] : memref<128x128xbf16, #tpu.memory_space<vmem>>, vector<128x128xbf16>
    %c0_6 = arith.constant 0 : index
    %c0_7 = arith.constant 0 : index
    %5 = vector.load %arg5[%c0_6, %c0_7] : memref<128x128xbf16, #tpu.memory_space<vmem>>, vector<128x128xbf16>
    %c0_8 = arith.constant 0 : index
    %c0_9 = arith.constant 0 : index
    %6 = vector.load %arg6[%c0_8, %c0_9] : memref<1x128xf32, #tpu.memory_space<vmem>>, vector<1x128xf32>
    %c0_10 = arith.constant 0 : index
    %c0_11 = arith.constant 0 : index
    %7 = vector.load %arg7[%c0_10, %c0_11] : memref<128x128xbf16, #tpu.memory_space<vmem>>, vector<128x128xbf16>
    %c0_12 = arith.constant 0 : index
    %c0_13 = arith.constant 0 : index
    %8 = vector.load %arg8[%c0_12, %c0_13] : memref<1x128xf32, #tpu.memory_space<vmem>>, vector<1x128xf32>
    %9 = tpu.concatenate %1, %3 in 0 : vector<2x128xf32>, vector<2x128xf32> -> vector<4x128xf32>
    %10 = arith.truncf %9 : vector<4x128xf32> to vector<4x128xbf16>
    %cst = arith.constant dense<0.000000e+00> : vector<4x128xf32>
    %11 = tpu.matmul %10, %4, %cst {dimension_numbers = #tpu.dot_dimension_numbers<[1], [0], [0], [1], [0, 0, 1, 1], [], []>} : vector<4x128xbf16>, vector<128x128xbf16>, vector<4x128xf32> -> vector<4x128xf32>
    %12 = vector.broadcast %6 : vector<1x128xf32> to vector<4x128xf32>
    %13 = arith.addf %11, %12 : vector<4x128xf32>
    %14 = tpu.iota {dimensions = array<i32: 1>} : vector<2x128xi32>
    %c64_i32 = arith.constant 64 : i32
    %15 = vector.broadcast %c64_i32 : i32 to vector<2x128xi32>
    %16 = arith.cmpi sge, %14, %15 : vector<2x128xi32>
    %c96_i32 = arith.constant 96 : i32
    %17 = vector.broadcast %c96_i32 : i32 to vector<2x128xi32>
    %18 = arith.cmpi slt, %14, %17 : vector<2x128xi32>
    %19 = arith.andi %16, %18 : vector<2x128xi1>
    %cst_14 = arith.constant 0.000000e+00 : f32
    %20 = vector.broadcast %cst_14 : f32 to vector<2x128xf32>
    %cst_15 = arith.constant 0.000000e+00 : f32
    %21 = vector.broadcast %cst_15 : f32 to vector<2x128xf32>
    %22 = vector.extract_strided_slice %13 {offsets = [0, 0], sizes = [2, 128], strides = [1, 1]} : vector<4x128xf32> to vector<2x128xf32>
    %23 = arith.truncf %20 : vector<2x128xf32> to vector<2x128xbf16>
    %cst_16 = arith.constant dense<0.000000e+00> : vector<2x128xf32>
    %24 = tpu.matmul %23, %5, %cst_16 {dimension_numbers = #tpu.dot_dimension_numbers<[1], [0], [0], [1], [0, 0, 1, 1], [], []>} : vector<2x128xbf16>, vector<128x128xbf16>, vector<2x128xf32> -> vector<2x128xf32>
    %25 = arith.addf %22, %24 : vector<2x128xf32>
    %26 = math.tanh %25 : vector<2x128xf32>
    %27 = arith.negf %25 : vector<2x128xf32>
    %28 = math.exp %27 : vector<2x128xf32>
    %cst_17 = arith.constant 1.000000e+00 : f32
    %29 = vector.broadcast %cst_17 : f32 to vector<2x128xf32>
    %30 = arith.addf %29, %28 : vector<2x128xf32>
    %31 = arith.divf %29, %30 : vector<2x128xf32>
    %32 = arith.select %19, %26, %31 : vector<2x128xi1>, vector<2x128xf32>
    %c96_i32_18 = arith.constant 96 : i32
    %33 = tpu.dynamic_rotate %32 by %c96_i32_18 dim 1 : vector<2x128xf32>, i32 -> vector<2x128xf32>
    %c64_i32_19 = arith.constant 64 : i32
    %34 = tpu.dynamic_rotate %32 by %c64_i32_19 dim 1 : vector<2x128xf32>, i32 -> vector<2x128xf32>
    %c32_i32 = arith.constant 32 : i32
    %35 = tpu.dynamic_rotate %32 by %c32_i32 dim 1 : vector<2x128xf32>, i32 -> vector<2x128xf32>
    %36 = arith.mulf %33, %21 : vector<2x128xf32>
    %37 = arith.mulf %32, %34 : vector<2x128xf32>
    %38 = arith.addf %36, %37 : vector<2x128xf32>
    %39 = math.tanh %38 : vector<2x128xf32>
    %40 = arith.mulf %35, %39 : vector<2x128xf32>
    %41 = vector.extract_strided_slice %13 {offsets = [2, 0], sizes = [2, 128], strides = [1, 1]} : vector<4x128xf32> to vector<2x128xf32>
    %42 = arith.truncf %40 : vector<2x128xf32> to vector<2x128xbf16>
    %cst_20 = arith.constant dense<0.000000e+00> : vector<2x128xf32>
    %43 = tpu.matmul %42, %5, %cst_20 {dimension_numbers = #tpu.dot_dimension_numbers<[1], [0], [0], [1], [0, 0, 1, 1], [], []>} : vector<2x128xbf16>, vector<128x128xbf16>, vector<2x128xf32> -> vector<2x128xf32>
    %44 = arith.addf %41, %43 : vector<2x128xf32>
    %45 = math.tanh %44 : vector<2x128xf32>
    %46 = arith.negf %44 : vector<2x128xf32>
    %47 = math.exp %46 : vector<2x128xf32>
    %cst_21 = arith.constant 1.000000e+00 : f32
    %48 = vector.broadcast %cst_21 : f32 to vector<2x128xf32>
    %49 = arith.addf %48, %47 : vector<2x128xf32>
    %50 = arith.divf %48, %49 : vector<2x128xf32>
    %51 = arith.select %19, %45, %50 : vector<2x128xi1>, vector<2x128xf32>
    %c96_i32_22 = arith.constant 96 : i32
    %52 = tpu.dynamic_rotate %51 by %c96_i32_22 dim 1 : vector<2x128xf32>, i32 -> vector<2x128xf32>
    %c64_i32_23 = arith.constant 64 : i32
    %53 = tpu.dynamic_rotate %51 by %c64_i32_23 dim 1 : vector<2x128xf32>, i32 -> vector<2x128xf32>
    %c32_i32_24 = arith.constant 32 : i32
    %54 = tpu.dynamic_rotate %51 by %c32_i32_24 dim 1 : vector<2x128xf32>, i32 -> vector<2x128xf32>
    %55 = arith.mulf %52, %38 : vector<2x128xf32>
    %56 = arith.mulf %51, %53 : vector<2x128xf32>
    %57 = arith.addf %55, %56 : vector<2x128xf32>
    %58 = math.tanh %57 : vector<2x128xf32>
    %59 = arith.mulf %54, %58 : vector<2x128xf32>
    %60 = tpu.concatenate %40, %59 in 0 : vector<2x128xf32>, vector<2x128xf32> -> vector<4x128xf32>
    %61 = arith.truncf %60 : vector<4x128xf32> to vector<4x128xbf16>
    %cst_25 = arith.constant dense<0.000000e+00> : vector<4x128xf32>
    %62 = tpu.matmul %61, %7, %cst_25 {dimension_numbers = #tpu.dot_dimension_numbers<[1], [0], [0], [1], [0, 0, 1, 1], [], []>} : vector<4x128xbf16>, vector<128x128xbf16>, vector<4x128xf32> -> vector<4x128xf32>
    %63 = vector.broadcast %8 : vector<1x128xf32> to vector<4x128xf32>
    %64 = arith.addf %62, %63 : vector<4x128xf32>
    %65 = vector.extract_strided_slice %64 {offsets = [0, 0], sizes = [2, 128], strides = [1, 1]} : vector<4x128xf32> to vector<2x128xf32>
    %66 = vector.extract_strided_slice %64 {offsets = [2, 0], sizes = [2, 128], strides = [1, 1]} : vector<4x128xf32> to vector<2x128xf32>
    %c0_26 = arith.constant 0 : index
    %c0_27 = arith.constant 0 : index
    %c0_28 = arith.constant 0 : index
    %67 = vector.load %arg0[%c0_26, %c0_27, %c0_28] : memref<3x2x128xf32, #tpu.memory_space<vmem>>, vector<1x1x128xf32>
    %68 = vector.shape_cast %67 : vector<1x1x128xf32> to vector<128xf32>
    %69 = vector.shape_cast %68 : vector<128xf32> to vector<1x128xf32>
    %70 = vector.broadcast %69 : vector<1x128xf32> to vector<2x128xf32>
    %71 = arith.mulf %65, %70 : vector<2x128xf32>
    %c0_29 = arith.constant 0 : index
    %c0_30 = arith.constant 0 : index
    %c0_31 = arith.constant 0 : index
    %72 = vector.load %arg1[%c0_29, %c0_30, %c0_31] : memref<3x2x128xf32, #tpu.memory_space<vmem>>, vector<1x1x128xf32>
    %73 = vector.shape_cast %72 : vector<1x1x128xf32> to vector<128xf32>
    %74 = vector.shape_cast %73 : vector<128xf32> to vector<1x128xf32>
    %75 = vector.broadcast %74 : vector<1x128xf32> to vector<2x128xf32>
    %76 = arith.addf %71, %75 : vector<2x128xf32>
    %cst_32 = arith.constant 0.000000e+00 : f32
    %77 = vector.broadcast %cst_32 : f32 to vector<2x128xf32>
    %78 = arith.maximumf %76, %77 : vector<2x128xf32>
    %c0_33 = arith.constant 0 : index
    %c1_34 = arith.constant 1 : index
    %c0_35 = arith.constant 0 : index
    %79 = vector.load %arg0[%c0_33, %c1_34, %c0_35] : memref<3x2x128xf32, #tpu.memory_space<vmem>>, vector<1x1x128xf32>
    %80 = vector.shape_cast %79 : vector<1x1x128xf32> to vector<128xf32>
    %81 = vector.shape_cast %80 : vector<128xf32> to vector<1x128xf32>
    %82 = vector.broadcast %81 : vector<1x128xf32> to vector<2x128xf32>
    %83 = arith.mulf %66, %82 : vector<2x128xf32>
    %c0_36 = arith.constant 0 : index
    %c1_37 = arith.constant 1 : index
    %c0_38 = arith.constant 0 : index
    %84 = vector.load %arg1[%c0_36, %c1_37, %c0_38] : memref<3x2x128xf32, #tpu.memory_space<vmem>>, vector<1x1x128xf32>
    %85 = vector.shape_cast %84 : vector<1x1x128xf32> to vector<128xf32>
    %86 = vector.shape_cast %85 : vector<128xf32> to vector<1x128xf32>
    %87 = vector.broadcast %86 : vector<1x128xf32> to vector<2x128xf32>
    %88 = arith.addf %83, %87 : vector<2x128xf32>
    %cst_39 = arith.constant 0.000000e+00 : f32
    %89 = vector.broadcast %cst_39 : f32 to vector<2x128xf32>
    %90 = arith.maximumf %88, %89 : vector<2x128xf32>
    %c0_40 = arith.constant 0 : index
    %c0_41 = arith.constant 0 : index
    %91 = vector.load %arg9[%c0_40, %c0_41] : memref<128x128xbf16, #tpu.memory_space<vmem>>, vector<128x128xbf16>
    %c0_42 = arith.constant 0 : index
    %c0_43 = arith.constant 0 : index
    %92 = vector.load %arg10[%c0_42, %c0_43] : memref<128x128xbf16, #tpu.memory_space<vmem>>, vector<128x128xbf16>
    %c0_44 = arith.constant 0 : index
    %c0_45 = arith.constant 0 : index
    %93 = vector.load %arg11[%c0_44, %c0_45] : memref<1x128xf32, #tpu.memory_space<vmem>>, vector<1x128xf32>
    %c0_46 = arith.constant 0 : index
    %c0_47 = arith.constant 0 : index
    %94 = vector.load %arg12[%c0_46, %c0_47] : memref<128x128xbf16, #tpu.memory_space<vmem>>, vector<128x128xbf16>
    %c0_48 = arith.constant 0 : index
    %c0_49 = arith.constant 0 : index
    %95 = vector.load %arg13[%c0_48, %c0_49] : memref<1x128xf32, #tpu.memory_space<vmem>>, vector<1x128xf32>
    %96 = tpu.concatenate %78, %90 in 0 : vector<2x128xf32>, vector<2x128xf32> -> vector<4x128xf32>
    %97 = arith.truncf %96 : vector<4x128xf32> to vector<4x128xbf16>
    %cst_50 = arith.constant dense<0.000000e+00> : vector<4x128xf32>
    %98 = tpu.matmul %97, %91, %cst_50 {dimension_numbers = #tpu.dot_dimension_numbers<[1], [0], [0], [1], [0, 0, 1, 1], [], []>} : vector<4x128xbf16>, vector<128x128xbf16>, vector<4x128xf32> -> vector<4x128xf32>
    %99 = vector.broadcast %93 : vector<1x128xf32> to vector<4x128xf32>
    %100 = arith.addf %98, %99 : vector<4x128xf32>
    %101 = tpu.iota {dimensions = array<i32: 1>} : vector<2x128xi32>
    %c32_i32_51 = arith.constant 32 : i32
    %102 = vector.broadcast %c32_i32_51 : i32 to vector<2x128xi32>
    %103 = arith.cmpi sge, %101, %102 : vector<2x128xi32>
    %c48_i32 = arith.constant 48 : i32
    %104 = vector.broadcast %c48_i32 : i32 to vector<2x128xi32>
    %105 = arith.cmpi slt, %101, %104 : vector<2x128xi32>
    %106 = arith.andi %103, %105 : vector<2x128xi1>
    %cst_52 = arith.constant 0.000000e+00 : f32
    %107 = vector.broadcast %cst_52 : f32 to vector<2x128xf32>
    %cst_53 = arith.constant 0.000000e+00 : f32
    %108 = vector.broadcast %cst_53 : f32 to vector<2x128xf32>
    %109 = vector.extract_strided_slice %100 {offsets = [0, 0], sizes = [2, 128], strides = [1, 1]} : vector<4x128xf32> to vector<2x128xf32>
    %110 = arith.truncf %107 : vector<2x128xf32> to vector<2x128xbf16>
    %cst_54 = arith.constant dense<0.000000e+00> : vector<2x128xf32>
    %111 = tpu.matmul %110, %92, %cst_54 {dimension_numbers = #tpu.dot_dimension_numbers<[1], [0], [0], [1], [0, 0, 1, 1], [], []>} : vector<2x128xbf16>, vector<128x128xbf16>, vector<2x128xf32> -> vector<2x128xf32>
    %112 = arith.addf %109, %111 : vector<2x128xf32>
    %113 = math.tanh %112 : vector<2x128xf32>
    %114 = arith.negf %112 : vector<2x128xf32>
    %115 = math.exp %114 : vector<2x128xf32>
    %cst_55 = arith.constant 1.000000e+00 : f32
    %116 = vector.broadcast %cst_55 : f32 to vector<2x128xf32>
    %117 = arith.addf %116, %115 : vector<2x128xf32>
    %118 = arith.divf %116, %117 : vector<2x128xf32>
    %119 = arith.select %106, %113, %118 : vector<2x128xi1>, vector<2x128xf32>
    %c112_i32 = arith.constant 112 : i32
    %120 = tpu.dynamic_rotate %119 by %c112_i32 dim 1 : vector<2x128xf32>, i32 -> vector<2x128xf32>
    %c96_i32_56 = arith.constant 96 : i32
    %121 = tpu.dynamic_rotate %119 by %c96_i32_56 dim 1 : vector<2x128xf32>, i32 -> vector<2x128xf32>
    %c80_i32 = arith.constant 80 : i32
    %122 = tpu.dynamic_rotate %119 by %c80_i32 dim 1 : vector<2x128xf32>, i32 -> vector<2x128xf32>
    %123 = arith.mulf %120, %108 : vector<2x128xf32>
    %124 = arith.mulf %119, %121 : vector<2x128xf32>
    %125 = arith.addf %123, %124 : vector<2x128xf32>
    %126 = math.tanh %125 : vector<2x128xf32>
    %127 = arith.mulf %122, %126 : vector<2x128xf32>
    %128 = vector.extract_strided_slice %100 {offsets = [2, 0], sizes = [2, 128], strides = [1, 1]} : vector<4x128xf32> to vector<2x128xf32>
    %129 = arith.truncf %127 : vector<2x128xf32> to vector<2x128xbf16>
    %cst_57 = arith.constant dense<0.000000e+00> : vector<2x128xf32>
    %130 = tpu.matmul %129, %92, %cst_57 {dimension_numbers = #tpu.dot_dimension_numbers<[1], [0], [0], [1], [0, 0, 1, 1], [], []>} : vector<2x128xbf16>, vector<128x128xbf16>, vector<2x128xf32> -> vector<2x128xf32>
    %131 = arith.addf %128, %130 : vector<2x128xf32>
    %132 = math.tanh %131 : vector<2x128xf32>
    %133 = arith.negf %131 : vector<2x128xf32>
    %134 = math.exp %133 : vector<2x128xf32>
    %cst_58 = arith.constant 1.000000e+00 : f32
    %135 = vector.broadcast %cst_58 : f32 to vector<2x128xf32>
    %136 = arith.addf %135, %134 : vector<2x128xf32>
    %137 = arith.divf %135, %136 : vector<2x128xf32>
    %138 = arith.select %106, %132, %137 : vector<2x128xi1>, vector<2x128xf32>
    %c112_i32_59 = arith.constant 112 : i32
    %139 = tpu.dynamic_rotate %138 by %c112_i32_59 dim 1 : vector<2x128xf32>, i32 -> vector<2x128xf32>
    %c96_i32_60 = arith.constant 96 : i32
    %140 = tpu.dynamic_rotate %138 by %c96_i32_60 dim 1 : vector<2x128xf32>, i32 -> vector<2x128xf32>
    %c80_i32_61 = arith.constant 80 : i32
    %141 = tpu.dynamic_rotate %138 by %c80_i32_61 dim 1 : vector<2x128xf32>, i32 -> vector<2x128xf32>
    %142 = arith.mulf %139, %125 : vector<2x128xf32>
    %143 = arith.mulf %138, %140 : vector<2x128xf32>
    %144 = arith.addf %142, %143 : vector<2x128xf32>
    %145 = math.tanh %144 : vector<2x128xf32>
    %146 = arith.mulf %141, %145 : vector<2x128xf32>
    %147 = tpu.concatenate %127, %146 in 0 : vector<2x128xf32>, vector<2x128xf32> -> vector<4x128xf32>
    %148 = arith.truncf %147 : vector<4x128xf32> to vector<4x128xbf16>
    %cst_62 = arith.constant dense<0.000000e+00> : vector<4x128xf32>
    %149 = tpu.matmul %148, %94, %cst_62 {dimension_numbers = #tpu.dot_dimension_numbers<[1], [0], [0], [1], [0, 0, 1, 1], [], []>} : vector<4x128xbf16>, vector<128x128xbf16>, vector<4x128xf32> -> vector<4x128xf32>
    %150 = vector.broadcast %95 : vector<1x128xf32> to vector<4x128xf32>
    %151 = arith.addf %149, %150 : vector<4x128xf32>
    %152 = vector.extract_strided_slice %151 {offsets = [0, 0], sizes = [2, 128], strides = [1, 1]} : vector<4x128xf32> to vector<2x128xf32>
    %153 = vector.extract_strided_slice %151 {offsets = [2, 0], sizes = [2, 128], strides = [1, 1]} : vector<4x128xf32> to vector<2x128xf32>
    %c1_63 = arith.constant 1 : index
    %c0_64 = arith.constant 0 : index
    %c0_65 = arith.constant 0 : index
    %154 = vector.load %arg0[%c1_63, %c0_64, %c0_65] : memref<3x2x128xf32, #tpu.memory_space<vmem>>, vector<1x1x128xf32>
    %155 = vector.shape_cast %154 : vector<1x1x128xf32> to vector<128xf32>
    %156 = vector.shape_cast %155 : vector<128xf32> to vector<1x128xf32>
    %157 = vector.broadcast %156 : vector<1x128xf32> to vector<2x128xf32>
    %158 = arith.mulf %152, %157 : vector<2x128xf32>
    %c1_66 = arith.constant 1 : index
    %c0_67 = arith.constant 0 : index
    %c0_68 = arith.constant 0 : index
    %159 = vector.load %arg1[%c1_66, %c0_67, %c0_68] : memref<3x2x128xf32, #tpu.memory_space<vmem>>, vector<1x1x128xf32>
    %160 = vector.shape_cast %159 : vector<1x1x128xf32> to vector<128xf32>
    %161 = vector.shape_cast %160 : vector<128xf32> to vector<1x128xf32>
    %162 = vector.broadcast %161 : vector<1x128xf32> to vector<2x128xf32>
    %163 = arith.addf %158, %162 : vector<2x128xf32>
    %cst_69 = arith.constant 0.000000e+00 : f32
    %164 = vector.broadcast %cst_69 : f32 to vector<2x128xf32>
    %165 = arith.maximumf %163, %164 : vector<2x128xf32>
    %c1_70 = arith.constant 1 : index
    %c1_71 = arith.constant 1 : index
    %c0_72 = arith.constant 0 : index
    %166 = vector.load %arg0[%c1_70, %c1_71, %c0_72] : memref<3x2x128xf32, #tpu.memory_space<vmem>>, vector<1x1x128xf32>
    %167 = vector.shape_cast %166 : vector<1x1x128xf32> to vector<128xf32>
    %168 = vector.shape_cast %167 : vector<128xf32> to vector<1x128xf32>
    %169 = vector.broadcast %168 : vector<1x128xf32> to vector<2x128xf32>
    %170 = arith.mulf %153, %169 : vector<2x128xf32>
    %c1_73 = arith.constant 1 : index
    %c1_74 = arith.constant 1 : index
    %c0_75 = arith.constant 0 : index
    %171 = vector.load %arg1[%c1_73, %c1_74, %c0_75] : memref<3x2x128xf32, #tpu.memory_space<vmem>>, vector<1x1x128xf32>
    %172 = vector.shape_cast %171 : vector<1x1x128xf32> to vector<128xf32>
    %173 = vector.shape_cast %172 : vector<128xf32> to vector<1x128xf32>
    %174 = vector.broadcast %173 : vector<1x128xf32> to vector<2x128xf32>
    %175 = arith.addf %170, %174 : vector<2x128xf32>
    %cst_76 = arith.constant 0.000000e+00 : f32
    %176 = vector.broadcast %cst_76 : f32 to vector<2x128xf32>
    %177 = arith.maximumf %175, %176 : vector<2x128xf32>
    %c0_77 = arith.constant 0 : index
    %c0_78 = arith.constant 0 : index
    %178 = vector.load %arg14[%c0_77, %c0_78] : memref<128x128xbf16, #tpu.memory_space<vmem>>, vector<128x128xbf16>
    %c0_79 = arith.constant 0 : index
    %c0_80 = arith.constant 0 : index
    %179 = vector.load %arg15[%c0_79, %c0_80] : memref<128x128xbf16, #tpu.memory_space<vmem>>, vector<128x128xbf16>
    %c0_81 = arith.constant 0 : index
    %c0_82 = arith.constant 0 : index
    %180 = vector.load %arg16[%c0_81, %c0_82] : memref<1x128xf32, #tpu.memory_space<vmem>>, vector<1x128xf32>
    %c0_83 = arith.constant 0 : index
    %c0_84 = arith.constant 0 : index
    %181 = vector.load %arg17[%c0_83, %c0_84] : memref<128x128xbf16, #tpu.memory_space<vmem>>, vector<128x128xbf16>
    %c0_85 = arith.constant 0 : index
    %c0_86 = arith.constant 0 : index
    %182 = vector.load %arg18[%c0_85, %c0_86] : memref<1x128xf32, #tpu.memory_space<vmem>>, vector<1x128xf32>
    %183 = tpu.concatenate %165, %177 in 0 : vector<2x128xf32>, vector<2x128xf32> -> vector<4x128xf32>
    %184 = arith.truncf %183 : vector<4x128xf32> to vector<4x128xbf16>
    %cst_87 = arith.constant dense<0.000000e+00> : vector<4x128xf32>
    %185 = tpu.matmul %184, %178, %cst_87 {dimension_numbers = #tpu.dot_dimension_numbers<[1], [0], [0], [1], [0, 0, 1, 1], [], []>} : vector<4x128xbf16>, vector<128x128xbf16>, vector<4x128xf32> -> vector<4x128xf32>
    %186 = vector.broadcast %180 : vector<1x128xf32> to vector<4x128xf32>
    %187 = arith.addf %185, %186 : vector<4x128xf32>
    %188 = tpu.iota {dimensions = array<i32: 1>} : vector<2x128xi32>
    %c16_i32 = arith.constant 16 : i32
    %189 = vector.broadcast %c16_i32 : i32 to vector<2x128xi32>
    %190 = arith.cmpi sge, %188, %189 : vector<2x128xi32>
    %c24_i32 = arith.constant 24 : i32
    %191 = vector.broadcast %c24_i32 : i32 to vector<2x128xi32>
    %192 = arith.cmpi slt, %188, %191 : vector<2x128xi32>
    %193 = arith.andi %190, %192 : vector<2x128xi1>
    %cst_88 = arith.constant 0.000000e+00 : f32
    %194 = vector.broadcast %cst_88 : f32 to vector<2x128xf32>
    %cst_89 = arith.constant 0.000000e+00 : f32
    %195 = vector.broadcast %cst_89 : f32 to vector<2x128xf32>
    %196 = vector.extract_strided_slice %187 {offsets = [0, 0], sizes = [2, 128], strides = [1, 1]} : vector<4x128xf32> to vector<2x128xf32>
    %197 = arith.truncf %194 : vector<2x128xf32> to vector<2x128xbf16>
    %cst_90 = arith.constant dense<0.000000e+00> : vector<2x128xf32>
    %198 = tpu.matmul %197, %179, %cst_90 {dimension_numbers = #tpu.dot_dimension_numbers<[1], [0], [0], [1], [0, 0, 1, 1], [], []>} : vector<2x128xbf16>, vector<128x128xbf16>, vector<2x128xf32> -> vector<2x128xf32>
    %199 = arith.addf %196, %198 : vector<2x128xf32>
    %200 = math.tanh %199 : vector<2x128xf32>
    %201 = arith.negf %199 : vector<2x128xf32>
    %202 = math.exp %201 : vector<2x128xf32>
    %cst_91 = arith.constant 1.000000e+00 : f32
    %203 = vector.broadcast %cst_91 : f32 to vector<2x128xf32>
    %204 = arith.addf %203, %202 : vector<2x128xf32>
    %205 = arith.divf %203, %204 : vector<2x128xf32>
    %206 = arith.select %193, %200, %205 : vector<2x128xi1>, vector<2x128xf32>
    %c120_i32 = arith.constant 120 : i32
    %207 = tpu.dynamic_rotate %206 by %c120_i32 dim 1 : vector<2x128xf32>, i32 -> vector<2x128xf32>
    %c112_i32_92 = arith.constant 112 : i32
    %208 = tpu.dynamic_rotate %206 by %c112_i32_92 dim 1 : vector<2x128xf32>, i32 -> vector<2x128xf32>
    %c104_i32 = arith.constant 104 : i32
    %209 = tpu.dynamic_rotate %206 by %c104_i32 dim 1 : vector<2x128xf32>, i32 -> vector<2x128xf32>
    %210 = arith.mulf %207, %195 : vector<2x128xf32>
    %211 = arith.mulf %206, %208 : vector<2x128xf32>
    %212 = arith.addf %210, %211 : vector<2x128xf32>
    %213 = math.tanh %212 : vector<2x128xf32>
    %214 = arith.mulf %209, %213 : vector<2x128xf32>
    %215 = vector.extract_strided_slice %187 {offsets = [2, 0], sizes = [2, 128], strides = [1, 1]} : vector<4x128xf32> to vector<2x128xf32>
    %216 = arith.truncf %214 : vector<2x128xf32> to vector<2x128xbf16>
    %cst_93 = arith.constant dense<0.000000e+00> : vector<2x128xf32>
    %217 = tpu.matmul %216, %179, %cst_93 {dimension_numbers = #tpu.dot_dimension_numbers<[1], [0], [0], [1], [0, 0, 1, 1], [], []>} : vector<2x128xbf16>, vector<128x128xbf16>, vector<2x128xf32> -> vector<2x128xf32>
    %218 = arith.addf %215, %217 : vector<2x128xf32>
    %219 = math.tanh %218 : vector<2x128xf32>
    %220 = arith.negf %218 : vector<2x128xf32>
    %221 = math.exp %220 : vector<2x128xf32>
    %cst_94 = arith.constant 1.000000e+00 : f32
    %222 = vector.broadcast %cst_94 : f32 to vector<2x128xf32>
    %223 = arith.addf %222, %221 : vector<2x128xf32>
    %224 = arith.divf %222, %223 : vector<2x128xf32>
    %225 = arith.select %193, %219, %224 : vector<2x128xi1>, vector<2x128xf32>
    %c120_i32_95 = arith.constant 120 : i32
    %226 = tpu.dynamic_rotate %225 by %c120_i32_95 dim 1 : vector<2x128xf32>, i32 -> vector<2x128xf32>
    %c112_i32_96 = arith.constant 112 : i32
    %227 = tpu.dynamic_rotate %225 by %c112_i32_96 dim 1 : vector<2x128xf32>, i32 -> vector<2x128xf32>
    %c104_i32_97 = arith.constant 104 : i32
    %228 = tpu.dynamic_rotate %225 by %c104_i32_97 dim 1 : vector<2x128xf32>, i32 -> vector<2x128xf32>
    %229 = arith.mulf %226, %212 : vector<2x128xf32>
    %230 = arith.mulf %225, %227 : vector<2x128xf32>
    %231 = arith.addf %229, %230 : vector<2x128xf32>
    %232 = math.tanh %231 : vector<2x128xf32>
    %233 = arith.mulf %228, %232 : vector<2x128xf32>
    %234 = tpu.concatenate %214, %233 in 0 : vector<2x128xf32>, vector<2x128xf32> -> vector<4x128xf32>
    %235 = arith.truncf %234 : vector<4x128xf32> to vector<4x128xbf16>
    %cst_98 = arith.constant dense<0.000000e+00> : vector<4x128xf32>
    %236 = tpu.matmul %235, %181, %cst_98 {dimension_numbers = #tpu.dot_dimension_numbers<[1], [0], [0], [1], [0, 0, 1, 1], [], []>} : vector<4x128xbf16>, vector<128x128xbf16>, vector<4x128xf32> -> vector<4x128xf32>
    %237 = vector.broadcast %182 : vector<1x128xf32> to vector<4x128xf32>
    %238 = arith.addf %236, %237 : vector<4x128xf32>
    %239 = vector.extract_strided_slice %238 {offsets = [0, 0], sizes = [2, 128], strides = [1, 1]} : vector<4x128xf32> to vector<2x128xf32>
    %240 = vector.extract_strided_slice %238 {offsets = [2, 0], sizes = [2, 128], strides = [1, 1]} : vector<4x128xf32> to vector<2x128xf32>
    %c2 = arith.constant 2 : index
    %c0_99 = arith.constant 0 : index
    %c0_100 = arith.constant 0 : index
    %241 = vector.load %arg0[%c2, %c0_99, %c0_100] : memref<3x2x128xf32, #tpu.memory_space<vmem>>, vector<1x1x128xf32>
    %242 = vector.shape_cast %241 : vector<1x1x128xf32> to vector<128xf32>
    %243 = vector.shape_cast %242 : vector<128xf32> to vector<1x128xf32>
    %244 = vector.broadcast %243 : vector<1x128xf32> to vector<2x128xf32>
    %245 = arith.mulf %239, %244 : vector<2x128xf32>
    %c2_101 = arith.constant 2 : index
    %c0_102 = arith.constant 0 : index
    %c0_103 = arith.constant 0 : index
    %246 = vector.load %arg1[%c2_101, %c0_102, %c0_103] : memref<3x2x128xf32, #tpu.memory_space<vmem>>, vector<1x1x128xf32>
    %247 = vector.shape_cast %246 : vector<1x1x128xf32> to vector<128xf32>
    %248 = vector.shape_cast %247 : vector<128xf32> to vector<1x128xf32>
    %249 = vector.broadcast %248 : vector<1x128xf32> to vector<2x128xf32>
    %250 = arith.addf %245, %249 : vector<2x128xf32>
    %cst_104 = arith.constant 0.000000e+00 : f32
    %251 = vector.broadcast %cst_104 : f32 to vector<2x128xf32>
    %252 = arith.maximumf %250, %251 : vector<2x128xf32>
    %c2_105 = arith.constant 2 : index
    %c1_106 = arith.constant 1 : index
    %c0_107 = arith.constant 0 : index
    %253 = vector.load %arg0[%c2_105, %c1_106, %c0_107] : memref<3x2x128xf32, #tpu.memory_space<vmem>>, vector<1x1x128xf32>
    %254 = vector.shape_cast %253 : vector<1x1x128xf32> to vector<128xf32>
    %255 = vector.shape_cast %254 : vector<128xf32> to vector<1x128xf32>
    %256 = vector.broadcast %255 : vector<1x128xf32> to vector<2x128xf32>
    %257 = arith.mulf %240, %256 : vector<2x128xf32>
    %c2_108 = arith.constant 2 : index
    %c1_109 = arith.constant 1 : index
    %c0_110 = arith.constant 0 : index
    %258 = vector.load %arg1[%c2_108, %c1_109, %c0_110] : memref<3x2x128xf32, #tpu.memory_space<vmem>>, vector<1x1x128xf32>
    %259 = vector.shape_cast %258 : vector<1x1x128xf32> to vector<128xf32>
    %260 = vector.shape_cast %259 : vector<128xf32> to vector<1x128xf32>
    %261 = vector.broadcast %260 : vector<1x128xf32> to vector<2x128xf32>
    %262 = arith.addf %257, %261 : vector<2x128xf32>
    %cst_111 = arith.constant 0.000000e+00 : f32
    %263 = vector.broadcast %cst_111 : f32 to vector<2x128xf32>
    %264 = arith.maximumf %262, %263 : vector<2x128xf32>
    %c0_112 = arith.constant 0 : index
    %c0_113 = arith.constant 0 : index
    %265 = vector.load %arg19[%c0_112, %c0_113] : memref<128x128xbf16, #tpu.memory_space<vmem>>, vector<128x128xbf16>
    %c0_114 = arith.constant 0 : index
    %c0_115 = arith.constant 0 : index
    %266 = vector.load %arg20[%c0_114, %c0_115] : memref<128x128xbf16, #tpu.memory_space<vmem>>, vector<128x128xbf16>
    %c0_116 = arith.constant 0 : index
    %c0_117 = arith.constant 0 : index
    %267 = vector.load %arg21[%c0_116, %c0_117] : memref<1x128xf32, #tpu.memory_space<vmem>>, vector<1x128xf32>
    %c0_118 = arith.constant 0 : index
    %c0_119 = arith.constant 0 : index
    %268 = vector.load %arg22[%c0_118, %c0_119] : memref<128x128xbf16, #tpu.memory_space<vmem>>, vector<128x128xbf16>
    %c0_120 = arith.constant 0 : index
    %c0_121 = arith.constant 0 : index
    %269 = vector.load %arg23[%c0_120, %c0_121] : memref<1x128xf32, #tpu.memory_space<vmem>>, vector<1x128xf32>
    %270 = tpu.concatenate %252, %264 in 0 : vector<2x128xf32>, vector<2x128xf32> -> vector<4x128xf32>
    %271 = arith.truncf %270 : vector<4x128xf32> to vector<4x128xbf16>
    %cst_122 = arith.constant dense<0.000000e+00> : vector<4x128xf32>
    %272 = tpu.matmul %271, %265, %cst_122 {dimension_numbers = #tpu.dot_dimension_numbers<[1], [0], [0], [1], [0, 0, 1, 1], [], []>} : vector<4x128xbf16>, vector<128x128xbf16>, vector<4x128xf32> -> vector<4x128xf32>
    %273 = vector.broadcast %267 : vector<1x128xf32> to vector<4x128xf32>
    %274 = arith.addf %272, %273 : vector<4x128xf32>
    %275 = tpu.iota {dimensions = array<i32: 1>} : vector<2x128xi32>
    %c8_i32 = arith.constant 8 : i32
    %276 = vector.broadcast %c8_i32 : i32 to vector<2x128xi32>
    %277 = arith.cmpi sge, %275, %276 : vector<2x128xi32>
    %c12_i32 = arith.constant 12 : i32
    %278 = vector.broadcast %c12_i32 : i32 to vector<2x128xi32>
    %279 = arith.cmpi slt, %275, %278 : vector<2x128xi32>
    %280 = arith.andi %277, %279 : vector<2x128xi1>
    %cst_123 = arith.constant 0.000000e+00 : f32
    %281 = vector.broadcast %cst_123 : f32 to vector<2x128xf32>
    %cst_124 = arith.constant 0.000000e+00 : f32
    %282 = vector.broadcast %cst_124 : f32 to vector<2x128xf32>
    %283 = vector.extract_strided_slice %274 {offsets = [0, 0], sizes = [2, 128], strides = [1, 1]} : vector<4x128xf32> to vector<2x128xf32>
    %284 = arith.truncf %281 : vector<2x128xf32> to vector<2x128xbf16>
    %cst_125 = arith.constant dense<0.000000e+00> : vector<2x128xf32>
    %285 = tpu.matmul %284, %266, %cst_125 {dimension_numbers = #tpu.dot_dimension_numbers<[1], [0], [0], [1], [0, 0, 1, 1], [], []>} : vector<2x128xbf16>, vector<128x128xbf16>, vector<2x128xf32> -> vector<2x128xf32>
    %286 = arith.addf %283, %285 : vector<2x128xf32>
    %287 = math.tanh %286 : vector<2x128xf32>
    %288 = arith.negf %286 : vector<2x128xf32>
    %289 = math.exp %288 : vector<2x128xf32>
    %cst_126 = arith.constant 1.000000e+00 : f32
    %290 = vector.broadcast %cst_126 : f32 to vector<2x128xf32>
    %291 = arith.addf %290, %289 : vector<2x128xf32>
    %292 = arith.divf %290, %291 : vector<2x128xf32>
    %293 = arith.select %280, %287, %292 : vector<2x128xi1>, vector<2x128xf32>
    %c124_i32 = arith.constant 124 : i32
    %294 = tpu.dynamic_rotate %293 by %c124_i32 dim 1 : vector<2x128xf32>, i32 -> vector<2x128xf32>
    %c120_i32_127 = arith.constant 120 : i32
    %295 = tpu.dynamic_rotate %293 by %c120_i32_127 dim 1 : vector<2x128xf32>, i32 -> vector<2x128xf32>
    %c116_i32 = arith.constant 116 : i32
    %296 = tpu.dynamic_rotate %293 by %c116_i32 dim 1 : vector<2x128xf32>, i32 -> vector<2x128xf32>
    %297 = arith.mulf %294, %282 : vector<2x128xf32>
    %298 = arith.mulf %293, %295 : vector<2x128xf32>
    %299 = arith.addf %297, %298 : vector<2x128xf32>
    %300 = math.tanh %299 : vector<2x128xf32>
    %301 = arith.mulf %296, %300 : vector<2x128xf32>
    %302 = vector.extract_strided_slice %274 {offsets = [2, 0], sizes = [2, 128], strides = [1, 1]} : vector<4x128xf32> to vector<2x128xf32>
    %303 = arith.truncf %301 : vector<2x128xf32> to vector<2x128xbf16>
    %cst_128 = arith.constant dense<0.000000e+00> : vector<2x128xf32>
    %304 = tpu.matmul %303, %266, %cst_128 {dimension_numbers = #tpu.dot_dimension_numbers<[1], [0], [0], [1], [0, 0, 1, 1], [], []>} : vector<2x128xbf16>, vector<128x128xbf16>, vector<2x128xf32> -> vector<2x128xf32>
    %305 = arith.addf %302, %304 : vector<2x128xf32>
    %306 = math.tanh %305 : vector<2x128xf32>
    %307 = arith.negf %305 : vector<2x128xf32>
    %308 = math.exp %307 : vector<2x128xf32>
    %cst_129 = arith.constant 1.000000e+00 : f32
    %309 = vector.broadcast %cst_129 : f32 to vector<2x128xf32>
    %310 = arith.addf %309, %308 : vector<2x128xf32>
    %311 = arith.divf %309, %310 : vector<2x128xf32>
    %312 = arith.select %280, %306, %311 : vector<2x128xi1>, vector<2x128xf32>
    %c124_i32_130 = arith.constant 124 : i32
    %313 = tpu.dynamic_rotate %312 by %c124_i32_130 dim 1 : vector<2x128xf32>, i32 -> vector<2x128xf32>
    %c120_i32_131 = arith.constant 120 : i32
    %314 = tpu.dynamic_rotate %312 by %c120_i32_131 dim 1 : vector<2x128xf32>, i32 -> vector<2x128xf32>
    %c116_i32_132 = arith.constant 116 : i32
    %315 = tpu.dynamic_rotate %312 by %c116_i32_132 dim 1 : vector<2x128xf32>, i32 -> vector<2x128xf32>
    %316 = arith.mulf %313, %299 : vector<2x128xf32>
    %317 = arith.mulf %312, %314 : vector<2x128xf32>
    %318 = arith.addf %316, %317 : vector<2x128xf32>
    %319 = math.tanh %318 : vector<2x128xf32>
    %320 = arith.mulf %315, %319 : vector<2x128xf32>
    %321 = tpu.concatenate %301, %320 in 0 : vector<2x128xf32>, vector<2x128xf32> -> vector<4x128xf32>
    %322 = arith.truncf %321 : vector<4x128xf32> to vector<4x128xbf16>
    %cst_133 = arith.constant dense<0.000000e+00> : vector<4x128xf32>
    %323 = tpu.matmul %322, %268, %cst_133 {dimension_numbers = #tpu.dot_dimension_numbers<[1], [0], [0], [1], [0, 0, 1, 1], [], []>} : vector<4x128xbf16>, vector<128x128xbf16>, vector<4x128xf32> -> vector<4x128xf32>
    %324 = vector.broadcast %269 : vector<1x128xf32> to vector<4x128xf32>
    %325 = arith.addf %323, %324 : vector<4x128xf32>
    %326 = vector.extract_strided_slice %325 {offsets = [0, 0], sizes = [2, 128], strides = [1, 1]} : vector<4x128xf32> to vector<2x128xf32>
    %327 = vector.extract_strided_slice %325 {offsets = [2, 0], sizes = [2, 128], strides = [1, 1]} : vector<4x128xf32> to vector<2x128xf32>
    %c0_134 = arith.constant 0 : index
    %c0_135 = arith.constant 0 : index
    %c0_136 = arith.constant 0 : index
    %328 = vector.load %arg3[%c0_134, %c0_135, %c0_136] : memref<2x4x128xf32, #tpu.memory_space<vmem>>, vector<2x1x128xf32>
    %329 = vector.shape_cast %328 : vector<2x1x128xf32> to vector<2x128xf32>
    %c0_137 = arith.constant 0 : index
    %c1_138 = arith.constant 1 : index
    %c0_139 = arith.constant 0 : index
    %330 = vector.load %arg3[%c0_137, %c1_138, %c0_139] : memref<2x4x128xf32, #tpu.memory_space<vmem>>, vector<2x1x128xf32>
    %331 = vector.shape_cast %330 : vector<2x1x128xf32> to vector<2x128xf32>
    %c0_140 = arith.constant 0 : index
    %c2_141 = arith.constant 2 : index
    %c0_142 = arith.constant 0 : index
    %332 = vector.load %arg3[%c0_140, %c2_141, %c0_142] : memref<2x4x128xf32, #tpu.memory_space<vmem>>, vector<2x1x128xf32>
    %333 = vector.shape_cast %332 : vector<2x1x128xf32> to vector<2x128xf32>
    %c0_143 = arith.constant 0 : index
    %c3 = arith.constant 3 : index
    %c0_144 = arith.constant 0 : index
    %334 = vector.load %arg3[%c0_143, %c3, %c0_144] : memref<2x4x128xf32, #tpu.memory_space<vmem>>, vector<2x1x128xf32>
    %335 = vector.shape_cast %334 : vector<2x1x128xf32> to vector<2x128xf32>
    %c0_145 = arith.constant 0 : index
    %c0_146 = arith.constant 0 : index
    %336 = vector.load %arg24[%c0_145, %c0_146] : memref<128x128xbf16, #tpu.memory_space<vmem>>, vector<128x128xbf16>
    %c0_147 = arith.constant 0 : index
    %c0_148 = arith.constant 0 : index
    %337 = vector.load %arg25[%c0_147, %c0_148] : memref<128x128xbf16, #tpu.memory_space<vmem>>, vector<128x128xbf16>
    %c0_149 = arith.constant 0 : index
    %c0_150 = arith.constant 0 : index
    %338 = vector.load %arg26[%c0_149, %c0_150] : memref<1x128xf32, #tpu.memory_space<vmem>>, vector<1x128xf32>
    %c0_151 = arith.constant 0 : index
    %c0_152 = arith.constant 0 : index
    %339 = vector.load %arg27[%c0_151, %c0_152] : memref<128x128xbf16, #tpu.memory_space<vmem>>, vector<128x128xbf16>
    %c0_153 = arith.constant 0 : index
    %c0_154 = arith.constant 0 : index
    %340 = vector.load %arg28[%c0_153, %c0_154] : memref<1x128xf32, #tpu.memory_space<vmem>>, vector<1x128xf32>
    %341 = tpu.concatenate %329, %331, %333, %335 in 0 : vector<2x128xf32>, vector<2x128xf32>, vector<2x128xf32>, vector<2x128xf32> -> vector<8x128xf32>
    %342 = arith.truncf %341 : vector<8x128xf32> to vector<8x128xbf16>
    %cst_155 = arith.constant dense<0.000000e+00> : vector<8x128xf32>
    %343 = tpu.matmul %342, %336, %cst_155 {dimension_numbers = #tpu.dot_dimension_numbers<[1], [0], [0], [1], [0, 0, 1, 1], [], []>} : vector<8x128xbf16>, vector<128x128xbf16>, vector<8x128xf32> -> vector<8x128xf32>
    %344 = vector.broadcast %338 : vector<1x128xf32> to vector<8x128xf32>
    %345 = arith.addf %343, %344 : vector<8x128xf32>
    %346 = tpu.iota {dimensions = array<i32: 1>} : vector<2x128xi32>
    %c6_i32 = arith.constant 6 : i32
    %347 = vector.broadcast %c6_i32 : i32 to vector<2x128xi32>
    %348 = arith.cmpi sge, %346, %347 : vector<2x128xi32>
    %c9_i32 = arith.constant 9 : i32
    %349 = vector.broadcast %c9_i32 : i32 to vector<2x128xi32>
    %350 = arith.cmpi slt, %346, %349 : vector<2x128xi32>
    %351 = arith.andi %348, %350 : vector<2x128xi1>
    %cst_156 = arith.constant 0.000000e+00 : f32
    %352 = vector.broadcast %cst_156 : f32 to vector<2x128xf32>
    %cst_157 = arith.constant 0.000000e+00 : f32
    %353 = vector.broadcast %cst_157 : f32 to vector<2x128xf32>
    %354 = vector.extract_strided_slice %345 {offsets = [0, 0], sizes = [2, 128], strides = [1, 1]} : vector<8x128xf32> to vector<2x128xf32>
    %355 = arith.truncf %352 : vector<2x128xf32> to vector<2x128xbf16>
    %cst_158 = arith.constant dense<0.000000e+00> : vector<2x128xf32>
    %356 = tpu.matmul %355, %337, %cst_158 {dimension_numbers = #tpu.dot_dimension_numbers<[1], [0], [0], [1], [0, 0, 1, 1], [], []>} : vector<2x128xbf16>, vector<128x128xbf16>, vector<2x128xf32> -> vector<2x128xf32>
    %357 = arith.addf %354, %356 : vector<2x128xf32>
    %358 = math.tanh %357 : vector<2x128xf32>
    %359 = arith.negf %357 : vector<2x128xf32>
    %360 = math.exp %359 : vector<2x128xf32>
    %cst_159 = arith.constant 1.000000e+00 : f32
    %361 = vector.broadcast %cst_159 : f32 to vector<2x128xf32>
    %362 = arith.addf %361, %360 : vector<2x128xf32>
    %363 = arith.divf %361, %362 : vector<2x128xf32>
    %364 = arith.select %351, %358, %363 : vector<2x128xi1>, vector<2x128xf32>
    %c125_i32 = arith.constant 125 : i32
    %365 = tpu.dynamic_rotate %364 by %c125_i32 dim 1 : vector<2x128xf32>, i32 -> vector<2x128xf32>
    %c122_i32 = arith.constant 122 : i32
    %366 = tpu.dynamic_rotate %364 by %c122_i32 dim 1 : vector<2x128xf32>, i32 -> vector<2x128xf32>
    %c119_i32 = arith.constant 119 : i32
    %367 = tpu.dynamic_rotate %364 by %c119_i32 dim 1 : vector<2x128xf32>, i32 -> vector<2x128xf32>
    %368 = arith.mulf %365, %353 : vector<2x128xf32>
    %369 = arith.mulf %364, %366 : vector<2x128xf32>
    %370 = arith.addf %368, %369 : vector<2x128xf32>
    %371 = math.tanh %370 : vector<2x128xf32>
    %372 = arith.mulf %367, %371 : vector<2x128xf32>
    %373 = vector.extract_strided_slice %345 {offsets = [2, 0], sizes = [2, 128], strides = [1, 1]} : vector<8x128xf32> to vector<2x128xf32>
    %374 = arith.truncf %372 : vector<2x128xf32> to vector<2x128xbf16>
    %cst_160 = arith.constant dense<0.000000e+00> : vector<2x128xf32>
    %375 = tpu.matmul %374, %337, %cst_160 {dimension_numbers = #tpu.dot_dimension_numbers<[1], [0], [0], [1], [0, 0, 1, 1], [], []>} : vector<2x128xbf16>, vector<128x128xbf16>, vector<2x128xf32> -> vector<2x128xf32>
    %376 = arith.addf %373, %375 : vector<2x128xf32>
    %377 = math.tanh %376 : vector<2x128xf32>
    %378 = arith.negf %376 : vector<2x128xf32>
    %379 = math.exp %378 : vector<2x128xf32>
    %cst_161 = arith.constant 1.000000e+00 : f32
    %380 = vector.broadcast %cst_161 : f32 to vector<2x128xf32>
    %381 = arith.addf %380, %379 : vector<2x128xf32>
    %382 = arith.divf %380, %381 : vector<2x128xf32>
    %383 = arith.select %351, %377, %382 : vector<2x128xi1>, vector<2x128xf32>
    %c125_i32_162 = arith.constant 125 : i32
    %384 = tpu.dynamic_rotate %383 by %c125_i32_162 dim 1 : vector<2x128xf32>, i32 -> vector<2x128xf32>
    %c122_i32_163 = arith.constant 122 : i32
    %385 = tpu.dynamic_rotate %383 by %c122_i32_163 dim 1 : vector<2x128xf32>, i32 -> vector<2x128xf32>
    %c119_i32_164 = arith.constant 119 : i32
    %386 = tpu.dynamic_rotate %383 by %c119_i32_164 dim 1 : vector<2x128xf32>, i32 -> vector<2x128xf32>
    %387 = arith.mulf %384, %370 : vector<2x128xf32>
    %388 = arith.mulf %383, %385 : vector<2x128xf32>
    %389 = arith.addf %387, %388 : vector<2x128xf32>
    %390 = math.tanh %389 : vector<2x128xf32>
    %391 = arith.mulf %386, %390 : vector<2x128xf32>
    %392 = vector.extract_strided_slice %345 {offsets = [4, 0], sizes = [2, 128], strides = [1, 1]} : vector<8x128xf32> to vector<2x128xf32>
    %393 = arith.truncf %391 : vector<2x128xf32> to vector<2x128xbf16>
    %cst_165 = arith.constant dense<0.000000e+00> : vector<2x128xf32>
    %394 = tpu.matmul %393, %337, %cst_165 {dimension_numbers = #tpu.dot_dimension_numbers<[1], [0], [0], [1], [0, 0, 1, 1], [], []>} : vector<2x128xbf16>, vector<128x128xbf16>, vector<2x128xf32> -> vector<2x128xf32>
    %395 = arith.addf %392, %394 : vector<2x128xf32>
    %396 = math.tanh %395 : vector<2x128xf32>
    %397 = arith.negf %395 : vector<2x128xf32>
    %398 = math.exp %397 : vector<2x128xf32>
    %cst_166 = arith.constant 1.000000e+00 : f32
    %399 = vector.broadcast %cst_166 : f32 to vector<2x128xf32>
    %400 = arith.addf %399, %398 : vector<2x128xf32>
    %401 = arith.divf %399, %400 : vector<2x128xf32>
    %402 = arith.select %351, %396, %401 : vector<2x128xi1>, vector<2x128xf32>
    %c125_i32_167 = arith.constant 125 : i32
    %403 = tpu.dynamic_rotate %402 by %c125_i32_167 dim 1 : vector<2x128xf32>, i32 -> vector<2x128xf32>
    %c122_i32_168 = arith.constant 122 : i32
    %404 = tpu.dynamic_rotate %402 by %c122_i32_168 dim 1 : vector<2x128xf32>, i32 -> vector<2x128xf32>
    %c119_i32_169 = arith.constant 119 : i32
    %405 = tpu.dynamic_rotate %402 by %c119_i32_169 dim 1 : vector<2x128xf32>, i32 -> vector<2x128xf32>
    %406 = arith.mulf %403, %389 : vector<2x128xf32>
    %407 = arith.mulf %402, %404 : vector<2x128xf32>
    %408 = arith.addf %406, %407 : vector<2x128xf32>
    %409 = math.tanh %408 : vector<2x128xf32>
    %410 = arith.mulf %405, %409 : vector<2x128xf32>
    %411 = vector.extract_strided_slice %345 {offsets = [6, 0], sizes = [2, 128], strides = [1, 1]} : vector<8x128xf32> to vector<2x128xf32>
    %412 = arith.truncf %410 : vector<2x128xf32> to vector<2x128xbf16>
    %cst_170 = arith.constant dense<0.000000e+00> : vector<2x128xf32>
    %413 = tpu.matmul %412, %337, %cst_170 {dimension_numbers = #tpu.dot_dimension_numbers<[1], [0], [0], [1], [0, 0, 1, 1], [], []>} : vector<2x128xbf16>, vector<128x128xbf16>, vector<2x128xf32> -> vector<2x128xf32>
    %414 = arith.addf %411, %413 : vector<2x128xf32>
    %415 = math.tanh %414 : vector<2x128xf32>
    %416 = arith.negf %414 : vector<2x128xf32>
    %417 = math.exp %416 : vector<2x128xf32>
    %cst_171 = arith.constant 1.000000e+00 : f32
    %418 = vector.broadcast %cst_171 : f32 to vector<2x128xf32>
    %419 = arith.addf %418, %417 : vector<2x128xf32>
    %420 = arith.divf %418, %419 : vector<2x128xf32>
    %421 = arith.select %351, %415, %420 : vector<2x128xi1>, vector<2x128xf32>
    %c125_i32_172 = arith.constant 125 : i32
    %422 = tpu.dynamic_rotate %421 by %c125_i32_172 dim 1 : vector<2x128xf32>, i32 -> vector<2x128xf32>
    %c122_i32_173 = arith.constant 122 : i32
    %423 = tpu.dynamic_rotate %421 by %c122_i32_173 dim 1 : vector<2x128xf32>, i32 -> vector<2x128xf32>
    %c119_i32_174 = arith.constant 119 : i32
    %424 = tpu.dynamic_rotate %421 by %c119_i32_174 dim 1 : vector<2x128xf32>, i32 -> vector<2x128xf32>
    %425 = arith.mulf %422, %408 : vector<2x128xf32>
    %426 = arith.mulf %421, %423 : vector<2x128xf32>
    %427 = arith.addf %425, %426 : vector<2x128xf32>
    %428 = math.tanh %427 : vector<2x128xf32>
    %429 = arith.mulf %424, %428 : vector<2x128xf32>
    %430 = tpu.concatenate %372, %391, %410, %429 in 0 : vector<2x128xf32>, vector<2x128xf32>, vector<2x128xf32>, vector<2x128xf32> -> vector<8x128xf32>
    %431 = arith.truncf %430 : vector<8x128xf32> to vector<8x128xbf16>
    %cst_175 = arith.constant dense<0.000000e+00> : vector<8x128xf32>
    %432 = tpu.matmul %431, %339, %cst_175 {dimension_numbers = #tpu.dot_dimension_numbers<[1], [0], [0], [1], [0, 0, 1, 1], [], []>} : vector<8x128xbf16>, vector<128x128xbf16>, vector<8x128xf32> -> vector<8x128xf32>
    %433 = vector.broadcast %340 : vector<1x128xf32> to vector<8x128xf32>
    %434 = arith.addf %432, %433 : vector<8x128xf32>
    %435 = vector.extract_strided_slice %434 {offsets = [0, 0], sizes = [2, 128], strides = [1, 1]} : vector<8x128xf32> to vector<2x128xf32>
    %436 = vector.extract_strided_slice %434 {offsets = [2, 0], sizes = [2, 128], strides = [1, 1]} : vector<8x128xf32> to vector<2x128xf32>
    %437 = vector.extract_strided_slice %434 {offsets = [4, 0], sizes = [2, 128], strides = [1, 1]} : vector<8x128xf32> to vector<2x128xf32>
    %438 = vector.extract_strided_slice %434 {offsets = [6, 0], sizes = [2, 128], strides = [1, 1]} : vector<8x128xf32> to vector<2x128xf32>
    %cst_176 = arith.constant 0.000000e+00 : f32
    %439 = vector.broadcast %cst_176 : f32 to vector<124x128xf32>
    %440 = vector.extract_strided_slice %326 {offsets = [0, 0], sizes = [1, 128], strides = [1, 1]} : vector<2x128xf32> to vector<1x128xf32>
    %441 = vector.extract_strided_slice %327 {offsets = [0, 0], sizes = [1, 128], strides = [1, 1]} : vector<2x128xf32> to vector<1x128xf32>
    %442 = tpu.concatenate %440, %441 in 0 : vector<1x128xf32>, vector<1x128xf32> -> vector<2x128xf32>
    %443 = vector.extract_strided_slice %435 {offsets = [0, 0], sizes = [1, 128], strides = [1, 1]} : vector<2x128xf32> to vector<1x128xf32>
    %444 = vector.extract_strided_slice %436 {offsets = [0, 0], sizes = [1, 128], strides = [1, 1]} : vector<2x128xf32> to vector<1x128xf32>
    %445 = vector.extract_strided_slice %437 {offsets = [0, 0], sizes = [1, 128], strides = [1, 1]} : vector<2x128xf32> to vector<1x128xf32>
    %446 = vector.extract_strided_slice %438 {offsets = [0, 0], sizes = [1, 128], strides = [1, 1]} : vector<2x128xf32> to vector<1x128xf32>
    %447 = tpu.concatenate %443, %444, %445, %446, %439 in 0 : vector<1x128xf32>, vector<1x128xf32>, vector<1x128xf32>, vector<1x128xf32>, vector<124x128xf32> -> vector<128x128xf32>
    %cst_177 = arith.constant dense<0.000000e+00> : vector<2x128xf32>
    %448 = tpu.matmul %442, %447, %cst_177 {dimension_numbers = #tpu.dot_dimension_numbers<[1], [0], [0], [1], [0, 0, 1, 1], [], []>} : vector<2x128xf32>, vector<128x128xf32>, vector<2x128xf32> -> vector<2x128xf32>
    %c0_178 = arith.constant 0 : index
    %c0_179 = arith.constant 0 : index
    %c0_180 = arith.constant 0 : index
    %449 = vector.load %arg29[%c0_178, %c0_179, %c0_180] : memref<2x2x128xf32, #tpu.memory_space<vmem>>, vector<1x2x128xf32>
    %450 = vector.shape_cast %449 : vector<1x2x128xf32> to vector<2x128xf32>
    %451 = vector.shape_cast %448 : vector<2x128xf32> to vector<1x2x128xf32>
    tpu.vector_store %arg29[%c0_178, %c0_179, %c0_180], %451 {strides = array<i32>} : memref<2x2x128xf32, #tpu.memory_space<vmem>>, vector<1x2x128xf32>,
    %452 = vector.extract_strided_slice %326 {offsets = [1, 0], sizes = [1, 128], strides = [1, 1]} : vector<2x128xf32> to vector<1x128xf32>
    %453 = vector.extract_strided_slice %327 {offsets = [1, 0], sizes = [1, 128], strides = [1, 1]} : vector<2x128xf32> to vector<1x128xf32>
    %454 = tpu.concatenate %452, %453 in 0 : vector<1x128xf32>, vector<1x128xf32> -> vector<2x128xf32>
    %455 = vector.extract_strided_slice %435 {offsets = [1, 0], sizes = [1, 128], strides = [1, 1]} : vector<2x128xf32> to vector<1x128xf32>
    %456 = vector.extract_strided_slice %436 {offsets = [1, 0], sizes = [1, 128], strides = [1, 1]} : vector<2x128xf32> to vector<1x128xf32>
    %457 = vector.extract_strided_slice %437 {offsets = [1, 0], sizes = [1, 128], strides = [1, 1]} : vector<2x128xf32> to vector<1x128xf32>
    %458 = vector.extract_strided_slice %438 {offsets = [1, 0], sizes = [1, 128], strides = [1, 1]} : vector<2x128xf32> to vector<1x128xf32>
    %459 = tpu.concatenate %455, %456, %457, %458, %439 in 0 : vector<1x128xf32>, vector<1x128xf32>, vector<1x128xf32>, vector<1x128xf32>, vector<124x128xf32> -> vector<128x128xf32>
    %cst_181 = arith.constant dense<0.000000e+00> : vector<2x128xf32>
    %460 = tpu.matmul %454, %459, %cst_181 {dimension_numbers = #tpu.dot_dimension_numbers<[1], [0], [0], [1], [0, 0, 1, 1], [], []>} : vector<2x128xf32>, vector<128x128xf32>, vector<2x128xf32> -> vector<2x128xf32>
    %c1_182 = arith.constant 1 : index
    %c0_183 = arith.constant 0 : index
    %c0_184 = arith.constant 0 : index
    %461 = vector.load %arg29[%c1_182, %c0_183, %c0_184] : memref<2x2x128xf32, #tpu.memory_space<vmem>>, vector<1x2x128xf32>
    %462 = vector.shape_cast %461 : vector<1x2x128xf32> to vector<2x128xf32>
    %463 = vector.shape_cast %460 : vector<2x128xf32> to vector<1x2x128xf32>
    tpu.vector_store %arg29[%c1_182, %c0_183, %c0_184], %463 {strides = array<i32>} : memref<2x2x128xf32, #tpu.memory_space<vmem>>, vector<1x2x128xf32>,
    return
  }
}

</mosaic_0001>

<bundles_post_ra>
// kernel: tpu_custom_call.1
= control target key start
LH: loop header
LB: loop body
LE: loop exit
PB: predicated region body
PF: predicated region fallthrough
CT: control target
= control target key end

     0   :  { %s4737_s6 = smov 1   ;;  %s4738_s10 = smov 2   ;;  %s5639_s0 = inlined_call_operand.smem [shape: u32[30], index: -1, kind: input, shape index: {}] }
   0x1   :  { %s4815_s5 = sld [smem:[%s5639_s0]]   ;;  %s4739_s14 = smov 3  }
   0x2   :  { %s4820_s9 = sld [smem:[%s5639_s0 + %s4737_s6]]   ;;  %s4740_s18 = smov 4  }
   0x3   :  { %s4825_s13 = sld [smem:[%s5639_s0 + %s4738_s10]]   ;;  %s4741_s22 = smov 5  }
   0x4   :  { %s4830_s17 = sld [smem:[%s5639_s0 + %s4739_s14]]   ;;  %s4742_s26 = smov 6  }
   0x5   :  { %s4835_s21 = sld [smem:[%s5639_s0 + %s4740_s18]]   ;;  %s4743_s30 = smov 7  }
   0x6   :  { %s4840_s25 = sld [smem:[%s5639_s0 + %s4741_s22]]   ;;  %s4744_s4 = smov 8  }
   0x7   :  { %s4845_s29 = sld [smem:[%s5639_s0 + %s4742_s26]]   ;;  %s4745_s10 = smov 9  }
   0x8   :  { %s4850_s3 = sld [smem:[%s5639_s0 + %s4743_s30]]   ;;  %s4746_s15 = smov 10  }
   0x9   :  { %s4855_s8 = sld [smem:[%s5639_s0 + %s4744_s4]]   ;;  %s4747_s20 = smov 11  }
   0xa   :  { %s4860_s14 = sld [smem:[%s5639_s0 + %s4745_s10]]   ;;  %s4748_s26 = smov 12  }
   0xb   :  { %s4865_s19 = sld [smem:[%s5639_s0 + %s4746_s15]]   ;;  %s4749_s1 = smov 13  }
   0xc   :  { %s4870_s24 = sld [smem:[%s5639_s0 + %s4747_s20]]   ;;  %s4750_s7 = smov 14  }
   0xd   :  { %5649 = sst [smem:[#allocation52_spill]] %s4845_s29  ;;  %s4751_s15 = smov 15  }
   0xe   :  { %s4875_s30 = sld [smem:[%s5639_s0 + %s4748_s26]]   ;;  %s4752_s22 = smov 16  }
   0xf   :  { %5650 = sst [smem:[#allocation53_spill]] %s4855_s8  ;;  %s4753_s28 = smov 17  }
  0x10   :  { %s4880_s6 = sld [smem:[%s5639_s0 + %s4749_s1]]  }
  0x11   :  { %5651 = sst [smem:[#allocation54_spill]] %s4865_s19 }
  0x12   :  { %s4885_s12 = sld [smem:[%s5639_s0 + %s4750_s7]]   ;;  %s4754_s7 = smov 18  }
  0x13   :  { %s4890_s20 = sld [smem:[%s5639_s0 + %s4751_s15]]   ;;  %s4755_s15 = smov 19  }
  0x14   :  { %5652 = sst [smem:[#allocation55_spill]] %s4875_s30 }
  0x15   :  { %s4895_s27 = sld [smem:[%s5639_s0 + %s4752_s22]]   ;;  %s4756_s22 = smov 20  }
  0x16   :  { %s4900_s4 = sld [smem:[%s5639_s0 + %s4753_s28]]   ;;  %s4757_s28 = smov 21  }
  0x17   :  { %s4910_s30 = sld [smem:[%s5639_s0 + %s4755_s15]]   ;;  %s4759_s15 = smov 23  }
  0x18   :  { %5653 = sst [smem:[#allocation56_spill]] %s4885_s12 }
  0x19   :  { %s4905_s12 = sld [smem:[%s5639_s0 + %s4754_s7]]   ;;  %s4758_s7 = smov 22  }
  0x1a   :  { %s4930_s19 = sld [smem:[%s5639_s0 + %s4759_s15]]   ;;  %s4763_s15 = smov 27  }
  0x1b   :  { %5654 = sst [smem:[#allocation57_spill]] %s4895_s27 }
  0x1c   :  { %5655 = sst [smem:[#allocation58_spill]] %s4900_s4 }
  0x1d   :  { %s4915_s27 = sld [smem:[%s5639_s0 + %s4756_s22]]   ;;  %s4760_s22 = smov 24  }
  0x1e   :  { %s4920_s4 = sld [smem:[%s5639_s0 + %s4757_s28]]   ;;  %s4761_s28 = smov 25  }
  0x1f   :  { %5656 = sst [smem:[#allocation59_spill]] %s4905_s12 }
  0x20   :  { %s4925_s12 = sld [smem:[%s5639_s0 + %s4758_s7]]   ;;  %s4762_s7 = smov 26  }
  0x21   :  { %5659 = sst [smem:[#allocation62_spill]] %s4930_s19 }
  0x22   :  { %s4945_s8 = sld [smem:[%s5639_s0 + %s4762_s7]]  }
  0x23   :  { %5657 = sst [smem:[#allocation60_spill]] %s4915_s27 }
  0x24   :  { %5658 = sst [smem:[#allocation61_spill]] %s4920_s4 }
  0x25   :  { %s4935_s27 = sld [smem:[%s5639_s0 + %s4760_s22]]   ;;  %s4764_s22 = smov 28  }
  0x26   :  { %s4940_s4 = sld [smem:[%s5639_s0 + %s4761_s28]]   ;;  %s4765_s28 = smov 29  }
  0x27   :  { %s4950_s19 = sld [smem:[%s5639_s0 + %s4763_s15]]  }
  0x28   :  { %s4960_s29 = sld [smem:[%s5639_s0 + %s4765_s28]]  }
  0x2b   :  { %5660 = sst [smem:[#allocation63_spill]] %s4935_s27 }
  0x2c   :  { %s4955_s27 = sld [smem:[%s5639_s0 + %s4764_s22]]  }
  0x2d   :  { %64 = vsyncpa [#allocation3], 0 }
  0x2e   :  { %65 = vsyncpa [#allocation6], 0 }
  0x2f   :  { %66 = vsyncpa [#allocation9], 0 }
  0x30   :  { %67 = vsyncpa [#allocation12], 0 }
  0x31   :  { %68 = vsyncpa [#allocation15], 0 }
  0x32   :  { %69 = vsyncpa [#allocation18], 0 }
  0x33   :  { %70 = vsyncpa [#allocation21], 0 }
  0x34   :  { %71 = vsyncpa [#allocation24], 0 }
  0x35   :  { %72 = vsyncpa [#allocation27], 0 }
  0x36   :  { %73 = vsyncpa [#allocation30], 0 }
  0x37   :  { %74 = vsyncpa [#allocation33], 0 }
  0x38   :  { %75 = vsyncpa [#allocation36], 0 }
  0x39   :  { %76 = vsyncpa [#allocation4], 0  ;;  %s4766_s7 = smov [#allocation5]   ;;  %s4767_s0 = smov [#allocation8]  }
  0x3a   :  { %s94_s10 = sshll.u32 %s4766_s7, 4  ;;  %s118_s11 = sshll.u32 %s4767_s0, 4  ;;  %s95_s10 = int_to_ptr.vmem [resolvable:$true] %s94_s10  ;;  %s4962_s11 = int_to_ptr.vmem [resolvable:$true] %s118_s11 }
  0x3b   :  { %s4183_s15 = scalar_lea.hbm %s4820_s9, 96 }
  0x3c   :  { %p4184_p0 = scmp.ne.s32.totalorder %s4820_s9, %s4183_s15  ;;  %p4187_p1 = scmp.lt.u32.totalorder %s4183_s15, %s4820_s9 }
  0x3e   :  { %p4189_p2 = pnand %p4187_p1, %p4184_p0 }
  0x40   :  { %4192 = shalt.err (!%p4189_p2)
}
  0x41   :  { %s4193_s16 = scalar_lea.vmem %s95_s10, 96  ;;  %p4198_p4 = scmp.lt.s32.totalorder %s95_s10, %s95_s10 }
  0x42   :  { %p4194_p3 = scmp.ne.s32.totalorder %s95_s10, %s4193_s16  ;;  %p4199_p5 = scmp.lt.s32.totalorder %s4193_s16, %s4193_s16 }
  0x44   :  { %p4200_p6 = por %p4199_p5, %p4198_p4 }
  0x46   :  { %p4201_p7 = pnand %p4200_p6, %p4194_p3 }
  0x48   :  { %4204 = shalt.err (!%p4201_p7)
}
  0x49   :  { %s4768_s18 = smov 32   ;;  %s4769_s22 = smov 2  }
  0x4a   :  { %100 = dma.hbm_to_vmem [thread:$0]  %s4820_s9, 96, %s95_s10, [#allocation6], %s4768_s18, %s4768_s18, %s4769_s22  }
  0x4b   :  { %s4205_s23 = scalar_lea.hbm %s4830_s17, 128 }
  0x4c   :  { %p4206_p8 = scmp.ne.s32.totalorder %s4830_s17, %s4205_s23  ;;  %p4209_p9 = scmp.lt.u32.totalorder %s4205_s23, %s4830_s17 }
  0x4e   :  { %p4211_p10 = pnand %p4209_p9, %p4206_p8 }
  0x50   :  { %4214 = shalt.err (!%p4211_p10)
}
  0x51   :  { %s4215_s26 = scalar_lea.vmem %s4962_s11, 128  ;;  %p4220_p12 = scmp.lt.s32.totalorder %s4962_s11, %s4962_s11 }
  0x52   :  { %p4216_p11 = scmp.ne.s32.totalorder %s4962_s11, %s4215_s26  ;;  %p4221_p13 = scmp.lt.s32.totalorder %s4215_s26, %s4215_s26 }
  0x54   :  { %p4222_p0 = por %p4221_p13, %p4220_p12 }
  0x56   :  { %p4223_p1 = pnand %p4222_p0, %p4216_p11 }
  0x58   :  { %4226 = shalt.err (!%p4223_p1)
}
  0x59   :  { %s4770_s28 = smov 64   ;;  %s4771_s9 = smov 4  }
  0x5a   :  { %124 = dma.hbm_to_vmem [thread:$0]  %s4830_s17, 128, %s4962_s11, [#allocation9], %s4770_s28, %s4770_s28, %s4771_s9  }
  0x5b   :  { %s4772_s1 = smov [#allocation11]   ;;  %s4773_s7 = smov [#allocation14]  }
  0x5c   :  { %s142_s2 = sshll.u32 %s4772_s1, 4  ;;  %s164_s10 = sshll.u32 %s4773_s7, 4  ;;  %s143_s2 = int_to_ptr.vmem [resolvable:$true] %s142_s2  ;;  %s4983_s10 = int_to_ptr.vmem [resolvable:$true] %s164_s10 }
  0x5d   :  { %s4227_s0 = scalar_lea.hbm %s4840_s25, 1024 }
  0x5e   :  { %p4228_p2 = scmp.ne.s32.totalorder %s4840_s25, %s4227_s0  ;;  %p4231_p3 = scmp.lt.u32.totalorder %s4227_s0, %s4840_s25 }
  0x60   :  { %p4233_p4 = pnand %p4231_p3, %p4228_p2 }
  0x62   :  { %4236 = shalt.err (!%p4233_p4)
}
  0x63   :  { %s4237_s15 = scalar_lea.vmem %s143_s2, 1024  ;;  %p4242_p6 = scmp.lt.s32.totalorder %s143_s2, %s143_s2 }
  0x64   :  { %p4238_p5 = scmp.ne.s32.totalorder %s143_s2, %s4237_s15  ;;  %p4243_p7 = scmp.lt.s32.totalorder %s4237_s15, %s4237_s15 }
  0x66   :  { %p4244_p8 = por %p4243_p7, %p4242_p6 }
  0x68   :  { %p4245_p9 = pnand %p4244_p8, %p4238_p5 }
  0x6a   :  { %4248 = shalt.err (!%p4245_p9)
}
  0x6b   :  { %148 = dma.hbm_to_vmem [thread:$0]  %s4840_s25, 1024, %s143_s2, [#allocation12], %s4770_s28, %s4770_s28, %s4771_s9  }
  0x6c   :  { %s4249_s17 = scalar_lea.hbm %s4850_s3, 1024 }
  0x6d   :  { %p4250_p10 = scmp.ne.s32.totalorder %s4850_s3, %s4249_s17  ;;  %p4253_p11 = scmp.lt.u32.totalorder %s4249_s17, %s4850_s3 }
  0x6f   :  { %p4255_p12 = pnand %p4253_p11, %p4250_p10 }
  0x71   :  { %4258 = shalt.err (!%p4255_p12)
}
  0x72   :  { %s4259_s11 = scalar_lea.vmem %s4983_s10, 1024  ;;  %p4264_p0 = scmp.lt.s32.totalorder %s4983_s10, %s4983_s10 }
  0x73   :  { %p4260_p13 = scmp.ne.s32.totalorder %s4983_s10, %s4259_s11  ;;  %p4265_p1 = scmp.lt.s32.totalorder %s4259_s11, %s4259_s11 }
  0x75   :  { %p4266_p2 = por %p4265_p1, %p4264_p0 }
  0x77   :  { %p4267_p3 = pnand %p4266_p2, %p4260_p13 }
  0x79   :  { %4270 = shalt.err (!%p4267_p3)
}
  0x7a   :  { %170 = dma.hbm_to_vmem [thread:$0]  %s4850_s3, 1024, %s4983_s10, [#allocation15], %s4770_s28, %s4770_s28, %s4771_s9  }
  0x7b   :  { %s4774_s25 = smov [#allocation17]   ;;  %s4775_s23 = smov [#allocation20]  }
  0x7c   :  { %s186_s16 = sshll.u32 %s4774_s25, 4  ;;  %s211_s26 = sshll.u32 %s4775_s23, 4  ;;  %s187_s16 = int_to_ptr.vmem [resolvable:$true] %s186_s16  ;;  %s212_s26 = int_to_ptr.vmem [resolvable:$true] %s211_s26 }
  0x7d   :  { %s4271_s1 = scalar_lea.hbm %s4860_s14, 1024 }
  0x7e   :  { %p4272_p4 = scmp.ne.s32.totalorder %s4860_s14, %s4271_s1  ;;  %p4275_p5 = scmp.lt.u32.totalorder %s4271_s1, %s4860_s14 }
  0x80   :  { %p4277_p6 = pnand %p4275_p5, %p4272_p4 }
  0x82   :  { %4280 = shalt.err (!%p4277_p6)
}
  0x83   :  { %s4281_s2 = scalar_lea.vmem %s187_s16, 1024  ;;  %p4286_p8 = scmp.lt.s32.totalorder %s187_s16, %s187_s16 }
  0x84   :  { %p4282_p7 = scmp.ne.s32.totalorder %s187_s16, %s4281_s2  ;;  %p4287_p9 = scmp.lt.s32.totalorder %s4281_s2, %s4281_s2 }
  0x86   :  { %p4288_p10 = por %p4287_p9, %p4286_p8 }
  0x88   :  { %p4289_p11 = pnand %p4288_p10, %p4282_p7 }
  0x8a   :  { %4292 = shalt.err (!%p4289_p11)
}
  0x8b   :  { %192 = dma.hbm_to_vmem [thread:$0]  %s4860_s14, 1024, %s187_s16, [#allocation18], %s4770_s28, %s4770_s28, %s4771_s9  }
  0x8c   :  { %s4293_s3 = scalar_lea.hbm %s4870_s24, 16 }
  0x8d   :  { %p4294_p12 = scmp.ne.s32.totalorder %s4870_s24, %s4293_s3  ;;  %p4297_p13 = scmp.lt.u32.totalorder %s4293_s3, %s4870_s24 }
  0x8f   :  { %p4299_p0 = pnand %p4297_p13, %p4294_p12 }
  0x91   :  { %4302 = shalt.err (!%p4299_p0)
}
  0x92   :  { %s4303_s7 = scalar_lea.vmem %s212_s26, 16  ;;  %s4307_s10 = scalar_lea.vmem %s212_s26, 32 }
  0x93   :  { %p4304_p1 = scmp.ne.s32.totalorder %s212_s26, %s4303_s7  ;;  %p4308_p2 = scmp.lt.s32.totalorder %s212_s26, %s212_s26 }
  0x94   :  { %p4309_p3 = scmp.lt.s32.totalorder %s4307_s10, %s4303_s7 }
  0x96   :  { %p4310_p4 = por %p4309_p3, %p4308_p2 }
  0x98   :  { %p4311_p5 = pnand %p4310_p4, %p4304_p1 }
  0x9a   :  { %4314 = shalt.err (!%p4311_p5)
}
  0x9b   :  { %214 = dma.hbm_to_vmem [thread:$0]  %s4870_s24, 16, %s212_s26, [#allocation21]  }
  0x9c   :  { %s4776_s0 = smov [#allocation23]   ;;  %s4777_s15 = smov [#allocation26]  }
  0x9d   :  { %s233_s14 = sshll.u32 %s4776_s0, 4  ;;  %s254_s17 = sshll.u32 %s4777_s15, 4  ;;  %s234_s14 = int_to_ptr.vmem [resolvable:$true] %s233_s14  ;;  %s5015_s17 = int_to_ptr.vmem [resolvable:$true] %s254_s17 }
  0x9e   :  { %s4315_s11 = scalar_lea.hbm %s4880_s6, 16 }
  0x9f   :  { %p4316_p6 = scmp.ne.s32.totalorder %s4880_s6, %s4315_s11  ;;  %p4319_p7 = scmp.lt.u32.totalorder %s4315_s11, %s4880_s6 }
  0xa1   :  { %p4321_p8 = pnand %p4319_p7, %p4316_p6 }
  0xa3   :  { %4324 = shalt.err (!%p4321_p8)
}
  0xa4   :  { %s4325_s25 = scalar_lea.vmem %s234_s14, 16  ;;  %s4329_s16 = scalar_lea.vmem %s234_s14, 32 }
  0xa5   :  { %p4326_p9 = scmp.ne.s32.totalorder %s234_s14, %s4325_s25  ;;  %p4330_p10 = scmp.lt.s32.totalorder %s234_s14, %s234_s14 }
  0xa6   :  { %p4331_p11 = scmp.lt.s32.totalorder %s4329_s16, %s4325_s25 }
  0xa8   :  { %p4332_p12 = por %p4331_p11, %p4330_p10 }
  0xaa   :  { %p4333_p13 = pnand %p4332_p12, %p4326_p9 }
  0xac   :  { %4336 = shalt.err (!%p4333_p13)
}
  0xad   :  { %236 = dma.hbm_to_vmem [thread:$0]  %s4880_s6, 16, %s234_s14, [#allocation24]  }
  0xae   :  { %s4337_s24 = scalar_lea.hbm %s4890_s20, 1024 }
  0xaf   :  { %p4338_p0 = scmp.ne.s32.totalorder %s4890_s20, %s4337_s24  ;;  %p4341_p1 = scmp.lt.u32.totalorder %s4337_s24, %s4890_s20 }
  0xb1   :  { %p4343_p2 = pnand %p4341_p1, %p4338_p0 }
  0xb3   :  { %4346 = shalt.err (!%p4343_p2)
}
  0xb4   :  { %s4347_s23 = scalar_lea.vmem %s5015_s17, 1024  ;;  %p4352_p4 = scmp.lt.s32.totalorder %s5015_s17, %s5015_s17 }
  0xb5   :  { %p4348_p3 = scmp.ne.s32.totalorder %s5015_s17, %s4347_s23  ;;  %p4353_p5 = scmp.lt.s32.totalorder %s4347_s23, %s4347_s23 }
  0xb7   :  { %p4354_p6 = por %p4353_p5, %p4352_p4 }
  0xb9   :  { %p4355_p7 = pnand %p4354_p6, %p4348_p3 }
  0xbb   :  { %4358 = shalt.err (!%p4355_p7)
}
  0xbc   :  { %260 = dma.hbm_to_vmem [thread:$0]  %s4890_s20, 1024, %s5015_s17, [#allocation27], %s4770_s28, %s4770_s28, %s4771_s9  }
  0xbd   :  { %s4778_s6 = smov [#allocation29]   ;;  %s4779_s1 = smov [#allocation32]  }
  0xbe   :  { %s280_s26 = sshll.u32 %s4778_s6, 4  ;;  %s306_s2 = sshll.u32 %s4779_s1, 4  ;;  %s281_s26 = int_to_ptr.vmem [resolvable:$true] %s280_s26  ;;  %s5033_s2 = int_to_ptr.vmem [resolvable:$true] %s306_s2 }
  0xbf   :  { %s4359_s3 = scalar_lea.hbm %s4910_s30, 1024 }
  0xc0   :  { %p4360_p8 = scmp.ne.s32.totalorder %s4910_s30, %s4359_s3  ;;  %p4363_p9 = scmp.lt.u32.totalorder %s4359_s3, %s4910_s30 }
  0xc2   :  { %p4365_p10 = pnand %p4363_p9, %p4360_p8 }
  0xc4   :  { %4368 = shalt.err (!%p4365_p10)
}
  0xc5   :  { %s4369_s7 = scalar_lea.vmem %s281_s26, 1024  ;;  %p4374_p12 = scmp.lt.s32.totalorder %s281_s26, %s281_s26 }
  0xc6   :  { %p4370_p11 = scmp.ne.s32.totalorder %s281_s26, %s4369_s7  ;;  %p4375_p13 = scmp.lt.s32.totalorder %s4369_s7, %s4369_s7 }
  0xc8   :  { %p4376_p0 = por %p4375_p13, %p4374_p12 }
  0xca   :  { %p4377_p1 = pnand %p4376_p0, %p4370_p11 }
  0xcc   :  { %4380 = shalt.err (!%p4377_p1)
}
  0xcd   :  { %286 = dma.hbm_to_vmem [thread:$0]  %s4910_s30, 1024, %s281_s26, [#allocation30], %s4770_s28, %s4770_s28, %s4771_s9  }
  0xce   :  { %s4381_s20 = scalar_lea.hbm %s4925_s12, 1024 }
  0xcf   :  { %p4382_p2 = scmp.ne.s32.totalorder %s4925_s12, %s4381_s20  ;;  %p4385_p3 = scmp.lt.u32.totalorder %s4381_s20, %s4925_s12 }
  0xd1   :  { %p4387_p4 = pnand %p4385_p3, %p4382_p2 }
  0xd3   :  { %4390 = shalt.err (!%p4387_p4)
}
  0xd4   :  { %s4391_s10 = scalar_lea.vmem %s5033_s2, 1024  ;;  %p4396_p6 = scmp.lt.s32.totalorder %s5033_s2, %s5033_s2 }
  0xd5   :  { %p4392_p5 = scmp.ne.s32.totalorder %s5033_s2, %s4391_s10  ;;  %p4397_p7 = scmp.lt.s32.totalorder %s4391_s10, %s4391_s10 }
  0xd7   :  { %p4398_p8 = por %p4397_p7, %p4396_p6 }
  0xd9   :  { %p4399_p9 = pnand %p4398_p8, %p4392_p5 }
  0xdb   :  { %4402 = shalt.err (!%p4399_p9)
}
  0xdc   :  { %312 = dma.hbm_to_vmem [thread:$0]  %s4925_s12, 1024, %s5033_s2, [#allocation33], %s4770_s28, %s4770_s28, %s4771_s9  }
  0xdd   :  { %s4780_s30 = smov [#allocation35]   ;;  %s4781_s14 = smov [#allocation2]  }
  0xde   :  { %s332_s0 = sshll.u32 %s4780_s30, 4  ;;  %s82_s15 = sshll.u32 %s4781_s14, 4  ;;  %s333_s0 = int_to_ptr.vmem [resolvable:$true] %s332_s0  ;;  %s5054_s15 = int_to_ptr.vmem [resolvable:$true] %s82_s15 }
  0xdf   :  { %s4403_s17 = scalar_lea.hbm %s4940_s4, 1024 }
  0xe0   :  { %p4404_p10 = scmp.ne.s32.totalorder %s4940_s4, %s4403_s17  ;;  %p4407_p11 = scmp.lt.u32.totalorder %s4403_s17, %s4940_s4 }
  0xe2   :  { %p4409_p12 = pnand %p4407_p11, %p4404_p10 }
  0xe4   :  { %4412 = shalt.err (!%p4409_p12)
}
  0xe5   :  { %s4413_s11 = scalar_lea.vmem %s333_s0, 1024  ;;  %p4418_p0 = scmp.lt.s32.totalorder %s333_s0, %s333_s0 }
  0xe6   :  { %p4414_p13 = scmp.ne.s32.totalorder %s333_s0, %s4413_s11  ;;  %p4419_p1 = scmp.lt.s32.totalorder %s4413_s11, %s4413_s11 }
  0xe8   :  { %p4420_p2 = por %p4419_p1, %p4418_p0 }
  0xea   :  { %p4421_p3 = pnand %p4420_p2, %p4414_p13 }
  0xec   :  { %4424 = shalt.err (!%p4421_p3)
}
  0xed   :  { %338 = dma.hbm_to_vmem [thread:$0]  %s4940_s4, 1024, %s333_s0, [#allocation36], %s4770_s28, %s4770_s28, %s4771_s9  }
  0xee   :  { %s4425_s12 = scalar_lea.hbm %s4815_s5, 96 }
  0xef   :  { %p4426_p4 = scmp.ne.s32.totalorder %s4815_s5, %s4425_s12  ;;  %p4429_p5 = scmp.lt.u32.totalorder %s4425_s12, %s4815_s5 }
  0xf1   :  { %p4431_p6 = pnand %p4429_p5, %p4426_p4 }
  0xf3   :  { %4434 = shalt.err (!%p4431_p6)
}
  0xf4   :  { %s4435_s25 = scalar_lea.vmem %s5054_s15, 96  ;;  %p4440_p8 = scmp.lt.s32.totalorder %s5054_s15, %s5054_s15 }
  0xf5   :  { %p4436_p7 = scmp.ne.s32.totalorder %s5054_s15, %s4435_s25  ;;  %p4441_p9 = scmp.lt.s32.totalorder %s4435_s25, %s4435_s25 }
  0xf7   :  { %p4442_p10 = por %p4441_p9, %p4440_p8 }
  0xf9   :  { %p4443_p11 = pnand %p4442_p10, %p4436_p7 }
  0xfb   :  { %4446 = shalt.err (!%p4443_p11)
}
  0xfc   :  { %88 = dma.hbm_to_vmem [thread:$0]  %s4815_s5, 96, %s5054_s15, [#allocation3], %s4768_s18, %s4768_s18, %s4769_s22  }
  0xfd   :  { %s4782_s4 = smov [#allocation7]   ;;  %s4783_s24 = smov [#allocation10]  }
  0xfe   :  { %s106_s16 = sshll.u32 %s4782_s4, 4  ;;  %s130_s23 = sshll.u32 %s4783_s24, 4  ;;  %s107_s16 = int_to_ptr.vmem [resolvable:$true] %s106_s16  ;;  %s5075_s23 = int_to_ptr.vmem [resolvable:$true] %s130_s23 }
  0xff   :  { %s4447_s6 = scalar_lea.hbm %s4825_s13, 64 }
 0x100   :  { %p4448_p12 = scmp.ne.s32.totalorder %s4825_s13, %s4447_s6  ;;  %p4451_p13 = scmp.lt.u32.totalorder %s4447_s6, %s4825_s13 }
 0x102   :  { %p4453_p0 = pnand %p4451_p13, %p4448_p12 }
 0x104   :  { %4456 = shalt.err (!%p4453_p0)
}
 0x105   :  { %s4457_s26 = scalar_lea.vmem %s107_s16, 64  ;;  %p4462_p2 = scmp.lt.s32.totalorder %s107_s16, %s107_s16 }
 0x106   :  { %p4458_p1 = scmp.ne.s32.totalorder %s107_s16, %s4457_s26  ;;  %p4463_p3 = scmp.lt.s32.totalorder %s4457_s26, %s4457_s26 }
 0x108   :  { %p4464_p4 = por %p4463_p3, %p4462_p2 }
 0x10a   :  { %p4465_p5 = pnand %p4464_p4, %p4458_p1 }
 0x10c   :  { %4468 = shalt.err (!%p4465_p5)
}
 0x10d   :  { %112 = dma.hbm_to_vmem [thread:$0]  %s4825_s13, 64, %s107_s16, [#allocation6], %s4768_s18, %s4768_s18, %s4769_s22  }
 0x10e   :  { %s4469_s5 = scalar_lea.hbm %s4835_s21, 1024 }
 0x10f   :  { %p4470_p6 = scmp.ne.s32.totalorder %s4835_s21, %s4469_s5  ;;  %p4473_p7 = scmp.lt.u32.totalorder %s4469_s5, %s4835_s21 }
 0x111   :  { %p4475_p8 = pnand %p4473_p7, %p4470_p6 }
 0x113   :  { %4478 = shalt.err (!%p4475_p8)
}
 0x114   :  { %s4479_s1 = scalar_lea.vmem %s5075_s23, 1024  ;;  %p4484_p10 = scmp.lt.s32.totalorder %s5075_s23, %s5075_s23 }
 0x115   :  { %p4480_p9 = scmp.ne.s32.totalorder %s5075_s23, %s4479_s1  ;;  %p4485_p11 = scmp.lt.s32.totalorder %s4479_s1, %s4479_s1 }
 0x117   :  { %p4486_p12 = por %p4485_p11, %p4484_p10 }
 0x119   :  { %p4487_p13 = pnand %p4486_p12, %p4480_p9 }
 0x11b   :  { %4490 = shalt.err (!%p4487_p13)
}
 0x11c   :  { %s5661_s13 = sld [smem:[#allocation52_spill]]  ;;  %s4784_s2 = smov [#allocation13]  }
 0x11d   :  { %136 = dma.hbm_to_vmem [thread:$0]  %s4835_s21, 1024, %s5075_s23, [#allocation9], %s4770_s28, %s4770_s28, %s4771_s9  }
 0x11e   :  { %s155_s3 = sshll.u32 %s4784_s2, 4  ;;  %s4785_s7 = smov [#allocation16]   ;;  %s156_s3 = int_to_ptr.vmem [resolvable:$true] %s155_s3 }
 0x11f   :  { %s177_s20 = sshll.u32 %s4785_s7, 4  ;;  %s178_s20 = int_to_ptr.vmem [resolvable:$true] %s177_s20 }
 0x122   :  { %s4491_s10 = scalar_lea.hbm %s5661_s13, 16 }
 0x123   :  { %p4492_p0 = scmp.ne.s32.totalorder %s5661_s13, %s4491_s10  ;;  %p4495_p1 = scmp.lt.u32.totalorder %s4491_s10, %s5661_s13 }
 0x125   :  { %p4497_p2 = pnand %p4495_p1, %p4492_p0 }
 0x127   :  { %4500 = shalt.err (!%p4497_p2)
}
 0x128   :  { %s4501_s30 = scalar_lea.vmem %s156_s3, 16  ;;  %s4505_s0 = scalar_lea.vmem %s156_s3, 32 }
 0x129   :  { %p4502_p3 = scmp.ne.s32.totalorder %s156_s3, %s4501_s30  ;;  %p4506_p4 = scmp.lt.s32.totalorder %s156_s3, %s156_s3 }
 0x12a   :  { %p4507_p5 = scmp.lt.s32.totalorder %s4505_s0, %s4501_s30 }
 0x12c   :  { %p4508_p6 = por %p4507_p5, %p4506_p4 }
 0x12e   :  { %p4509_p7 = pnand %p4508_p6, %p4502_p3 }
 0x130   :  { %4512 = shalt.err (!%p4509_p7)
}
 0x131   :  { %s5662_s21 = sld [smem:[#allocation53_spill]] }
 0x132   :  { %158 = dma.hbm_to_vmem [thread:$0]  %s5661_s13, 16, %s156_s3, [#allocation12]  }
 0x137   :  { %s4513_s14 = scalar_lea.hbm %s5662_s21, 16 }
 0x138   :  { %p4514_p8 = scmp.ne.s32.totalorder %s5662_s21, %s4513_s14  ;;  %p4517_p9 = scmp.lt.u32.totalorder %s4513_s14, %s5662_s21 }
 0x13a   :  { %p4519_p10 = pnand %p4517_p9, %p4514_p8 }
 0x13c   :  { %4522 = shalt.err (!%p4519_p10)
}
 0x13d   :  { %s4523_s15 = scalar_lea.vmem %s178_s20, 16  ;;  %s4527_s17 = scalar_lea.vmem %s178_s20, 32 }
 0x13e   :  { %p4524_p11 = scmp.ne.s32.totalorder %s178_s20, %s4523_s15  ;;  %p4528_p12 = scmp.lt.s32.totalorder %s178_s20, %s178_s20 }
 0x13f   :  { %p4529_p13 = scmp.lt.s32.totalorder %s4527_s17, %s4523_s15 }
 0x141   :  { %p4530_p0 = por %p4529_p13, %p4528_p12 }
 0x143   :  { %p4531_p1 = pnand %p4530_p0, %p4524_p11 }
 0x145   :  { %4534 = shalt.err (!%p4531_p1)
}
 0x146   :  { %s5663_s11 = sld [smem:[#allocation54_spill]]  ;;  %s4786_s12 = smov [#allocation19]  }
 0x147   :  { %180 = dma.hbm_to_vmem [thread:$0]  %s5662_s21, 16, %s178_s20, [#allocation15]  }
 0x148   :  { %s198_s25 = sshll.u32 %s4786_s12, 4  ;;  %s4787_s4 = smov [#allocation22]   ;;  %s199_s25 = int_to_ptr.vmem [resolvable:$true] %s198_s25 }
 0x149   :  { %s220_s16 = sshll.u32 %s4787_s4, 4  ;;  %s5104_s16 = int_to_ptr.vmem [resolvable:$true] %s220_s16 }
 0x14c   :  { %s4535_s24 = scalar_lea.hbm %s5663_s11, 1024 }
 0x14d   :  { %p4536_p2 = scmp.ne.s32.totalorder %s5663_s11, %s4535_s24  ;;  %p4539_p3 = scmp.lt.u32.totalorder %s4535_s24, %s5663_s11 }
 0x14f   :  { %p4541_p4 = pnand %p4539_p3, %p4536_p2 }
 0x151   :  { %4544 = shalt.err (!%p4541_p4)
}
 0x152   :  { %s4545_s23 = scalar_lea.vmem %s199_s25, 1024  ;;  %p4550_p6 = scmp.lt.s32.totalorder %s199_s25, %s199_s25 }
 0x153   :  { %p4546_p5 = scmp.ne.s32.totalorder %s199_s25, %s4545_s23  ;;  %p4551_p7 = scmp.lt.s32.totalorder %s4545_s23, %s4545_s23 }
 0x155   :  { %p4552_p8 = por %p4551_p7, %p4550_p6 }
 0x157   :  { %p4553_p9 = pnand %p4552_p8, %p4546_p5 }
 0x159   :  { %4556 = shalt.err (!%p4553_p9)
}
 0x15a   :  { %s5664_s6 = sld [smem:[#allocation55_spill]] }
 0x15b   :  { %204 = dma.hbm_to_vmem [thread:$0]  %s5663_s11, 1024, %s199_s25, [#allocation18], %s4770_s28, %s4770_s28, %s4771_s9  }
 0x160   :  { %s4557_s26 = scalar_lea.hbm %s5664_s6, 1024 }
 0x161   :  { %p4558_p10 = scmp.ne.s32.totalorder %s5664_s6, %s4557_s26  ;;  %p4561_p11 = scmp.lt.u32.totalorder %s4557_s26, %s5664_s6 }
 0x163   :  { %p4563_p12 = pnand %p4561_p11, %p4558_p10 }
 0x165   :  { %4566 = shalt.err (!%p4563_p12)
}
 0x166   :  { %s4567_s5 = scalar_lea.vmem %s5104_s16, 1024  ;;  %p4572_p0 = scmp.lt.s32.totalorder %s5104_s16, %s5104_s16 }
 0x167   :  { %p4568_p13 = scmp.ne.s32.totalorder %s5104_s16, %s4567_s5  ;;  %p4573_p1 = scmp.lt.s32.totalorder %s4567_s5, %s4567_s5 }
 0x169   :  { %p4574_p2 = por %p4573_p1, %p4572_p0 }
 0x16b   :  { %p4575_p3 = pnand %p4574_p2, %p4568_p13 }
 0x16d   :  { %4578 = shalt.err (!%p4575_p3)
}
 0x16e   :  { %s5665_s1 = sld [smem:[#allocation56_spill]]  ;;  %s4788_s13 = smov [#allocation25]  }
 0x16f   :  { %226 = dma.hbm_to_vmem [thread:$0]  %s5664_s6, 1024, %s5104_s16, [#allocation21], %s4770_s28, %s4770_s28, %s4771_s9  }
 0x170   :  { %s242_s2 = sshll.u32 %s4788_s13, 4  ;;  %s4789_s3 = smov [#allocation28]   ;;  %s243_s2 = int_to_ptr.vmem [resolvable:$true] %s242_s2 }
 0x171   :  { %s267_s7 = sshll.u32 %s4789_s3, 4  ;;  %s268_s7 = int_to_ptr.vmem [resolvable:$true] %s267_s7 }
 0x174   :  { %s4579_s20 = scalar_lea.hbm %s5665_s1, 1024 }
 0x175   :  { %p4580_p4 = scmp.ne.s32.totalorder %s5665_s1, %s4579_s20  ;;  %p4583_p5 = scmp.lt.u32.totalorder %s4579_s20, %s5665_s1 }
 0x177   :  { %p4585_p6 = pnand %p4583_p5, %p4580_p4 }
 0x179   :  { %4588 = shalt.err (!%p4585_p6)
}
 0x17a   :  { %s4589_s10 = scalar_lea.vmem %s243_s2, 1024  ;;  %p4594_p8 = scmp.lt.s32.totalorder %s243_s2, %s243_s2 }
 0x17b   :  { %p4590_p7 = scmp.ne.s32.totalorder %s243_s2, %s4589_s10  ;;  %p4595_p9 = scmp.lt.s32.totalorder %s4589_s10, %s4589_s10 }
 0x17d   :  { %p4596_p10 = por %p4595_p9, %p4594_p8 }
 0x17f   :  { %p4597_p11 = pnand %p4596_p10, %p4590_p7 }
 0x181   :  { %4600 = shalt.err (!%p4597_p11)
}
 0x182   :  { %s5666_s30 = sld [smem:[#allocation57_spill]] }
 0x183   :  { %248 = dma.hbm_to_vmem [thread:$0]  %s5665_s1, 1024, %s243_s2, [#allocation24], %s4770_s28, %s4770_s28, %s4771_s9  }
 0x188   :  { %s4601_s0 = scalar_lea.hbm %s5666_s30, 16 }
 0x189   :  { %p4602_p12 = scmp.ne.s32.totalorder %s5666_s30, %s4601_s0  ;;  %p4605_p13 = scmp.lt.u32.totalorder %s4601_s0, %s5666_s30 }
 0x18b   :  { %p4607_p0 = pnand %p4605_p13, %p4602_p12 }
 0x18d   :  { %4610 = shalt.err (!%p4607_p0)
}
 0x18e   :  { %s4611_s21 = scalar_lea.vmem %s268_s7, 16  ;;  %s4615_s14 = scalar_lea.vmem %s268_s7, 32 }
 0x18f   :  { %p4612_p1 = scmp.ne.s32.totalorder %s268_s7, %s4611_s21  ;;  %p4616_p2 = scmp.lt.s32.totalorder %s268_s7, %s268_s7 }
 0x190   :  { %p4617_p3 = scmp.lt.s32.totalorder %s4615_s14, %s4611_s21 }
 0x192   :  { %p4618_p4 = por %p4617_p3, %p4616_p2 }
 0x194   :  { %p4619_p5 = pnand %p4618_p4, %p4612_p1 }
 0x196   :  { %4622 = shalt.err (!%p4619_p5)
}
 0x197   :  { %s5667_s15 = sld [smem:[#allocation60_spill]]  ;;  %s4790_s17 = smov [#allocation31]  }
 0x198   :  { %270 = dma.hbm_to_vmem [thread:$0]  %s5666_s30, 16, %s268_s7, [#allocation27]  }
 0x199   :  { %s292_s11 = sshll.u32 %s4790_s17, 4  ;;  %s4791_s12 = smov [#allocation34]   ;;  %s293_s11 = int_to_ptr.vmem [resolvable:$true] %s292_s11 }
 0x19a   :  { %s320_s25 = sshll.u32 %s4791_s12, 4  ;;  %s5136_s25 = int_to_ptr.vmem [resolvable:$true] %s320_s25 }
 0x19d   :  { %s4623_s4 = scalar_lea.hbm %s5667_s15, 1024 }
 0x19e   :  { %p4624_p6 = scmp.ne.s32.totalorder %s5667_s15, %s4623_s4  ;;  %p4627_p7 = scmp.lt.u32.totalorder %s4623_s4, %s5667_s15 }
 0x1a0   :  { %p4629_p8 = pnand %p4627_p7, %p4624_p6 }
 0x1a2   :  { %4632 = shalt.err (!%p4629_p8)
}
 0x1a3   :  { %s4633_s16 = scalar_lea.vmem %s293_s11, 1024  ;;  %p4638_p10 = scmp.lt.s32.totalorder %s293_s11, %s293_s11 }
 0x1a4   :  { %p4634_p9 = scmp.ne.s32.totalorder %s293_s11, %s4633_s16  ;;  %p4639_p11 = scmp.lt.s32.totalorder %s4633_s16, %s4633_s16 }
 0x1a6   :  { %p4640_p12 = por %p4639_p11, %p4638_p10 }
 0x1a8   :  { %p4641_p13 = pnand %p4640_p12, %p4634_p9 }
 0x1aa   :  { %4644 = shalt.err (!%p4641_p13)
}
 0x1ab   :  { %s5668_s24 = sld [smem:[#allocation63_spill]] }
 0x1ac   :  { %298 = dma.hbm_to_vmem [thread:$0]  %s5667_s15, 1024, %s293_s11, [#allocation30], %s4770_s28, %s4770_s28, %s4771_s9  }
 0x1b1   :  { %s4645_s23 = scalar_lea.hbm %s5668_s24, 1024 }
 0x1b2   :  { %p4646_p0 = scmp.ne.s32.totalorder %s5668_s24, %s4645_s23  ;;  %p4649_p1 = scmp.lt.u32.totalorder %s4645_s23, %s5668_s24 }
 0x1b4   :  { %p4651_p2 = pnand %p4649_p1, %p4646_p0 }
 0x1b6   :  { %4654 = shalt.err (!%p4651_p2)
}
 0x1b7   :  { %s4655_s6 = scalar_lea.vmem %s5136_s25, 1024  ;;  %p4660_p4 = scmp.lt.s32.totalorder %s5136_s25, %s5136_s25 }
 0x1b8   :  { %p4656_p3 = scmp.ne.s32.totalorder %s5136_s25, %s4655_s6  ;;  %p4661_p5 = scmp.lt.s32.totalorder %s4655_s6, %s4655_s6 }
 0x1ba   :  { %p4662_p6 = por %p4661_p5, %p4660_p4 }
 0x1bc   :  { %p4663_p7 = pnand %p4662_p6, %p4656_p3 }
 0x1be   :  { %4666 = shalt.err (!%p4663_p7)
}
 0x1bf   :  { %326 = dma.hbm_to_vmem [thread:$0]  %s5668_s24, 1024, %s5136_s25, [#allocation33], %s4770_s28, %s4770_s28, %s4771_s9  }
 0x1c0   :  { %s4792_s26 = smov [#allocation37]   ;;  %s4667_s1 = scalar_lea.hbm %s4950_s19, 1024 }
 0x1c1   :  { %s346_s5 = sshll.u32 %s4792_s26, 4  ;;  %p4668_p8 = scmp.ne.s32.totalorder %s4950_s19, %s4667_s1  ;;  %s347_s5 = int_to_ptr.vmem [resolvable:$true] %s346_s5 }
 0x1c2   :  { %p4671_p9 = scmp.lt.u32.totalorder %s4667_s1, %s4950_s19 }
 0x1c4   :  { %p4673_p10 = pnand %p4671_p9, %p4668_p8 }
 0x1c6   :  { %4676 = shalt.err (!%p4673_p10)
}
 0x1c7   :  { %s4677_s13 = scalar_lea.vmem %s347_s5, 1024  ;;  %p4682_p12 = scmp.lt.s32.totalorder %s347_s5, %s347_s5 }
 0x1c8   :  { %p4678_p11 = scmp.ne.s32.totalorder %s347_s5, %s4677_s13  ;;  %p4683_p13 = scmp.lt.s32.totalorder %s4677_s13, %s4677_s13 }
 0x1ca   :  { %p4684_p0 = por %p4683_p13, %p4682_p12 }
 0x1cc   :  { %p4685_p1 = pnand %p4684_p0, %p4678_p11 }
 0x1ce   :  { %4688 = shalt.err (!%p4685_p1)
}
 0x1cf   :  { %352 = dma.hbm_to_vmem [thread:$0]  %s4950_s19, 1024, %s347_s5, [#allocation36], %s4770_s28, %s4770_s28, %s4771_s9  }
 0x1d0   :  { %4711 = dma.done.wait [#allocation3], 96  }
 0x1d1   :  { %4712 = vsyncadd [#allocation3], 4294967200 }
 0x1d2   :  { %4713 = dma.done.wait [#allocation6], 160  }
 0x1d3   :  { %4714 = vsyncadd [#allocation6], 4294967136 }
 0x1d4   :  { %4715 = dma.done.wait [#allocation9], 1152  }
 0x1d5   :  { %4716 = vsyncadd [#allocation9], 4294966144 }
 0x1d6   :  { %4717 = dma.done.wait [#allocation12], 1040  }
 0x1d7   :  { %4718 = vsyncadd [#allocation12], 4294966256 }
 0x1d8   :  { %4719 = dma.done.wait [#allocation15], 1040  }
 0x1d9   :  { %4720 = vsyncadd [#allocation15], 4294966256 }
 0x1da   :  { %4721 = dma.done.wait [#allocation18], 2048  }
 0x1db   :  { %4722 = vsyncadd [#allocation18], 4294965248 }
 0x1dc   :  { %4723 = dma.done.wait [#allocation21], 1040  }
 0x1dd   :  { %4724 = vsyncadd [#allocation21], 4294966256 }
 0x1de   :  { %4725 = dma.done.wait [#allocation24], 1040  }
 0x1df   :  { %4726 = vsyncadd [#allocation24], 4294966256 }
 0x1e0   :  { %4727 = dma.done.wait [#allocation27], 1040  }
 0x1e1   :  { %4728 = vsyncadd [#allocation27], 4294966256 }
 0x1e2   :  { %4729 = dma.done.wait [#allocation30], 2048  }
 0x1e3   :  { %4730 = vsyncadd [#allocation30], 4294965248 }
 0x1e4   :  { %4731 = dma.done.wait [#allocation33], 2048  }
 0x1e5   :  { %4732 = vsyncadd [#allocation33], 4294965248 }
 0x1e6   :  { %4733 = dma.done.wait [#allocation36], 2048  }
 0x1e7   :  { %4734 = vsyncadd [#allocation36], 4294965248  ;;  %v4793_v0 = vmov 0.0   ;;  %vm4794_vm0 = vmmov 0   ;;  %v3967_v1 = vld [vmem:[#allocation10] sm:$0xff]   ;;  %v3969_v3 = vld [vmem:[#allocation10 + $0x8] sm:$0xff]   ;;  %v589_v42 = vlaneseq }
 0x1e8   :  { %3447 = vmatprep.subr.bf16.mxu0 %v4793_v0  ;;  %3467 = vmatprep.subr.bf16.mxu1 %v4793_v0  ;;  %v5170_v2 = vld [vmem:[#allocation11] sm:$0xff]   ;;  %v5174_v4 = vld [vmem:[#allocation11 + $0x8] sm:$0xff]   ;;  %v3971_v5 = vld [vmem:[#allocation10 + $0x10] sm:$0xff]   ;;  %vm482_vm1 = vcmask 1041409   ;;  %vm489_vm2 = vcmask 1043459   ;;  %vm492_vm3 = vcmask 1041408  }
 0x1e9   :  { %3463 = vmatprep.mubr.msk.bf16.mxu0 %vm4794_vm0, %v4793_v0  ;;  %3483 = vmatprep.mubr.msk.bf16.mxu1 %vm4794_vm0, %v4793_v0  ;;  %v3972_v6 = vld [vmem:[#allocation11 + $0x10] sm:$0xff]   ;;  %v3973_v7 = vld [vmem:[#allocation10 + $0x18] sm:$0xff]   ;;  %v3975_v9 = vld [vmem:[#allocation10 + $0x20] sm:$0xff]   ;;  %v4795_v28 = vmov 0   ;;  %v5210_v44 = vand.u32 127, %v589_v42  ;;  %s4796_s19 = smov 96  }
 0x1ea   :  { %3448 = vmatpush3.bf16.msra.mxu0 %v3967_v1  ;;  %3468 = vmatpush3.bf16.msra.mxu1 %v5170_v2  ;;  %v3974_v8 = vld [vmem:[#allocation11 + $0x18] sm:$0xff]   ;;  %v3976_v10 = vld [vmem:[#allocation11 + $0x20] sm:$0xff]   ;;  %v426_v11 = vld [vmem:[#allocation7 + $0x2] sm:$0x1]  ;;  %s4798_s9 = smov 80   ;;  %s4799_s2 = smov 120  }
 0x1eb   :  { %3449 = vmatprep.subr.bf16.mxu0 %v4793_v0  ;;  %3469 = vmatprep.subr.bf16.mxu1 %v4793_v0  ;;  %v427_v12 = vld [vmem:[#allocation7 + $0x1] sm:$0x1]  ;;  %v428_v13 = vld [vmem:[#allocation7 + $0x3] sm:$0x1]  ;;  %v3977_v14 = vld [vmem:[#allocation10 + $0x28] sm:$0xff]   ;;  %v481_v16 = vrot.slane %v426_v11, 7 }
 0x1ec   :  { %v3978_v15 = vld [vmem:[#allocation11 + $0x28] sm:$0xff]   ;;  %v487_v17 = vrot.slane %v427_v12, 6  ;;  %v488_v18 = vrot.slane %v428_v13, 5  ;;  %v3979_v19 = vld [vmem:[#allocation10 + $0x30] sm:$0xff]   ;;  %v3981_v24 = vld [vmem:[#allocation10 + $0x38] sm:$0xff]   ;;  %vm591_vm4 = vcmp.ge.s32.totalorder %v5210_v44, 64 }
 0x1ed   :  { %v425_v20 = vld [vmem:[#allocation7] sm:$0x1]  ;;  %v3982_v25 = vld [vmem:[#allocation11 + $0x38] sm:$0xff]   ;;  %v3089_v29 = vld [vmem:[#allocation13] ss:$0 sm:$0xff]  ;;  %vm592_vm5 = vcmp.lt.s32.totalorder %v5210_v44, 96 }
 0x1ee   :  { %3450 = vmatpush3.bf16.msra.mxu0 %v3969_v3  ;;  %3470 = vmatpush3.bf16.msra.mxu1 %v5174_v4  ;;  %v3980_v21 = vld [vmem:[#allocation11 + $0x30] sm:$0xff]   ;;  %v483_v22 = vsel %vm482_vm1, %v481_v16, %v425_v20  ;;  %v490_v23 = vsel %vm489_vm2, %v488_v18, %v487_v17  ;;  %vm5214_vm6 = vmand %vm591_vm4, %vm592_vm5  ;;  %v3983_v58 = vld [vmem:[#allocation14] sm:$0xff]   ;;  %vm1046_vm7 = vcmp.ge.s32.totalorder %v5210_v44, 32  ;;  %vm1047_vm8 = vcmp.lt.s32.totalorder %v5210_v44, 48  ;;  %s5675_s3 = sld [smem:[#allocation58_spill]]  ;;  %s4800_s7 = smov 104  }
 0x1ef   :  { %3451 = vmatprep.subr.bf16.mxu0 %v4793_v0  ;;  %3471 = vmatprep.subr.bf16.mxu1 %v4793_v0  ;;  %v493_v26 = vsel %vm492_vm3, %v483_v22, %v490_v23  ;;  %v3984_v59 = vld [vmem:[#allocation14 + $0x8] sm:$0xff]   ;;  %v3987_v11 = vld [vmem:[#allocation14 + $0x20] sm:$0xff]   ;;  %v3996_v18 = vld [vmem:[#allocation17 + $0x10] sm:$0xff]   ;;  %vm1503_vm10 = vcmp.ge.s32.totalorder %v5210_v44, 16  ;;  %vm1504_vm11 = vcmp.lt.s32.totalorder %v5210_v44, 24  ;;  %s5676_s20 = sld [smem:[#allocation59_spill]] }
 0x1f0   :  { %v494_v27 = vpack.c.bf16 %v493_v26, %v493_v26  ;;  %v3988_v13 = vld [vmem:[#allocation14 + $0x28] sm:$0xff]   ;;  %v4003_v42 = vld [vmem:[#allocation19 + $0x30] sm:$0xff]   ;;  %v4005_v45 = vld [vmem:[#allocation19 + $0x38] sm:$0xff]   ;;  %s5677_s10 = sld [smem:[#allocation61_spill]]  ;;  %vm1960_vm13 = vcmp.ge.s32.totalorder %v5210_v44, 8  ;;  %vm1961_vm14 = vcmp.lt.s32.totalorder %v5210_v44, 12 }
 0x1f1   :  { %v3992_v16 = vld [vmem:[#allocation17] sm:$0xff]   ;;  %v3994_v17 = vld [vmem:[#allocation17 + $0x8] sm:$0xff]   ;;  %vm5282_vm9 = vmand %vm1046_vm7, %vm1047_vm8  ;;  %s4801_s30 = smov 124   ;;  %s4802_s0 = smov 116   ;;  %vm2316_vm4 = vcmask 1045509   ;;  %vm2323_vm5 = vcmask 1047559  }
 0x1f2   :  { %3452 = vmatpush3.bf16.msra.mxu0 %v3971_v5  ;;  %3472 = vmatpush3.bf16.msra.mxu1 %v3972_v6  ;;  %v4000_v20 = vld [vmem:[#allocation17 + $0x20] sm:$0xff]   ;;  %vm5350_vm12 = vmand %vm1503_vm10, %vm1504_vm11  ;;  %vm2427_vm7 = vcmp.lt.s32.totalorder %v5210_v44, 9  ;;  %s4804_s21 = smov 125   ;;  %s4805_s14 = smov 119   ;;  %vm2877_vm10 = vcmask 1042432  }
 0x1f3   :  { %3453 = vmatprep.subr.bf16.mxu0 %v4793_v0  ;;  %3473 = vmatprep.subr.bf16.mxu1 %v4793_v0  ;;  %vm5428_vm15 = vmand %vm1960_vm13, %vm1961_vm14  ;;  %s5682_s15 = sld [smem:[#allocation62_spill]] }
 0x1f6   :  { %3454 = vmatpush3.bf16.msra.mxu0 %v3973_v7  ;;  %3474 = vmatpush3.bf16.msra.mxu1 %v3974_v8  ;;  %v3986_v7 = vld [vmem:[#allocation14 + $0x18] sm:$0xff]  }
 0x1f7   :  { %3455 = vmatprep.subr.bf16.mxu0 %v4793_v0  ;;  %3475 = vmatprep.subr.bf16.mxu1 %v4793_v0 }
 0x1fa   :  { %3456 = vmatpush3.bf16.msra.mxu0 %v3975_v9  ;;  %3476 = vmatpush3.bf16.msra.mxu1 %v3976_v10 }
 0x1fb   :  { %3457 = vmatprep.subr.bf16.mxu0 %v4793_v0  ;;  %3477 = vmatprep.subr.bf16.mxu1 %v4793_v0 }
 0x1fe   :  { %3458 = vmatpush3.bf16.msra.mxu0 %v3977_v14  ;;  %3478 = vmatpush3.bf16.msra.mxu1 %v3978_v15  ;;  %v3989_v14 = vld [vmem:[#allocation14 + $0x30] sm:$0xff]  }
 0x1ff   :  { %3459 = vmatprep.subr.bf16.mxu0 %v4793_v0  ;;  %3479 = vmatprep.subr.bf16.mxu1 %v4793_v0 }
 0x202   :  { %3460 = vmatpush3.bf16.msra.mxu0 %v3979_v19  ;;  %3480 = vmatpush3.bf16.msra.mxu1 %v3980_v21  ;;  %v3998_v19 = vld [vmem:[#allocation17 + $0x18] sm:$0xff]  }
 0x203   :  { %3461 = vmatprep.subr.bf16.mxu0 %v4793_v0  ;;  %3481 = vmatprep.subr.bf16.mxu1 %v4793_v0 }
 0x206   :  { %3462 = vmatpush3.bf16.msra.mxu0 %v3981_v24  ;;  %3482 = vmatpush3.bf16.msra.mxu1 %v3982_v25 }
 0x207   :  { %3487 = vmatprep.subr.bf16.mxu0 %v4793_v0  ;;  %3507 = vmatprep.subr.bf16.mxu1 %v4793_v0 }
 0x209   :  { %3464 = vmatmul.mubr.bf16.vlgmr.msra.gmra.mrb[0].mxu0 %v494_v27  ;;  %3484 = vmatmul.mubr.bf16.vlgmr.msra.gmra.mrb[0].mxu1 %v4795_v28 }
 0x20a   :  { %3488 = vmatpush3.bf16.msra.mxu0 %v5170_v2  ;;  %3503 = vmatprep.mubr.msk.bf16.mxu0 %vm4794_vm0, %v4793_v0 }
 0x20b   :  { %3489 = vmatprep.subr.bf16.mxu0 %v4793_v0  ;;  %3523 = vmatprep.mubr.msk.bf16.mxu1 %vm4794_vm0, %v4793_v0 }
 0x20c   :  { %3508 = vmatpush3.bf16.msra.mxu1 %v3983_v58 }
 0x20d   :  { %3509 = vmatprep.subr.bf16.mxu1 %v4793_v0 }
 0x20e   :  { %3490 = vmatpush3.bf16.msra.mxu0 %v5174_v4 }
 0x20f   :  { %3491 = vmatprep.subr.bf16.mxu0 %v4793_v0 }
 0x210   :  { %3510 = vmatpush3.bf16.msra.mxu1 %v3984_v59 }
 0x211   :  { %3511 = vmatprep.subr.bf16.mxu1 %v4793_v0 }
 0x212   :  { %3492 = vmatpush3.bf16.msra.mxu0 %v3972_v6  ;;  %v3985_v6 = vld [vmem:[#allocation14 + $0x10] sm:$0xff]  }
 0x213   :  { %3493 = vmatprep.subr.bf16.mxu0 %v4793_v0 }
 0x214   :  { %3512 = vmatpush3.bf16.msra.mxu1 %v3985_v6  ;;  %v3121_v6 = vld [vmem:[#allocation20] ss:$0 sm:$0xff] }
 0x215   :  { %3513 = vmatprep.subr.bf16.mxu1 %v4793_v0 }
 0x216   :  { %3494 = vmatpush3.bf16.msra.mxu0 %v3974_v8 }
 0x217   :  { %3495 = vmatprep.subr.bf16.mxu0 %v4793_v0 }
 0x218   :  { %3514 = vmatpush3.bf16.msra.mxu1 %v3986_v7 }
 0x219   :  { %3515 = vmatprep.subr.bf16.mxu1 %v4793_v0 }
 0x21a   :  { %3496 = vmatpush3.bf16.msra.mxu0 %v3976_v10 }
 0x21b   :  { %3497 = vmatprep.subr.bf16.mxu0 %v4793_v0 }
 0x21c   :  { %3516 = vmatpush3.bf16.msra.mxu1 %v3987_v11 }
 0x21d   :  { %3517 = vmatprep.subr.bf16.mxu1 %v4793_v0 }
 0x21e   :  { %3498 = vmatpush3.bf16.msra.mxu0 %v3978_v15  ;;  %v3990_v15 = vld [vmem:[#allocation14 + $0x38] sm:$0xff]  }
 0x21f   :  { %3499 = vmatprep.subr.bf16.mxu0 %v4793_v0 }
 0x220   :  { %3518 = vmatpush3.bf16.msra.mxu1 %v3988_v13 }
 0x221   :  { %3519 = vmatprep.subr.bf16.mxu1 %v4793_v0 }
 0x222   :  { %3500 = vmatpush3.bf16.msra.mxu0 %v3980_v21 }
 0x223   :  { %3501 = vmatprep.subr.bf16.mxu0 %v4793_v0 }
 0x224   :  { %3520 = vmatpush3.bf16.msra.mxu1 %v3989_v14 }
 0x225   :  { %3521 = vmatprep.subr.bf16.mxu1 %v4793_v0 }
 0x226   :  { %3502 = vmatpush3.bf16.msra.mxu0 %v3982_v25 }
 0x227   :  { %3527 = vmatprep.subr.bf16.mxu0 %v4793_v0 }
 0x228   :  { %3522 = vmatpush3.bf16.msra.mxu1 %v3990_v15 }
 0x229   :  { %3547 = vmatprep.subr.bf16.mxu1 %v4793_v0 }
 0x2dc   :  { %v583_v30 = vpop.f32.mrb[0].mxu0  ;;  %v676_v32 = vpop.f32.mrb[0].mxu1 }
 0x2dd   :  { %v584_v31 = vadd.f32 %v3089_v29, %v583_v30  ;;  %v3465_v33 = vpop.f32.mrb[1].mxu0  ;;  %v3485_v34 = vpop.f32.mrb[1].mxu1 }
 0x2de   :  { %v586_v35 = vpop.f32.mrb[2].mxu0  ;;  %v679_v37 = vpop.f32.mrb[2].mxu1  ;;  %v3991_v34 = vld [vmem:[#allocation19] sm:$0xff]  }
 0x2df   :  { %v682_v36 = vadd.f32 %v676_v32, %v584_v31  ;;  %v3466_v38 = vpop.f32.mrb[3].mxu0  ;;  %v3486_v39 = vpop.f32.mrb[3].mxu1  ;;  %v3995_v37 = vld [vmem:[#allocation19 + $0x10] sm:$0xff]  }
 0x2e0   :  { %v3997_v38 = vld [vmem:[#allocation19 + $0x18] sm:$0xff]   ;;  %v3999_v39 = vld [vmem:[#allocation19 + $0x20] sm:$0xff]  }
 0x2e1   :  { %v3106_v40 = vmul.f32 -1.442695, %v682_v36 }
 0x2e3   :  { %4087 = vpow2.f32 %v3106_v40  ;;  %v4001_v40 = vld [vmem:[#allocation19 + $0x28] sm:$0xff]  }
 0x2e4   :  { %4089 = vtanh.f32 %v682_v36  ;;  %v3993_v36 = vld [vmem:[#allocation19 + $0x8] sm:$0xff]  }
 0x2ed   :  { %v4088_v41 = vpop.eup %4087 }
 0x2ee   :  { %v687_v43 = vadd.f32 1.0, %v4088_v41  ;;  %v4090_v46 = vpop.eup %4089  ;;  %v4002_v41 = vld [vmem:[#allocation17 + $0x28] sm:$0xff]  }
 0x2f0   :  { %4091 = vrcp.f32 %v687_v43  ;;  %v4004_v43 = vld [vmem:[#allocation17 + $0x30] sm:$0xff]  }
 0x2fa   :  { %v4092_v47 = vpop.eup %4091 }
 0x2fb   :  { %v690_v48 = vsel %vm5214_vm6, %v4090_v46, %v4092_v47  ;;  %v4006_v46 = vld [vmem:[#allocation17 + $0x38] sm:$0xff]  }
 0x2fc   :  { %695 = vrot.lane.b32.xlu1 %v690_v48, %s4768_s18  ;;  %691 = vrot.lane.b32.xlu0 %v690_v48, %s4796_s19  ;;  %v3108_v47 = vld [vmem:[#allocation16] ss:$0 sm:$0xff] }
 0x300   :  { %693 = vrot.lane.b32.xlu0 %v690_v48, %s4770_s28 }
 0x36e   :  { %v692_v49 = vpop.permute.xlu0 %691  ;;  %v696_v55 = vpop.permute.xlu1 %695 }
 0x36f   :  { %v697_v51 = vmul.f32 0.0, %v692_v49  ;;  %v3117_v49 = vld [vmem:[#allocation2] ss:$0 sm:$0xff] }
 0x372   :  { %v694_v50 = vpop.permute.xlu0 %693 }
 0x373   :  { %v698_v52 = vmul.f32 %v694_v50, %v690_v48  ;;  %v3119_v50 = vld [vmem:[#allocation2 + $0x1] ss:$0 sm:$0xff] }
 0x375   :  { %v5223_v53 = vadd.f32 %v698_v52, %v697_v51 }
 0x377   :  { %4093 = vtanh.f32 %v5223_v53 }
 0x381   :  { %v4094_v54 = vpop.eup %4093 }
 0x382   :  { %v5226_v56 = vmul.f32 %v4094_v54, %v696_v55  ;;  %v3120_v54 = vld [vmem:[#allocation5 + $0x1] ss:$0 sm:$0xff] }
 0x384   :  { %v702_v57 = vpack.c.bf16 %v5226_v56, %v5226_v56 }
 0x386   :  { %3504 = vmatmul.mubr.bf16.vlgmr.msra.gmra.mrb[4].mxu0 %v702_v57 }
 0x387   :  { %3543 = vmatprep.mubr.msk.bf16.mxu0 %vm4794_vm0, %v4793_v0  ;;  %3528 = vmatpush3.bf16.msra.mxu0 %v3992_v16  ;;  %v4029_v16 = vld [vmem:[#allocation26 + $0x38] sm:$0xff]  }
 0x388   :  { %3529 = vmatprep.subr.bf16.mxu0 %v4793_v0 }
 0x38b   :  { %3530 = vmatpush3.bf16.msra.mxu0 %v3994_v17 }
 0x38c   :  { %3531 = vmatprep.subr.bf16.mxu0 %v4793_v0 }
 0x38f   :  { %3532 = vmatpush3.bf16.msra.mxu0 %v3996_v18 }
 0x390   :  { %3533 = vmatprep.subr.bf16.mxu0 %v4793_v0 }
 0x393   :  { %3534 = vmatpush3.bf16.msra.mxu0 %v3998_v19 }
 0x394   :  { %3535 = vmatprep.subr.bf16.mxu0 %v4793_v0 }
 0x397   :  { %3536 = vmatpush3.bf16.msra.mxu0 %v4000_v20 }
 0x398   :  { %3537 = vmatprep.subr.bf16.mxu0 %v4793_v0 }
 0x39b   :  { %3538 = vmatpush3.bf16.msra.mxu0 %v4002_v41  ;;  %v4009_v41 = vld [vmem:[#allocation22 + $0x10] sm:$0xff]  }
 0x39c   :  { %3539 = vmatprep.subr.bf16.mxu0 %v4793_v0 }
 0x39f   :  { %3540 = vmatpush3.bf16.msra.mxu0 %v4004_v43 }
 0x3a0   :  { %3541 = vmatprep.subr.bf16.mxu0 %v4793_v0 }
 0x3a3   :  { %3542 = vmatpush3.bf16.msra.mxu0 %v4006_v46 }
 0x3a4   :  { %3567 = vmatprep.subr.bf16.mxu0 %v4793_v0 }
 0x459   :  { %v737_v60 = vpop.f32.mrb[4].mxu0 }
 0x45a   :  { %v744_v61 = vrot.slane %v737_v60, 6  ;;  %v3505_v62 = vpop.f32.mrb[5].mxu0 }
 0x45b   :  { %v740_v63 = vpop.f32.mrb[6].mxu0 }
 0x45c   :  { %v746_v1 = vadd.f32 %v744_v61, %v584_v31  ;;  %v3506_v2 = vpop.f32.mrb[7].mxu0 }
 0x45e   :  { %v3107_v3 = vmul.f32 -1.442695, %v746_v1 }
 0x460   :  { %4095 = vpow2.f32 %v3107_v3 }
 0x461   :  { %4097 = vtanh.f32 %v746_v1 }
 0x46a   :  { %v4096_v4 = vpop.eup %4095 }
 0x46b   :  { %v751_v5 = vadd.f32 1.0, %v4096_v4  ;;  %v4098_v8 = vpop.eup %4097 }
 0x46d   :  { %4099 = vrcp.f32 %v751_v5 }
 0x477   :  { %v4100_v9 = vpop.eup %4099 }
 0x478   :  { %v754_v10 = vsel %vm5214_vm6, %v4098_v8, %v4100_v9  ;;  %vm2426_vm6 = vcmp.ge.s32.totalorder %v5210_v44, 6 }
 0x479   :  { %v756_v12 = vrot.slane %v754_v10, 2  ;;  %vm5558_vm8 = vmand %vm2426_vm6, %vm2427_vm7 }
 0x47b   :  { %758 = vrot.lane.b32.xlu0 %v756_v12, %s4796_s19  ;;  %760 = vrot.lane.b32.xlu1 %v756_v12, %s4770_s28  ;;  %s4797_s28 = smov 112  }
 0x47f   :  { %762 = vrot.lane.b32.xlu1 %v756_v12, %s4768_s18 }
 0x4ed   :  { %v761_v21 = vpop.permute.xlu1 %760  ;;  %v759_v23 = vpop.permute.xlu0 %758 }
 0x4ee   :  { %v766_v22 = vrot.slane %v761_v21, 6  ;;  %v764_v25 = vmul.f32 %v759_v23, %v5223_v53  ;;  %v3118_v53 = vld [vmem:[#allocation5] ss:$0 sm:$0xff] }
 0x4f0   :  { %v768_v24 = vmul.f32 %v766_v22, %v754_v10 }
 0x4f1   :  { %v763_v30 = vpop.permute.xlu1 %762 }
 0x4f2   :  { %v770_v26 = vrot.slane %v768_v24, 2 }
 0x4f4   :  { %v772_v27 = vadd.f32 %v770_v26, %v764_v25 }
 0x4f6   :  { %4101 = vtanh.f32 %v772_v27 }
 0x500   :  { %v4102_v29 = vpop.eup %4101 }
 0x501   :  { %v774_v31 = vmul.f32 %v4102_v29, %v763_v30  ;;  %v4007_v30 = vld [vmem:[#allocation22] sm:$0xff]  }
 0x503   :  { %v776_v32 = vrot.slane %v774_v31, 6  ;;  %v4008_v31 = vld [vmem:[#allocation22 + $0x8] sm:$0xff]  }
 0x505   :  { %v778_v33 = vsel %vm492_vm3, %v5226_v56, %v776_v32 }
 0x506   :  { %v779_v35 = vpack.c.bf16 %v778_v33, %v778_v33 }
 0x508   :  { %3524 = vmatmul.mubr.bf16.vlgmr.msra.gmra.mrb[4].mxu1 %v779_v35 }
 0x509   :  { %3548 = vmatpush3.bf16.msra.mxu1 %v3991_v34  ;;  %3563 = vmatprep.mubr.msk.bf16.mxu1 %vm4794_vm0, %v4793_v0 }
 0x50a   :  { %3549 = vmatprep.subr.bf16.mxu1 %v4793_v0 }
 0x50d   :  { %3550 = vmatpush3.bf16.msra.mxu1 %v3993_v36 }
 0x50e   :  { %3551 = vmatprep.subr.bf16.mxu1 %v4793_v0 }
 0x511   :  { %3552 = vmatpush3.bf16.msra.mxu1 %v3995_v37 }
 0x512   :  { %3553 = vmatprep.subr.bf16.mxu1 %v4793_v0 }
 0x515   :  { %3554 = vmatpush3.bf16.msra.mxu1 %v3997_v38 }
 0x516   :  { %3555 = vmatprep.subr.bf16.mxu1 %v4793_v0 }
 0x519   :  { %3556 = vmatpush3.bf16.msra.mxu1 %v3999_v39 }
 0x51a   :  { %3557 = vmatprep.subr.bf16.mxu1 %v4793_v0 }
 0x51d   :  { %3558 = vmatpush3.bf16.msra.mxu1 %v4001_v40 }
 0x51e   :  { %3559 = vmatprep.subr.bf16.mxu1 %v4793_v0 }
 0x521   :  { %3560 = vmatpush3.bf16.msra.mxu1 %v4003_v42 }
 0x522   :  { %3561 = vmatprep.subr.bf16.mxu1 %v4793_v0 }
 0x525   :  { %3562 = vmatpush3.bf16.msra.mxu1 %v4005_v45 }
 0x526   :  { %3587 = vmatprep.subr.bf16.mxu1 %v4793_v0 }
 0x528   :  { %3564 = vmatmul.mubr.bf16.vlgmr.msra.gmra.mrb[8].mxu1 %v4795_v28 }
 0x529   :  { %3603 = vmatprep.mubr.msk.bf16.mxu1 %vm4794_vm0, %v4793_v0  ;;  %3588 = vmatpush3.bf16.msra.mxu1 %v4007_v30 }
 0x52a   :  { %3589 = vmatprep.subr.bf16.mxu1 %v4793_v0 }
 0x52d   :  { %3590 = vmatpush3.bf16.msra.mxu1 %v4008_v31 }
 0x52e   :  { %3591 = vmatprep.subr.bf16.mxu1 %v4793_v0 }
 0x531   :  { %3592 = vmatpush3.bf16.msra.mxu1 %v4009_v41  ;;  %v3153_v41 = vld [vmem:[#allocation28] ss:$0 sm:$0xff] }
 0x532   :  { %3593 = vmatprep.subr.bf16.mxu1 %v4793_v0 }
 0x5db   :  { %v868_v48 = vpop.f32.mrb[4].mxu1 }
 0x5dc   :  { %v869_v51 = vadd.f32 %v3108_v47, %v868_v48  ;;  %v3525_v52 = vpop.f32.mrb[5].mxu1  ;;  %v4011_v47 = vld [vmem:[#allocation22 + $0x20] sm:$0xff]  }
 0x5dd   :  { %v871_v55 = vpop.f32.mrb[6].mxu1  ;;  %v4016_v52 = vld [vmem:[#allocation25] sm:$0xff]  }
 0x5de   :  { %v879_v56 = vmul.f32 %v3117_v49, %v869_v51  ;;  %v892_v57 = vmul.f32 %v3119_v50, %v869_v51  ;;  %v3526_v58 = vpop.f32.mrb[7].mxu1  ;;  %v4012_v49 = vld [vmem:[#allocation22 + $0x28] sm:$0xff]   ;;  %v4013_v50 = vld [vmem:[#allocation22 + $0x30] sm:$0xff]   ;;  %v4014_v51 = vld [vmem:[#allocation22 + $0x38] sm:$0xff]  }
 0x5df   :  { %v4022_v55 = vld [vmem:[#allocation25 + $0x18] sm:$0xff]  }
 0x5e0   :  { %v885_v59 = vadd.f32 %v3118_v53, %v879_v56  ;;  %v898_v60 = vadd.f32 %v3120_v54, %v892_v57  ;;  %v4018_v53 = vld [vmem:[#allocation25 + $0x8] sm:$0xff]   ;;  %v4020_v54 = vld [vmem:[#allocation25 + $0x10] sm:$0xff]   ;;  %v4024_v56 = vld [vmem:[#allocation25 + $0x20] sm:$0xff]  }
 0x5e2   :  { %v886_v61 = vmax.f32 %v885_v59, 0.0  ;;  %v899_v62 = vmax.f32 %v898_v60, 0.0 }
 0x5e4   :  { %v950_v63 = vsel %vm492_vm3, %v886_v61, %v899_v62 }
 0x5e5   :  { %v951_v1 = vpack.c.bf16 %v950_v63, %v950_v63 }
 0x5e7   :  { %3544 = vmatmul.mubr.bf16.vlgmr.msra.gmra.mrb[8].mxu0 %v951_v1 }
 0x5e8   :  { %3568 = vmatpush3.bf16.msra.mxu0 %v3991_v34  ;;  %3583 = vmatprep.mubr.msk.bf16.mxu0 %vm4794_vm0, %v4793_v0 }
 0x5e9   :  { %3569 = vmatprep.subr.bf16.mxu0 %v4793_v0 }
 0x5ec   :  { %3570 = vmatpush3.bf16.msra.mxu0 %v3993_v36 }
 0x5ed   :  { %3571 = vmatprep.subr.bf16.mxu0 %v4793_v0 }
 0x5f0   :  { %3572 = vmatpush3.bf16.msra.mxu0 %v3995_v37 }
 0x5f1   :  { %3573 = vmatprep.subr.bf16.mxu0 %v4793_v0 }
 0x5f4   :  { %3574 = vmatpush3.bf16.msra.mxu0 %v3997_v38 }
 0x5f5   :  { %3575 = vmatprep.subr.bf16.mxu0 %v4793_v0 }
 0x5f8   :  { %3576 = vmatpush3.bf16.msra.mxu0 %v3999_v39 }
 0x5f9   :  { %3577 = vmatprep.subr.bf16.mxu0 %v4793_v0 }
 0x5fb   :  { %v1131_v2 = vpop.f32.mrb[8].mxu1 }
 0x5fc   :  { %3578 = vmatpush3.bf16.msra.mxu0 %v4001_v40  ;;  %v3565_v3 = vpop.f32.mrb[9].mxu1 }
 0x5fd   :  { %3579 = vmatprep.subr.bf16.mxu0 %v4793_v0  ;;  %v1134_v4 = vpop.f32.mrb[10].mxu1 }
 0x5fe   :  { %v3566_v5 = vpop.f32.mrb[11].mxu1 }
 0x600   :  { %3580 = vmatpush3.bf16.msra.mxu0 %v4003_v42  ;;  %v4010_v42 = vld [vmem:[#allocation22 + $0x18] sm:$0xff]  }
 0x601   :  { %3581 = vmatprep.subr.bf16.mxu0 %v4793_v0  ;;  %3594 = vmatpush3.bf16.msra.mxu1 %v4010_v42 }
 0x602   :  { %3595 = vmatprep.subr.bf16.mxu1 %v4793_v0 }
 0x604   :  { %3582 = vmatpush3.bf16.msra.mxu0 %v4005_v45 }
 0x605   :  { %3607 = vmatprep.subr.bf16.mxu0 %v4793_v0  ;;  %3596 = vmatpush3.bf16.msra.mxu1 %v4011_v47 }
 0x606   :  { %3597 = vmatprep.subr.bf16.mxu1 %v4793_v0 }
 0x609   :  { %3598 = vmatpush3.bf16.msra.mxu1 %v4012_v49 }
 0x60a   :  { %3599 = vmatprep.subr.bf16.mxu1 %v4793_v0 }
 0x60d   :  { %3600 = vmatpush3.bf16.msra.mxu1 %v4013_v50 }
 0x60e   :  { %3601 = vmatprep.subr.bf16.mxu1 %v4793_v0 }
 0x611   :  { %3602 = vmatpush3.bf16.msra.mxu1 %v4014_v51 }
 0x612   :  { %3627 = vmatprep.subr.bf16.mxu1 %v4793_v0 }
 0x6ba   :  { %v1040_v7 = vpop.f32.mrb[8].mxu0 }
 0x6bb   :  { %v1041_v8 = vadd.f32 %v3121_v6, %v1040_v7  ;;  %v3545_v9 = vpop.f32.mrb[9].mxu0  ;;  %v4015_v6 = vld [vmem:[#allocation26] sm:$0xff]  }
 0x6bc   :  { %v1043_v10 = vpop.f32.mrb[10].mxu0  ;;  %v4019_v9 = vld [vmem:[#allocation26 + $0x10] sm:$0xff]  }
 0x6bd   :  { %v1137_v11 = vadd.f32 %v1131_v2, %v1041_v8  ;;  %v3546_v12 = vpop.f32.mrb[11].mxu0  ;;  %v4021_v10 = vld [vmem:[#allocation26 + $0x18] sm:$0xff]  }
 0x6be   :  { %v4025_v12 = vld [vmem:[#allocation26 + $0x28] sm:$0xff]  }
 0x6bf   :  { %v3138_v13 = vmul.f32 -1.442695, %v1137_v11 }
 0x6c1   :  { %4103 = vpow2.f32 %v3138_v13  ;;  %v4026_v13 = vld [vmem:[#allocation25 + $0x28] sm:$0xff]  }
 0x6c2   :  { %4105 = vtanh.f32 %v1137_v11  ;;  %v4023_v11 = vld [vmem:[#allocation26 + $0x20] sm:$0xff]  }
 0x6cb   :  { %v4104_v14 = vpop.eup %4103 }
 0x6cc   :  { %v1142_v15 = vadd.f32 1.0, %v4104_v14  ;;  %v4106_v17 = vpop.eup %4105  ;;  %v4027_v14 = vld [vmem:[#allocation26 + $0x30] sm:$0xff]  }
 0x6ce   :  { %4107 = vrcp.f32 %v1142_v15  ;;  %v4028_v15 = vld [vmem:[#allocation25 + $0x30] sm:$0xff]  }
 0x6d8   :  { %v4108_v18 = vpop.eup %4107 }
 0x6d9   :  { %v1145_v19 = vsel %vm5282_vm9, %v4106_v17, %v4108_v18  ;;  %v4030_v17 = vld [vmem:[#allocation25 + $0x38] sm:$0xff]  }
 0x6da   :  { %1148 = vrot.lane.b32.xlu1 %v1145_v19, %s4796_s19  ;;  %1146 = vrot.lane.b32.xlu0 %v1145_v19, %s4797_s28  ;;  %v3140_v18 = vld [vmem:[#allocation23] ss:$0 sm:$0xff] }
 0x6de   :  { %1150 = vrot.lane.b32.xlu0 %v1145_v19, %s4798_s9 }
 0x74c   :  { %v1149_v20 = vpop.permute.xlu1 %1148  ;;  %v1147_v21 = vpop.permute.xlu0 %1146 }
 0x74d   :  { %v1153_v22 = vmul.f32 %v1149_v20, %v1145_v19  ;;  %v1152_v23 = vmul.f32 0.0, %v1147_v21  ;;  %v3149_v20 = vld [vmem:[#allocation2 + $0x2] ss:$0 sm:$0xff]  ;;  %v3151_v21 = vld [vmem:[#allocation2 + $0x3] ss:$0 sm:$0xff] }
 0x74f   :  { %v5291_v24 = vadd.f32 %v1153_v22, %v1152_v23 }
 0x750   :  { %v1151_v26 = vpop.permute.xlu0 %1150 }
 0x751   :  { %4109 = vtanh.f32 %v5291_v24 }
 0x75b   :  { %v4110_v25 = vpop.eup %4109 }
 0x75c   :  { %v5294_v27 = vmul.f32 %v4110_v25, %v1151_v26  ;;  %v3152_v25 = vld [vmem:[#allocation5 + $0x3] ss:$0 sm:$0xff] }
 0x75e   :  { %v1157_v29 = vpack.c.bf16 %v5294_v27, %v5294_v27 }
 0x760   :  { %3584 = vmatmul.mubr.bf16.vlgmr.msra.gmra.mrb[12].mxu0 %v1157_v29 }
 0x761   :  { %3623 = vmatprep.mubr.msk.bf16.mxu0 %vm4794_vm0, %v4793_v0  ;;  %3608 = vmatpush3.bf16.msra.mxu0 %v4016_v52  ;;  %v4053_v52 = vld [vmem:[#allocation31 + $0x38] sm:$0xff]  }
 0x762   :  { %3609 = vmatprep.subr.bf16.mxu0 %v4793_v0 }
 0x765   :  { %3610 = vmatpush3.bf16.msra.mxu0 %v4018_v53 }
 0x766   :  { %3611 = vmatprep.subr.bf16.mxu0 %v4793_v0 }
 0x769   :  { %3612 = vmatpush3.bf16.msra.mxu0 %v4020_v54 }
 0x76a   :  { %3613 = vmatprep.subr.bf16.mxu0 %v4793_v0 }
 0x76d   :  { %3614 = vmatpush3.bf16.msra.mxu0 %v4022_v55 }
 0x76e   :  { %3615 = vmatprep.subr.bf16.mxu0 %v4793_v0 }
 0x771   :  { %3616 = vmatpush3.bf16.msra.mxu0 %v4024_v56 }
 0x772   :  { %3617 = vmatprep.subr.bf16.mxu0 %v4793_v0 }
 0x775   :  { %3618 = vmatpush3.bf16.msra.mxu0 %v4026_v13  ;;  %v4033_v13 = vld [vmem:[%s5675_s3 + $0x10] sm:$0xff]  }
 0x776   :  { %3619 = vmatprep.subr.bf16.mxu0 %v4793_v0 }
 0x779   :  { %3620 = vmatpush3.bf16.msra.mxu0 %v4028_v15 }
 0x77a   :  { %3621 = vmatprep.subr.bf16.mxu0 %v4793_v0 }
 0x77d   :  { %3622 = vmatpush3.bf16.msra.mxu0 %v4030_v17 }
 0x77e   :  { %3647 = vmatprep.subr.bf16.mxu0 %v4793_v0 }
 0x833   :  { %v1192_v32 = vpop.f32.mrb[12].mxu0 }
 0x834   :  { %v1199_v33 = vrot.slane %v1192_v32, 6  ;;  %v3585_v34 = vpop.f32.mrb[13].mxu0 }
 0x835   :  { %v1195_v35 = vpop.f32.mrb[14].mxu0 }
 0x836   :  { %v1201_v36 = vadd.f32 %v1199_v33, %v1041_v8  ;;  %v3586_v37 = vpop.f32.mrb[15].mxu0  ;;  %v4017_v8 = vld [vmem:[#allocation26 + $0x8] sm:$0xff]  }
 0x838   :  { %v3139_v38 = vmul.f32 -1.442695, %v1201_v36 }
 0x83a   :  { %4111 = vpow2.f32 %v3139_v38 }
 0x83b   :  { %4113 = vtanh.f32 %v1201_v36 }
 0x844   :  { %v4112_v39 = vpop.eup %4111 }
 0x845   :  { %v1206_v40 = vadd.f32 1.0, %v4112_v39  ;;  %v4114_v43 = vpop.eup %4113 }
 0x847   :  { %4115 = vrcp.f32 %v1206_v40 }
 0x851   :  { %v4116_v45 = vpop.eup %4115 }
 0x852   :  { %v1209_v46 = vsel %vm5282_vm9, %v4114_v43, %v4116_v45  ;;  %vm2866_vm9 = vcmask 1040384  }
 0x853   :  { %v1211_v48 = vrot.slane %v1209_v46, 2 }
 0x855   :  { %1213 = vrot.lane.b32.xlu0 %v1211_v48, %s4797_s28  ;;  %1215 = vrot.lane.b32.xlu1 %v1211_v48, %s4796_s19 }
 0x859   :  { %1217 = vrot.lane.b32.xlu1 %v1211_v48, %s4798_s9 }
 0x8c7   :  { %v1216_v57 = vpop.permute.xlu1 %1215  ;;  %v1214_v59 = vpop.permute.xlu0 %1213 }
 0x8c8   :  { %v1221_v58 = vrot.slane %v1216_v57, 6  ;;  %v1219_v61 = vmul.f32 %v1214_v59, %v5291_v24  ;;  %v3150_v24 = vld [vmem:[#allocation5 + $0x2] ss:$0 sm:$0xff] }
 0x8ca   :  { %v1223_v60 = vmul.f32 %v1221_v58, %v1209_v46 }
 0x8cb   :  { %v1218_v2 = vpop.permute.xlu1 %1217 }
 0x8cc   :  { %v1225_v62 = vrot.slane %v1223_v60, 2 }
 0x8ce   :  { %v1227_v63 = vadd.f32 %v1225_v62, %v1219_v61 }
 0x8d0   :  { %4117 = vtanh.f32 %v1227_v63 }
 0x8da   :  { %v4118_v1 = vpop.eup %4117 }
 0x8db   :  { %v1229_v3 = vmul.f32 %v4118_v1, %v1218_v2  ;;  %v4031_v2 = vld [vmem:[%s5675_s3] sm:$0xff]  }
 0x8dd   :  { %v1231_v4 = vrot.slane %v1229_v3, 6  ;;  %v4032_v3 = vld [vmem:[%s5675_s3 + $0x8] sm:$0xff]  }
 0x8df   :  { %v1233_v5 = vsel %vm492_vm3, %v5294_v27, %v1231_v4 }
 0x8e0   :  { %v1234_v7 = vpack.c.bf16 %v1233_v5, %v1233_v5 }
 0x8e2   :  { %3604 = vmatmul.mubr.bf16.vlgmr.msra.gmra.mrb[12].mxu1 %v1234_v7 }
 0x8e3   :  { %3628 = vmatpush3.bf16.msra.mxu1 %v4015_v6  ;;  %3643 = vmatprep.mubr.msk.bf16.mxu1 %vm4794_vm0, %v4793_v0 }
 0x8e4   :  { %3629 = vmatprep.subr.bf16.mxu1 %v4793_v0 }
 0x8e7   :  { %3630 = vmatpush3.bf16.msra.mxu1 %v4017_v8 }
 0x8e8   :  { %3631 = vmatprep.subr.bf16.mxu1 %v4793_v0 }
 0x8eb   :  { %3632 = vmatpush3.bf16.msra.mxu1 %v4019_v9 }
 0x8ec   :  { %3633 = vmatprep.subr.bf16.mxu1 %v4793_v0 }
 0x8ef   :  { %3634 = vmatpush3.bf16.msra.mxu1 %v4021_v10 }
 0x8f0   :  { %3635 = vmatprep.subr.bf16.mxu1 %v4793_v0 }
 0x8f3   :  { %3636 = vmatpush3.bf16.msra.mxu1 %v4023_v11 }
 0x8f4   :  { %3637 = vmatprep.subr.bf16.mxu1 %v4793_v0 }
 0x8f7   :  { %3638 = vmatpush3.bf16.msra.mxu1 %v4025_v12 }
 0x8f8   :  { %3639 = vmatprep.subr.bf16.mxu1 %v4793_v0 }
 0x8fb   :  { %3640 = vmatpush3.bf16.msra.mxu1 %v4027_v14 }
 0x8fc   :  { %3641 = vmatprep.subr.bf16.mxu1 %v4793_v0 }
 0x8ff   :  { %3642 = vmatpush3.bf16.msra.mxu1 %v4029_v16 }
 0x900   :  { %3667 = vmatprep.subr.bf16.mxu1 %v4793_v0 }
 0x902   :  { %3644 = vmatmul.mubr.bf16.vlgmr.msra.gmra.mrb[16].mxu1 %v4795_v28 }
 0x903   :  { %3683 = vmatprep.mubr.msk.bf16.mxu1 %vm4794_vm0, %v4793_v0  ;;  %3668 = vmatpush3.bf16.msra.mxu1 %v4031_v2 }
 0x904   :  { %3669 = vmatprep.subr.bf16.mxu1 %v4793_v0 }
 0x907   :  { %3670 = vmatpush3.bf16.msra.mxu1 %v4032_v3 }
 0x908   :  { %3671 = vmatprep.subr.bf16.mxu1 %v4793_v0 }
 0x90b   :  { %3672 = vmatpush3.bf16.msra.mxu1 %v4033_v13  ;;  %v3185_v13 = vld [vmem:[%s5677_s10] ss:$0 sm:$0xff] }
 0x90c   :  { %3673 = vmatprep.subr.bf16.mxu1 %v4793_v0 }
 0x9b5   :  { %v1323_v19 = vpop.f32.mrb[12].mxu1 }
 0x9b6   :  { %v1324_v22 = vadd.f32 %v3140_v18, %v1323_v19  ;;  %v3605_v23 = vpop.f32.mrb[13].mxu1  ;;  %v4035_v18 = vld [vmem:[%s5675_s3 + $0x20] sm:$0xff]  }
 0x9b7   :  { %v1326_v26 = vpop.f32.mrb[14].mxu1  ;;  %v4040_v23 = vld [vmem:[#allocation29] sm:$0xff]  }
 0x9b8   :  { %v1335_v27 = vmul.f32 %v3149_v20, %v1324_v22  ;;  %v1349_v29 = vmul.f32 %v3151_v21, %v1324_v22  ;;  %v3606_v30 = vpop.f32.mrb[15].mxu1  ;;  %v4036_v20 = vld [vmem:[%s5675_s3 + $0x28] sm:$0xff]   ;;  %v4037_v21 = vld [vmem:[%s5675_s3 + $0x30] sm:$0xff]   ;;  %v4038_v22 = vld [vmem:[%s5675_s3 + $0x38] sm:$0xff]  }
 0x9b9   :  { %v4046_v26 = vld [vmem:[#allocation29 + $0x18] sm:$0xff]  }
 0x9ba   :  { %v1342_v31 = vadd.f32 %v3150_v24, %v1335_v27  ;;  %v1355_v32 = vadd.f32 %v3152_v25, %v1349_v29  ;;  %v4042_v24 = vld [vmem:[#allocation29 + $0x8] sm:$0xff]   ;;  %v4044_v25 = vld [vmem:[#allocation29 + $0x10] sm:$0xff]   ;;  %v4048_v27 = vld [vmem:[#allocation29 + $0x20] sm:$0xff]  }
 0x9bc   :  { %v1343_v33 = vmax.f32 %v1342_v31, 0.0  ;;  %v1356_v34 = vmax.f32 %v1355_v32, 0.0 }
 0x9be   :  { %v1407_v35 = vsel %vm492_vm3, %v1343_v33, %v1356_v34 }
 0x9bf   :  { %v1408_v36 = vpack.c.bf16 %v1407_v35, %v1407_v35 }
 0x9c1   :  { %3624 = vmatmul.mubr.bf16.vlgmr.msra.gmra.mrb[16].mxu0 %v1408_v36 }
 0x9c2   :  { %3648 = vmatpush3.bf16.msra.mxu0 %v4015_v6  ;;  %3663 = vmatprep.mubr.msk.bf16.mxu0 %vm4794_vm0, %v4793_v0 }
 0x9c3   :  { %3649 = vmatprep.subr.bf16.mxu0 %v4793_v0 }
 0x9c6   :  { %3650 = vmatpush3.bf16.msra.mxu0 %v4017_v8 }
 0x9c7   :  { %3651 = vmatprep.subr.bf16.mxu0 %v4793_v0 }
 0x9ca   :  { %3652 = vmatpush3.bf16.msra.mxu0 %v4019_v9 }
 0x9cb   :  { %3653 = vmatprep.subr.bf16.mxu0 %v4793_v0 }
 0x9ce   :  { %3654 = vmatpush3.bf16.msra.mxu0 %v4021_v10 }
 0x9cf   :  { %3655 = vmatprep.subr.bf16.mxu0 %v4793_v0 }
 0x9d2   :  { %3656 = vmatpush3.bf16.msra.mxu0 %v4023_v11 }
 0x9d3   :  { %3657 = vmatprep.subr.bf16.mxu0 %v4793_v0 }
 0x9d5   :  { %v1588_v37 = vpop.f32.mrb[16].mxu1 }
 0x9d6   :  { %3658 = vmatpush3.bf16.msra.mxu0 %v4025_v12  ;;  %v3645_v38 = vpop.f32.mrb[17].mxu1 }
 0x9d7   :  { %3659 = vmatprep.subr.bf16.mxu0 %v4793_v0  ;;  %v1591_v39 = vpop.f32.mrb[18].mxu1 }
 0x9d8   :  { %v3646_v40 = vpop.f32.mrb[19].mxu1 }
 0x9da   :  { %3660 = vmatpush3.bf16.msra.mxu0 %v4027_v14  ;;  %v4034_v14 = vld [vmem:[%s5675_s3 + $0x18] sm:$0xff]  }
 0x9db   :  { %3661 = vmatprep.subr.bf16.mxu0 %v4793_v0  ;;  %3674 = vmatpush3.bf16.msra.mxu1 %v4034_v14 }
 0x9dc   :  { %3675 = vmatprep.subr.bf16.mxu1 %v4793_v0 }
 0x9de   :  { %3662 = vmatpush3.bf16.msra.mxu0 %v4029_v16 }
 0x9df   :  { %3687 = vmatprep.subr.bf16.mxu0 %v4793_v0  ;;  %3676 = vmatpush3.bf16.msra.mxu1 %v4035_v18 }
 0x9e0   :  { %3677 = vmatprep.subr.bf16.mxu1 %v4793_v0 }
 0x9e3   :  { %3678 = vmatpush3.bf16.msra.mxu1 %v4036_v20 }
 0x9e4   :  { %3679 = vmatprep.subr.bf16.mxu1 %v4793_v0 }
 0x9e7   :  { %3680 = vmatpush3.bf16.msra.mxu1 %v4037_v21 }
 0x9e8   :  { %3681 = vmatprep.subr.bf16.mxu1 %v4793_v0 }
 0x9eb   :  { %3682 = vmatpush3.bf16.msra.mxu1 %v4038_v22 }
 0x9ec   :  { %3707 = vmatprep.subr.bf16.mxu1 %v4793_v0 }
 0xa94   :  { %v1497_v42 = vpop.f32.mrb[16].mxu0 }
 0xa95   :  { %v1498_v43 = vadd.f32 %v3153_v41, %v1497_v42  ;;  %v3625_v45 = vpop.f32.mrb[17].mxu0  ;;  %v4039_v41 = vld [vmem:[#allocation31] sm:$0xff]  }
 0xa96   :  { %v1500_v46 = vpop.f32.mrb[18].mxu0  ;;  %v4043_v45 = vld [vmem:[#allocation31 + $0x10] sm:$0xff]  }
 0xa97   :  { %v1594_v47 = vadd.f32 %v1588_v37, %v1498_v43  ;;  %v3626_v48 = vpop.f32.mrb[19].mxu0  ;;  %v4045_v46 = vld [vmem:[#allocation31 + $0x18] sm:$0xff]  }
 0xa98   :  { %v4049_v48 = vld [vmem:[#allocation31 + $0x28] sm:$0xff]  }
 0xa99   :  { %v3170_v49 = vmul.f32 -1.442695, %v1594_v47 }
 0xa9b   :  { %4119 = vpow2.f32 %v3170_v49  ;;  %v4050_v49 = vld [vmem:[#allocation29 + $0x28] sm:$0xff]  }
 0xa9c   :  { %4121 = vtanh.f32 %v1594_v47  ;;  %v4047_v47 = vld [vmem:[#allocation31 + $0x20] sm:$0xff]  }
 0xaa5   :  { %v4120_v50 = vpop.eup %4119 }
 0xaa6   :  { %v1599_v51 = vadd.f32 1.0, %v4120_v50  ;;  %v4122_v53 = vpop.eup %4121  ;;  %v4051_v50 = vld [vmem:[#allocation31 + $0x30] sm:$0xff]  }
 0xaa8   :  { %4123 = vrcp.f32 %v1599_v51  ;;  %v4052_v51 = vld [vmem:[#allocation29 + $0x30] sm:$0xff]  }
 0xab2   :  { %v4124_v54 = vpop.eup %4123 }
 0xab3   :  { %v1602_v55 = vsel %vm5350_vm12, %v4122_v53, %v4124_v54  ;;  %v4054_v53 = vld [vmem:[#allocation29 + $0x38] sm:$0xff]  }
 0xab4   :  { %1605 = vrot.lane.b32.xlu1 %v1602_v55, %s4797_s28  ;;  %1603 = vrot.lane.b32.xlu0 %v1602_v55, %s4799_s2  ;;  %v3172_v54 = vld [vmem:[%s5676_s20] ss:$0 sm:$0xff] }
 0xab8   :  { %1607 = vrot.lane.b32.xlu0 %v1602_v55, %s4800_s7 }
 0xb26   :  { %v1606_v56 = vpop.permute.xlu1 %1605  ;;  %v1604_v57 = vpop.permute.xlu0 %1603 }
 0xb27   :  { %v1610_v58 = vmul.f32 %v1606_v56, %v1602_v55  ;;  %v1609_v59 = vmul.f32 0.0, %v1604_v57  ;;  %v3181_v56 = vld [vmem:[#allocation2 + $0x4] ss:$0 sm:$0xff]  ;;  %v3183_v57 = vld [vmem:[#allocation2 + $0x5] ss:$0 sm:$0xff] }
 0xb29   :  { %v5359_v60 = vadd.f32 %v1610_v58, %v1609_v59 }
 0xb2a   :  { %v1608_v62 = vpop.permute.xlu0 %1607 }
 0xb2b   :  { %4125 = vtanh.f32 %v5359_v60 }
 0xb35   :  { %v4126_v61 = vpop.eup %4125 }
 0xb36   :  { %v5362_v63 = vmul.f32 %v4126_v61, %v1608_v62  ;;  %v3184_v61 = vld [vmem:[#allocation5 + $0x5] ss:$0 sm:$0xff] }
 0xb38   :  { %v1614_v1 = vpack.c.bf16 %v5362_v63, %v5362_v63 }
 0xb3a   :  { %3664 = vmatmul.mubr.bf16.vlgmr.msra.gmra.mrb[20].mxu0 %v1614_v1 }
 0xb3b   :  { %3703 = vmatprep.mubr.msk.bf16.mxu0 %vm4794_vm0, %v4793_v0  ;;  %3688 = vmatpush3.bf16.msra.mxu0 %v4040_v23 }
 0xb3c   :  { %3689 = vmatprep.subr.bf16.mxu0 %v4793_v0 }
 0xb3f   :  { %3690 = vmatpush3.bf16.msra.mxu0 %v4042_v24 }
 0xb40   :  { %3691 = vmatprep.subr.bf16.mxu0 %v4793_v0 }
 0xb43   :  { %3692 = vmatpush3.bf16.msra.mxu0 %v4044_v25 }
 0xb44   :  { %3693 = vmatprep.subr.bf16.mxu0 %v4793_v0 }
 0xb47   :  { %3694 = vmatpush3.bf16.msra.mxu0 %v4046_v26 }
 0xb48   :  { %3695 = vmatprep.subr.bf16.mxu0 %v4793_v0 }
 0xb4b   :  { %3696 = vmatpush3.bf16.msra.mxu0 %v4048_v27 }
 0xb4c   :  { %3697 = vmatprep.subr.bf16.mxu0 %v4793_v0 }
 0xb4f   :  { %3698 = vmatpush3.bf16.msra.mxu0 %v4050_v49  ;;  %v4057_v49 = vld [vmem:[#allocation32 + $0x10] sm:$0xff]  }
 0xb50   :  { %3699 = vmatprep.subr.bf16.mxu0 %v4793_v0 }
 0xb53   :  { %3700 = vmatpush3.bf16.msra.mxu0 %v4052_v51 }
 0xb54   :  { %3701 = vmatprep.subr.bf16.mxu0 %v4793_v0 }
 0xb57   :  { %3702 = vmatpush3.bf16.msra.mxu0 %v4054_v53  ;;  %v4059_v53 = vld [vmem:[#allocation32 + $0x20] sm:$0xff]  }
 0xb58   :  { %3727 = vmatprep.subr.bf16.mxu0 %v4793_v0 }
 0xc0d   :  { %v1649_v4 = vpop.f32.mrb[20].mxu0 }
 0xc0e   :  { %v1656_v5 = vrot.slane %v1649_v4, 6  ;;  %v3665_v6 = vpop.f32.mrb[21].mxu0 }
 0xc0f   :  { %v1652_v7 = vpop.f32.mrb[22].mxu0 }
 0xc10   :  { %v1658_v8 = vadd.f32 %v1656_v5, %v1498_v43  ;;  %v3666_v9 = vpop.f32.mrb[23].mxu0  ;;  %v4041_v43 = vld [vmem:[#allocation31 + $0x8] sm:$0xff]  }
 0xc12   :  { %v3171_v10 = vmul.f32 -1.442695, %v1658_v8 }
 0xc14   :  { %4127 = vpow2.f32 %v3171_v10 }
 0xc15   :  { %4129 = vtanh.f32 %v1658_v8 }
 0xc1e   :  { %v4128_v11 = vpop.eup %4127 }
 0xc1f   :  { %v1663_v12 = vadd.f32 1.0, %v4128_v11  ;;  %v4130_v15 = vpop.eup %4129 }
 0xc21   :  { %4131 = vrcp.f32 %v1663_v12 }
 0xc2b   :  { %v4132_v16 = vpop.eup %4131 }
 0xc2c   :  { %v1666_v17 = vsel %vm5350_vm12, %v4130_v15, %v4132_v16 }
 0xc2d   :  { %v1668_v19 = vrot.slane %v1666_v17, 2 }
 0xc2f   :  { %1670 = vrot.lane.b32.xlu0 %v1668_v19, %s4799_s2  ;;  %1672 = vrot.lane.b32.xlu1 %v1668_v19, %s4797_s28 }
 0xc33   :  { %1674 = vrot.lane.b32.xlu1 %v1668_v19, %s4800_s7 }
 0xca1   :  { %v1673_v29 = vpop.permute.xlu1 %1672  ;;  %v1671_v31 = vpop.permute.xlu0 %1670 }
 0xca2   :  { %v1678_v30 = vrot.slane %v1673_v29, 6  ;;  %v1676_v33 = vmul.f32 %v1671_v31, %v5359_v60  ;;  %v3182_v60 = vld [vmem:[#allocation5 + $0x4] ss:$0 sm:$0xff] }
 0xca4   :  { %v1680_v32 = vmul.f32 %v1678_v30, %v1666_v17 }
 0xca5   :  { %v1675_v37 = vpop.permute.xlu1 %1674 }
 0xca6   :  { %v1682_v34 = vrot.slane %v1680_v32, 2 }
 0xca8   :  { %v1684_v35 = vadd.f32 %v1682_v34, %v1676_v33 }
 0xcaa   :  { %4133 = vtanh.f32 %v1684_v35 }
 0xcb4   :  { %v4134_v36 = vpop.eup %4133 }
 0xcb5   :  { %v1686_v38 = vmul.f32 %v4134_v36, %v1675_v37  ;;  %v4055_v37 = vld [vmem:[#allocation32] sm:$0xff]  }
 0xcb7   :  { %v1688_v39 = vrot.slane %v1686_v38, 6  ;;  %v4056_v38 = vld [vmem:[#allocation32 + $0x8] sm:$0xff]  }
 0xcb9   :  { %v1690_v40 = vsel %vm492_vm3, %v5362_v63, %v1688_v39 }
 0xcba   :  { %v1691_v42 = vpack.c.bf16 %v1690_v40, %v1690_v40 }
 0xcbc   :  { %3684 = vmatmul.mubr.bf16.vlgmr.msra.gmra.mrb[20].mxu1 %v1691_v42 }
 0xcbd   :  { %3708 = vmatpush3.bf16.msra.mxu1 %v4039_v41  ;;  %3723 = vmatprep.mubr.msk.bf16.mxu1 %vm4794_vm0, %v4793_v0 }
 0xcbe   :  { %3709 = vmatprep.subr.bf16.mxu1 %v4793_v0 }
 0xcc1   :  { %3710 = vmatpush3.bf16.msra.mxu1 %v4041_v43 }
 0xcc2   :  { %3711 = vmatprep.subr.bf16.mxu1 %v4793_v0 }
 0xcc5   :  { %3712 = vmatpush3.bf16.msra.mxu1 %v4043_v45 }
 0xcc6   :  { %3713 = vmatprep.subr.bf16.mxu1 %v4793_v0 }
 0xcc9   :  { %3714 = vmatpush3.bf16.msra.mxu1 %v4045_v46 }
 0xcca   :  { %3715 = vmatprep.subr.bf16.mxu1 %v4793_v0 }
 0xccd   :  { %3716 = vmatpush3.bf16.msra.mxu1 %v4047_v47 }
 0xcce   :  { %3717 = vmatprep.subr.bf16.mxu1 %v4793_v0 }
 0xcd1   :  { %3718 = vmatpush3.bf16.msra.mxu1 %v4049_v48 }
 0xcd2   :  { %3719 = vmatprep.subr.bf16.mxu1 %v4793_v0 }
 0xcd5   :  { %3720 = vmatpush3.bf16.msra.mxu1 %v4051_v50 }
 0xcd6   :  { %3721 = vmatprep.subr.bf16.mxu1 %v4793_v0 }
 0xcd9   :  { %3722 = vmatpush3.bf16.msra.mxu1 %v4053_v52 }
 0xcda   :  { %3747 = vmatprep.subr.bf16.mxu1 %v4793_v0 }
 0xcdc   :  { %3724 = vmatmul.mubr.bf16.vlgmr.msra.gmra.mrb[24].mxu1 %v4795_v28 }
 0xcdd   :  { %3763 = vmatprep.mubr.msk.bf16.mxu1 %vm4794_vm0, %v4793_v0  ;;  %3748 = vmatpush3.bf16.msra.mxu1 %v4055_v37  ;;  %v5505_v37 = vld [vmem:[#allocation35 + $0x38] sm:$0xff]  }
 0xcde   :  { %3749 = vmatprep.subr.bf16.mxu1 %v4793_v0 }
 0xce1   :  { %3750 = vmatpush3.bf16.msra.mxu1 %v4056_v38 }
 0xce2   :  { %3751 = vmatprep.subr.bf16.mxu1 %v4793_v0 }
 0xce5   :  { %3752 = vmatpush3.bf16.msra.mxu1 %v4057_v49 }
 0xce6   :  { %3753 = vmatprep.subr.bf16.mxu1 %v4793_v0 }
 0xd8f   :  { %v1780_v55 = vpop.f32.mrb[20].mxu1 }
 0xd90   :  { %v1781_v58 = vadd.f32 %v3172_v54, %v1780_v55  ;;  %v3685_v59 = vpop.f32.mrb[21].mxu1 }
 0xd91   :  { %v1783_v62 = vpop.f32.mrb[22].mxu1  ;;  %v4063_v59 = vld [vmem:[#allocation32 + $0x38] sm:$0xff]  }
 0xd92   :  { %v1792_v63 = vmul.f32 %v3181_v56, %v1781_v58  ;;  %v1806_v1 = vmul.f32 %v3183_v57, %v1781_v58  ;;  %v3686_v2 = vpop.f32.mrb[23].mxu1  ;;  %v4060_v56 = vld [vmem:[#allocation32 + $0x28] sm:$0xff]   ;;  %v4061_v57 = vld [vmem:[#allocation32 + $0x30] sm:$0xff]   ;;  %v4062_v58 = vld [vmem:[#allocation34] sm:$0xff]  }
 0xd93   :  { %v4068_v62 = vld [vmem:[#allocation34 + $0x18] sm:$0xff]   ;;  %v2245_v2 = vld [vmem:[#allocation8 + $0x1] sm:$0x1] }
 0xd94   :  { %v1799_v3 = vadd.f32 %v3182_v60, %v1792_v63  ;;  %v1812_v4 = vadd.f32 %v3184_v61, %v1806_v1  ;;  %v4064_v60 = vld [vmem:[#allocation34 + $0x8] sm:$0xff]   ;;  %v4066_v61 = vld [vmem:[#allocation34 + $0x10] sm:$0xff]   ;;  %v4070_v63 = vld [vmem:[#allocation34 + $0x20] sm:$0xff]  }
 0xd95   :  { %v2244_v1 = vld [vmem:[#allocation8 + $0x4] sm:$0x1] }
 0xd96   :  { %v1800_v5 = vmax.f32 %v1799_v3, 0.0  ;;  %v1813_v6 = vmax.f32 %v1812_v4, 0.0  ;;  %v2246_v3 = vld [vmem:[#allocation8 + $0x5] sm:$0x1]  ;;  %v4072_v4 = vld [vmem:[#allocation34 + $0x28] sm:$0xff]  }
 0xd98   :  { %v1864_v7 = vsel %vm492_vm3, %v1800_v5, %v1813_v6  ;;  %v2303_v5 = vrot.slane %v2244_v1, 7  ;;  %v2308_v6 = vrot.slane %v2245_v2, 6 }
 0xd99   :  { %v1865_v8 = vpack.c.bf16 %v1864_v7, %v1864_v7  ;;  %v2309_v7 = vrot.slane %v2246_v3, 5 }
 0xd9b   :  { %3704 = vmatmul.mubr.bf16.vlgmr.msra.gmra.mrb[24].mxu0 %v1865_v8  ;;  %v2243_v8 = vld [vmem:[#allocation8] sm:$0x1] }
 0xd9c   :  { %3728 = vmatpush3.bf16.msra.mxu0 %v4039_v41  ;;  %3743 = vmatprep.mubr.msk.bf16.mxu0 %vm4794_vm0, %v4793_v0 }
 0xd9d   :  { %3729 = vmatprep.subr.bf16.mxu0 %v4793_v0 }
 0xda0   :  { %3730 = vmatpush3.bf16.msra.mxu0 %v4041_v43 }
 0xda1   :  { %3731 = vmatprep.subr.bf16.mxu0 %v4793_v0 }
 0xda4   :  { %3732 = vmatpush3.bf16.msra.mxu0 %v4043_v45 }
 0xda5   :  { %3733 = vmatprep.subr.bf16.mxu0 %v4793_v0 }
 0xda8   :  { %3734 = vmatpush3.bf16.msra.mxu0 %v4045_v46 }
 0xda9   :  { %3735 = vmatprep.subr.bf16.mxu0 %v4793_v0 }
 0xdac   :  { %3736 = vmatpush3.bf16.msra.mxu0 %v4047_v47 }
 0xdad   :  { %3737 = vmatprep.subr.bf16.mxu0 %v4793_v0 }
 0xdaf   :  { %v2045_v9 = vpop.f32.mrb[24].mxu1 }
 0xdb0   :  { %3738 = vmatpush3.bf16.msra.mxu0 %v4049_v48  ;;  %v3725_v10 = vpop.f32.mrb[25].mxu1 }
 0xdb1   :  { %3739 = vmatprep.subr.bf16.mxu0 %v4793_v0  ;;  %v2048_v11 = vpop.f32.mrb[26].mxu1  ;;  %v2304_v10 = vsel %vm482_vm1, %v2303_v5, %v2243_v8  ;;  %vm2327_vm1 = vcmask 1043456  }
 0xdb2   :  { %v3726_v12 = vpop.f32.mrb[27].mxu1  ;;  %v2310_v11 = vsel %vm489_vm2, %v2309_v7, %v2308_v6  ;;  %vm2329_vm2 = vcmask 1045504  }
 0xdb3   :  { %v2247_v12 = vld [vmem:[#allocation8 + $0x2] sm:$0x1] }
 0xdb4   :  { %3740 = vmatpush3.bf16.msra.mxu0 %v4051_v50  ;;  %v4058_v50 = vld [vmem:[#allocation32 + $0x18] sm:$0xff]  }
 0xdb5   :  { %3741 = vmatprep.subr.bf16.mxu0 %v4793_v0  ;;  %3754 = vmatpush3.bf16.msra.mxu1 %v4058_v50 }
 0xdb6   :  { %3755 = vmatprep.subr.bf16.mxu1 %v4793_v0 }
 0xdb8   :  { %3742 = vmatpush3.bf16.msra.mxu0 %v4053_v52 }
 0xdb9   :  { %3767 = vmatprep.subr.bf16.mxu0 %v4793_v0  ;;  %3756 = vmatpush3.bf16.msra.mxu1 %v4059_v53 }
 0xdba   :  { %3757 = vmatprep.subr.bf16.mxu1 %v4793_v0 }
 0xdbd   :  { %3758 = vmatpush3.bf16.msra.mxu1 %v4060_v56 }
 0xdbe   :  { %3759 = vmatprep.subr.bf16.mxu1 %v4793_v0 }
 0xdc1   :  { %3760 = vmatpush3.bf16.msra.mxu1 %v4061_v57  ;;  %v3213_v57 = vld [vmem:[%s4945_s8] ss:$0 sm:$0xff]  ;;  %s4803_s8 = smov 122  }
 0xdc2   :  { %3761 = vmatprep.subr.bf16.mxu1 %v4793_v0 }
 0xdc5   :  { %3762 = vmatpush3.bf16.msra.mxu1 %v4063_v59 }
 0xdc6   :  { %3787 = vmatprep.subr.bf16.mxu1 %v4793_v0 }
 0xe6e   :  { %v1954_v14 = vpop.f32.mrb[24].mxu0 }
 0xe6f   :  { %v1955_v15 = vadd.f32 %v3185_v13, %v1954_v14  ;;  %v3705_v16 = vpop.f32.mrb[25].mxu0  ;;  %v2248_v13 = vld [vmem:[#allocation8 + $0x6] sm:$0x1]  ;;  %v2249_v14 = vld [vmem:[#allocation8 + $0x3] sm:$0x1] }
 0xe70   :  { %v1957_v17 = vpop.f32.mrb[26].mxu0  ;;  %v2314_v16 = vrot.slane %v2247_v12, 4 }
 0xe71   :  { %v2051_v18 = vadd.f32 %v2045_v9, %v1955_v15  ;;  %v3706_v19 = vpop.f32.mrb[27].mxu0  ;;  %v4074_v9 = vld [vmem:[#allocation34 + $0x30] sm:$0xff]   ;;  %v2315_v17 = vrot.slane %v2248_v13, 3 }
 0xe72   :  { %v2321_v19 = vrot.slane %v2249_v14, 2 }
 0xe73   :  { %v3202_v20 = vmul.f32 -1.442695, %v2051_v18 }
 0xe75   :  { %4135 = vpow2.f32 %v3202_v20 }
 0xe76   :  { %4137 = vtanh.f32 %v2051_v18  ;;  %v4076_v18 = vld [vmem:[#allocation34 + $0x38] sm:$0xff]  }
 0xe7f   :  { %v4136_v21 = vpop.eup %4135 }
 0xe80   :  { %v2056_v22 = vadd.f32 1.0, %v4136_v21  ;;  %v4138_v24 = vpop.eup %4137  ;;  %v2317_v21 = vsel %vm2316_vm4, %v2315_v17, %v2314_v16 }
 0xe82   :  { %4139 = vrcp.f32 %v2056_v22  ;;  %v2326_v22 = vsel %vm492_vm3, %v2304_v10, %v2310_v11 }
 0xe8c   :  { %v4140_v25 = vpop.eup %4139 }
 0xe8d   :  { %v2059_v26 = vsel %vm5428_vm15, %v4138_v24, %v4140_v25  ;;  %v2328_v24 = vsel %vm2327_vm1, %v2326_v22, %v2317_v21 }
 0xe8e   :  { %2062 = vrot.lane.b32.xlu1 %v2059_v26, %s4799_s2  ;;  %2060 = vrot.lane.b32.xlu0 %v2059_v26, %s4801_s30 }
 0xe92   :  { %2064 = vrot.lane.b32.xlu0 %v2059_v26, %s4802_s0 }
 0xf00   :  { %v2063_v27 = vpop.permute.xlu1 %2062  ;;  %v2061_v29 = vpop.permute.xlu0 %2060 }
 0xf01   :  { %v2067_v30 = vmul.f32 %v2063_v27, %v2059_v26  ;;  %v2066_v31 = vmul.f32 0.0, %v2061_v29  ;;  %v5475_v27 = vld [vmem:[#allocation35] sm:$0xff]   ;;  %v5481_v29 = vld [vmem:[#allocation35 + $0x8] sm:$0xff]  }
 0xf03   :  { %v5437_v32 = vadd.f32 %v2067_v30, %v2066_v31  ;;  %v5485_v30 = vld [vmem:[#allocation35 + $0x10] sm:$0xff]   ;;  %v5489_v31 = vld [vmem:[#allocation35 + $0x18] sm:$0xff]  }
 0xf04   :  { %v2065_v34 = vpop.permute.xlu0 %2064 }
 0xf05   :  { %4141 = vtanh.f32 %v5437_v32 }
 0xf0f   :  { %v4142_v33 = vpop.eup %4141 }
 0xf10   :  { %v5440_v35 = vmul.f32 %v4142_v33, %v2065_v34  ;;  %v5493_v33 = vld [vmem:[#allocation35 + $0x20] sm:$0xff]   ;;  %v5497_v34 = vld [vmem:[#allocation35 + $0x28] sm:$0xff]  }
 0xf12   :  { %v2071_v36 = vpack.c.bf16 %v5440_v35, %v5440_v35 }
 0xf14   :  { %3744 = vmatmul.mubr.bf16.vlgmr.msra.gmra.mrb[28].mxu0 %v2071_v36  ;;  %v5501_v36 = vld [vmem:[#allocation35 + $0x30] sm:$0xff]  }
 0xf15   :  { %3783 = vmatprep.mubr.msk.bf16.mxu0 %vm4794_vm0, %v4793_v0  ;;  %3768 = vmatpush3.bf16.msra.mxu0 %v4062_v58 }
 0xf16   :  { %3769 = vmatprep.subr.bf16.mxu0 %v4793_v0 }
 0xf19   :  { %3770 = vmatpush3.bf16.msra.mxu0 %v4064_v60 }
 0xf1a   :  { %3771 = vmatprep.subr.bf16.mxu0 %v4793_v0 }
 0xf1d   :  { %3772 = vmatpush3.bf16.msra.mxu0 %v4066_v61 }
 0xf1e   :  { %3773 = vmatprep.subr.bf16.mxu0 %v4793_v0 }
 0xf21   :  { %3774 = vmatpush3.bf16.msra.mxu0 %v4068_v62 }
 0xf22   :  { %3775 = vmatprep.subr.bf16.mxu0 %v4793_v0 }
 0xf25   :  { %3776 = vmatpush3.bf16.msra.mxu0 %v4070_v63 }
 0xf26   :  { %3777 = vmatprep.subr.bf16.mxu0 %v4793_v0 }
 0xf29   :  { %3778 = vmatpush3.bf16.msra.mxu0 %v4072_v4  ;;  %v4086_v4 = vld [vmem:[#allocation37 + $0x38] sm:$0xff]  }
 0xf2a   :  { %3779 = vmatprep.subr.bf16.mxu0 %v4793_v0 }
 0xf2d   :  { %3780 = vmatpush3.bf16.msra.mxu0 %v4074_v9 }
 0xf2e   :  { %3781 = vmatprep.subr.bf16.mxu0 %v4793_v0 }
 0xf31   :  { %3782 = vmatpush3.bf16.msra.mxu0 %v4076_v18 }
 0xf32   :  { %3807 = vmatprep.subr.bf16.mxu0 %v4793_v0 }
 0xfe7   :  { %v2106_v39 = vpop.f32.mrb[28].mxu0 }
 0xfe8   :  { %v2113_v40 = vrot.slane %v2106_v39, 6  ;;  %v3745_v41 = vpop.f32.mrb[29].mxu0 }
 0xfe9   :  { %v2109_v42 = vpop.f32.mrb[30].mxu0 }
 0xfea   :  { %v2115_v43 = vadd.f32 %v2113_v40, %v1955_v15  ;;  %v3746_v45 = vpop.f32.mrb[31].mxu0  ;;  %v2250_v15 = vld [vmem:[#allocation8 + $0x7] sm:$0x1] }
 0xfeb   :  { %v2322_v20 = vrot.slane %v2250_v15, 1 }
 0xfec   :  { %v3203_v46 = vmul.f32 -1.442695, %v2115_v43 }
 0xfed   :  { %v2324_v23 = vsel %vm2323_vm5, %v2322_v20, %v2321_v19 }
 0xfee   :  { %4143 = vpow2.f32 %v3203_v46  ;;  %v2330_v25 = vsel %vm2329_vm2, %v2328_v24, %v2324_v23 }
 0xfef   :  { %4145 = vtanh.f32 %v2115_v43  ;;  %v2331_v26 = vpack.c.bf16 %v2330_v25, %v2330_v25 }
 0xff1   :  { %3784 = vmatmul.mubr.bf16.vlgmr.msra.gmra.mrb[32].mxu0 %v2331_v26 }
 0xff2   :  { %3808 = vmatpush3.bf16.msra.mxu0 %v5475_v27  ;;  %3823 = vmatprep.mubr.msk.bf16.mxu0 %vm4794_vm0, %v4793_v0 }
 0xff3   :  { %3809 = vmatprep.subr.bf16.mxu0 %v4793_v0 }
 0xff6   :  { %3810 = vmatpush3.bf16.msra.mxu0 %v5481_v29 }
 0xff7   :  { %3811 = vmatprep.subr.bf16.mxu0 %v4793_v0 }
 0xff8   :  { %v4144_v47 = vpop.eup %4143 }
 0xff9   :  { %v2120_v48 = vadd.f32 1.0, %v4144_v47  ;;  %v4146_v51 = vpop.eup %4145 }
 0xffa   :  { %3812 = vmatpush3.bf16.msra.mxu0 %v5485_v30 }
 0xffb   :  { %4147 = vrcp.f32 %v2120_v48  ;;  %3813 = vmatprep.subr.bf16.mxu0 %v4793_v0 }
 0xffe   :  { %3814 = vmatpush3.bf16.msra.mxu0 %v5489_v31 }
 0xfff   :  { %3815 = vmatprep.subr.bf16.mxu0 %v4793_v0 }
0x1002   :  { %3816 = vmatpush3.bf16.msra.mxu0 %v5493_v33 }
0x1003   :  { %3817 = vmatprep.subr.bf16.mxu0 %v4793_v0 }
0x1005   :  { %v4148_v52 = vpop.eup %4147 }
0x1006   :  { %v5452_v54 = vsel %vm5428_vm15, %v4146_v51, %v4148_v52  ;;  %3818 = vmatpush3.bf16.msra.mxu0 %v5497_v34 }
0x1007   :  { %v2125_v55 = vrot.slane %v5452_v54, 2  ;;  %3819 = vmatprep.subr.bf16.mxu0 %v4793_v0 }
0x1009   :  { %2127 = vrot.lane.b32.xlu0 %v2125_v55, %s4801_s30  ;;  %2129 = vrot.lane.b32.xlu1 %v2125_v55, %s4799_s2 }
0x100a   :  { %3820 = vmatpush3.bf16.msra.mxu0 %v5501_v36 }
0x100b   :  { %3821 = vmatprep.subr.bf16.mxu0 %v4793_v0 }
0x100d   :  { %2131 = vrot.lane.b32.xlu1 %v2125_v55, %s4802_s0 }
0x100e   :  { %3822 = vmatpush3.bf16.msra.mxu0 %v5505_v37 }
0x100f   :  { %3847 = vmatprep.subr.bf16.mxu0 %v4793_v0 }
0x107b   :  { %v2130_v38 = vpop.permute.xlu1 %2129  ;;  %v2128_v40 = vpop.permute.xlu0 %2127 }
0x107c   :  { %v2135_v39 = vrot.slane %v2130_v38, 6  ;;  %v2133_v42 = vmul.f32 %v2128_v40, %v5437_v32 }
0x107e   :  { %v2137_v41 = vmul.f32 %v2135_v39, %v5452_v54 }
0x107f   :  { %v2132_v47 = vpop.permute.xlu1 %2131 }
0x1080   :  { %v2139_v43 = vrot.slane %v2137_v41, 2 }
0x1082   :  { %v2141_v45 = vadd.f32 %v2139_v43, %v2133_v42 }
0x1084   :  { %4149 = vtanh.f32 %v2141_v45 }
0x108e   :  { %v4150_v46 = vpop.eup %4149 }
0x108f   :  { %v2143_v48 = vmul.f32 %v4150_v46, %v2132_v47 }
0x1091   :  { %v2145_v49 = vrot.slane %v2143_v48, 6 }
0x1093   :  { %v2147_v50 = vsel %vm492_vm3, %v5440_v35, %v2145_v49 }
0x1094   :  { %v2148_v51 = vpack.c.bf16 %v2147_v50, %v2147_v50 }
0x1096   :  { %3764 = vmatmul.mubr.bf16.vlgmr.msra.gmra.mrb[28].mxu1 %v2148_v51 }
0x1097   :  { %3788 = vmatpush3.bf16.msra.mxu1 %v5475_v27  ;;  %3803 = vmatprep.mubr.msk.bf16.mxu1 %vm4794_vm0, %v4793_v0 }
0x1098   :  { %3789 = vmatprep.subr.bf16.mxu1 %v4793_v0 }
0x109b   :  { %3790 = vmatpush3.bf16.msra.mxu1 %v5481_v29 }
0x109c   :  { %3791 = vmatprep.subr.bf16.mxu1 %v4793_v0 }
0x109f   :  { %3792 = vmatpush3.bf16.msra.mxu1 %v5485_v30 }
0x10a0   :  { %3793 = vmatprep.subr.bf16.mxu1 %v4793_v0 }
0x10a3   :  { %3794 = vmatpush3.bf16.msra.mxu1 %v5489_v31 }
0x10a4   :  { %3795 = vmatprep.subr.bf16.mxu1 %v4793_v0 }
0x10a7   :  { %3796 = vmatpush3.bf16.msra.mxu1 %v5493_v33 }
0x10a8   :  { %3797 = vmatprep.subr.bf16.mxu1 %v4793_v0 }
0x10ab   :  { %3798 = vmatpush3.bf16.msra.mxu1 %v5497_v34 }
0x10ac   :  { %3799 = vmatprep.subr.bf16.mxu1 %v4793_v0 }
0x10af   :  { %3800 = vmatpush3.bf16.msra.mxu1 %v5501_v36 }
0x10b0   :  { %3801 = vmatprep.subr.bf16.mxu1 %v4793_v0 }
0x10b3   :  { %3802 = vmatpush3.bf16.msra.mxu1 %v5505_v37 }
0x10b4   :  { %3827 = vmatprep.subr.bf16.mxu1 %v4793_v0 }
0x10b6   :  { %3804 = vmatmul.mubr.bf16.vlgmr.msra.gmra.mrb[32].mxu1 %v4795_v28 }
0x10b7   :  { %3828 = vmatpush3.bf16.msra.mxu1 %v5475_v27  ;;  %3843 = vmatprep.mubr.msk.bf16.mxu1 %vm4794_vm0, %v4793_v0 }
0x10b8   :  { %3829 = vmatprep.subr.bf16.mxu1 %v4793_v0 }
0x10bb   :  { %3830 = vmatpush3.bf16.msra.mxu1 %v5481_v29 }
0x10bc   :  { %3831 = vmatprep.subr.bf16.mxu1 %v4793_v0 }
0x10bf   :  { %3832 = vmatpush3.bf16.msra.mxu1 %v5485_v30 }
0x10c0   :  { %3833 = vmatprep.subr.bf16.mxu1 %v4793_v0 }
0x10c3   :  { %3834 = vmatpush3.bf16.msra.mxu1 %v5489_v31 }
0x10c4   :  { %3835 = vmatprep.subr.bf16.mxu1 %v4793_v0  ;;  %v2420_v28 = vpop.f32.mrb[32].mxu0 }
0x10c5   :  { %v3785_v32 = vpop.f32.mrb[33].mxu0  ;;  %v5553_v58 = vadd.f32 %v3213_v57, %v2420_v28 }
0x10c6   :  { %v2423_v35 = vpop.f32.mrb[34].mxu0 }
0x10c7   :  { %3836 = vmatpush3.bf16.msra.mxu1 %v5493_v33  ;;  %v3786_v52 = vpop.f32.mrb[35].mxu0 }
0x10c8   :  { %3837 = vmatprep.subr.bf16.mxu1 %v4793_v0 }
0x10cb   :  { %3838 = vmatpush3.bf16.msra.mxu1 %v5497_v34 }
0x10cc   :  { %3839 = vmatprep.subr.bf16.mxu1 %v4793_v0 }
0x10cf   :  { %3840 = vmatpush3.bf16.msra.mxu1 %v5501_v36 }
0x10d0   :  { %3841 = vmatprep.subr.bf16.mxu1 %v4793_v0 }
0x10d3   :  { %3842 = vmatpush3.bf16.msra.mxu1 %v5505_v37 }
0x10d4   :  { %3867 = vmatprep.subr.bf16.mxu1 %v4793_v0 }
0x1169   :  { %v5550_v53 = vpop.f32.mrb[28].mxu1 }
0x116a   :  { %v3765_v54 = vpop.f32.mrb[29].mxu1 }
0x116b   :  { %v2240_v55 = vpop.f32.mrb[30].mxu1 }
0x116c   :  { %v3766_v56 = vpop.f32.mrb[31].mxu1 }
0x1189   :  { %v2511_v59 = vpop.f32.mrb[32].mxu1 }
0x118a   :  { %v2517_v60 = vadd.f32 %v2511_v59, %v5553_v58  ;;  %v3805_v61 = vpop.f32.mrb[33].mxu1 }
0x118b   :  { %v2514_v62 = vpop.f32.mrb[34].mxu1 }
0x118c   :  { %v3230_v63 = vmul.f32 -1.442695, %v2517_v60  ;;  %v3806_v1 = vpop.f32.mrb[35].mxu1 }
0x118e   :  { %4151 = vpow2.f32 %v3230_v63 }
0x118f   :  { %4153 = vtanh.f32 %v2517_v60 }
0x1198   :  { %v4152_v2 = vpop.eup %4151 }
0x1199   :  { %v2522_v3 = vadd.f32 1.0, %v4152_v2  ;;  %v4154_v5 = vpop.eup %4153 }
0x119b   :  { %4155 = vrcp.f32 %v2522_v3 }
0x11a5   :  { %v4156_v6 = vpop.eup %4155 }
0x11a6   :  { %v2525_v7 = vsel %vm5558_vm8, %v4154_v5, %v4156_v6 }
0x11a7   :  { %2528 = vrot.lane.b32.xlu1 %v2525_v7, %s4803_s8  ;;  %2526 = vrot.lane.b32.xlu0 %v2525_v7, %s4804_s21 }
0x11ab   :  { %2530 = vrot.lane.b32.xlu0 %v2525_v7, %s4805_s14 }
0x1219   :  { %v2529_v8 = vpop.permute.xlu1 %2528  ;;  %v2527_v44 = vpop.permute.xlu0 %2526 }
0x121a   :  { %v2533_v9 = vmul.f32 %v2529_v8, %v2525_v7  ;;  %v2532_v10 = vmul.f32 0.0, %v2527_v44  ;;  %v4079_v44 = vld [vmem:[#allocation37] sm:$0xff]  }
0x121c   :  { %v2534_v11 = vadd.f32 %v2533_v9, %v2532_v10  ;;  %v4080_v9 = vld [vmem:[#allocation37 + $0x8] sm:$0xff]  }
0x121d   :  { %v2531_v13 = vpop.permute.xlu0 %2530 }
0x121e   :  { %4157 = vtanh.f32 %v2534_v11 }
0x1228   :  { %v4158_v12 = vpop.eup %4157 }
0x1229   :  { %v5567_v14 = vmul.f32 %v4158_v12, %v2531_v13 }
0x122b   :  { %v2537_v15 = vpack.c.bf16 %v5567_v14, %v5567_v14 }
0x122d   :  { %3824 = vmatmul.mubr.bf16.vlgmr.msra.gmra.mrb[36].mxu0 %v2537_v15 }
0x122e   :  { %3848 = vmatpush3.bf16.msra.mxu0 %v5475_v27  ;;  %3863 = vmatprep.mubr.msk.bf16.mxu0 %vm4794_vm0, %v4793_v0 }
0x122f   :  { %3849 = vmatprep.subr.bf16.mxu0 %v4793_v0 }
0x1232   :  { %3850 = vmatpush3.bf16.msra.mxu0 %v5481_v29 }
0x1233   :  { %3851 = vmatprep.subr.bf16.mxu0 %v4793_v0 }
0x1236   :  { %3852 = vmatpush3.bf16.msra.mxu0 %v5485_v30 }
0x1237   :  { %3853 = vmatprep.subr.bf16.mxu0 %v4793_v0 }
0x123a   :  { %3854 = vmatpush3.bf16.msra.mxu0 %v5489_v31 }
0x123b   :  { %3855 = vmatprep.subr.bf16.mxu0 %v4793_v0 }
0x123e   :  { %3856 = vmatpush3.bf16.msra.mxu0 %v5493_v33 }
0x123f   :  { %3857 = vmatprep.subr.bf16.mxu0 %v4793_v0 }
0x1242   :  { %3858 = vmatpush3.bf16.msra.mxu0 %v5497_v34 }
0x1243   :  { %3859 = vmatprep.subr.bf16.mxu0 %v4793_v0 }
0x1246   :  { %3860 = vmatpush3.bf16.msra.mxu0 %v5501_v36 }
0x1247   :  { %3861 = vmatprep.subr.bf16.mxu0 %v4793_v0 }
0x124a   :  { %3862 = vmatpush3.bf16.msra.mxu0 %v5505_v37 }
0x124b   :  { %3887 = vmatprep.subr.mxu0 %v4793_v0 }
0x1300   :  { %v2572_v16 = vpop.f32.mrb[36].mxu0 }
0x1301   :  { %v2579_v17 = vrot.slane %v2572_v16, 6  ;;  %v3825_v18 = vpop.f32.mrb[37].mxu0 }
0x1302   :  { %v2575_v19 = vpop.f32.mrb[38].mxu0 }
0x1303   :  { %v2581_v20 = vadd.f32 %v2579_v17, %v5553_v58  ;;  %v3826_v21 = vpop.f32.mrb[39].mxu0  ;;  %v4081_v19 = vld [vmem:[#allocation37 + $0x10] sm:$0xff]  }
0x1305   :  { %v3231_v22 = vmul.f32 -1.442695, %v2581_v20 }
0x1307   :  { %4159 = vpow2.f32 %v3231_v22 }
0x1308   :  { %4161 = vtanh.f32 %v2581_v20  ;;  %v4082_v20 = vld [vmem:[#allocation37 + $0x18] sm:$0xff]  }
0x1311   :  { %v4160_v23 = vpop.eup %4159 }
0x1312   :  { %v2586_v24 = vadd.f32 1.0, %v4160_v23  ;;  %v4162_v25 = vpop.eup %4161  ;;  %v4083_v23 = vld [vmem:[#allocation37 + $0x20] sm:$0xff]  }
0x1314   :  { %4163 = vrcp.f32 %v2586_v24 }
0x131e   :  { %v4164_v26 = vpop.eup %4163 }
0x131f   :  { %v2589_v27 = vsel %vm5558_vm8, %v4162_v25, %v4164_v26  ;;  %v4084_v25 = vld [vmem:[#allocation37 + $0x28] sm:$0xff]   ;;  %v4085_v26 = vld [vmem:[#allocation37 + $0x30] sm:$0xff]  }
0x1320   :  { %v2591_v29 = vrot.slane %v2589_v27, 2 }
0x1322   :  { %2593 = vrot.lane.b32.xlu0 %v2591_v29, %s4804_s21  ;;  %2595 = vrot.lane.b32.xlu1 %v2591_v29, %s4803_s8 }
0x1326   :  { %2597 = vrot.lane.b32.xlu1 %v2591_v29, %s4805_s14 }
0x1394   :  { %v2596_v30 = vpop.permute.xlu1 %2595  ;;  %v2594_v33 = vpop.permute.xlu0 %2593 }
0x1395   :  { %v2601_v31 = vrot.slane %v2596_v30, 6  ;;  %v2599_v36 = vmul.f32 %v2594_v33, %v2534_v11 }
0x1397   :  { %v2603_v34 = vmul.f32 %v2601_v31, %v2589_v27 }
0x1398   :  { %v2598_v40 = vpop.permute.xlu1 %2597 }
0x1399   :  { %v2605_v37 = vrot.slane %v2603_v34, 2 }
0x139b   :  { %v2607_v38 = vadd.f32 %v2605_v37, %v2599_v36 }
0x139d   :  { %4165 = vtanh.f32 %v2607_v38 }
0x13a7   :  { %v4166_v39 = vpop.eup %4165 }
0x13a8   :  { %v2609_v41 = vmul.f32 %v4166_v39, %v2598_v40 }
0x13aa   :  { %v2610_v42 = vpack.c.bf16 %v2609_v41, %v2609_v41  ;;  %v2757_v1 = vrot.slane %v2609_v41, 6 }
0x13ac   :  { %3844 = vmatmul.mubr.bf16.vlgmr.msra.gmra.mrb[36].mxu1 %v2610_v42  ;;  %v2765_v7 = vsel %vm492_vm3, %v5567_v14, %v2757_v1 }
0x13ad   :  { %3883 = vmatprep.mubr.msk.bf16.mxu1 %vm4794_vm0, %v4793_v0  ;;  %3868 = vmatpush3.bf16.msra.mxu1 %v4079_v44 }
0x13ae   :  { %3869 = vmatprep.subr.bf16.mxu1 %v4793_v0 }
0x13b1   :  { %3870 = vmatpush3.bf16.msra.mxu1 %v4080_v9 }
0x13b2   :  { %3871 = vmatprep.subr.bf16.mxu1 %v4793_v0 }
0x13b5   :  { %3872 = vmatpush3.bf16.msra.mxu1 %v4081_v19 }
0x13b6   :  { %3873 = vmatprep.subr.bf16.mxu1 %v4793_v0 }
0x13b9   :  { %3874 = vmatpush3.bf16.msra.mxu1 %v4082_v20 }
0x13ba   :  { %3875 = vmatprep.subr.bf16.mxu1 %v4793_v0 }
0x13bd   :  { %3876 = vmatpush3.bf16.msra.mxu1 %v4083_v23 }
0x13be   :  { %3877 = vmatprep.subr.bf16.mxu1 %v4793_v0 }
0x13c1   :  { %3878 = vmatpush3.bf16.msra.mxu1 %v4084_v25 }
0x13c2   :  { %3879 = vmatprep.subr.bf16.mxu1 %v4793_v0 }
0x13c5   :  { %3880 = vmatpush3.bf16.msra.mxu1 %v4085_v26 }
0x13c6   :  { %3881 = vmatprep.subr.bf16.mxu1 %v4793_v0 }
0x13c9   :  { %3882 = vmatpush3.bf16.msra.mxu1 %v4086_v4 }
0x13ca   :  { %3892 = vmatprep.subr.mxu1 %v4793_v0 }
0x147f   :  { %v2645_v43 = vpop.f32.mrb[36].mxu1 }
0x1480   :  { %v2652_v45 = vrot.slane %v2645_v43, 4  ;;  %v3845_v46 = vpop.f32.mrb[37].mxu1  ;;  %v3204_v43 = vld [vmem:[%s5682_s15] ss:$0 sm:$0xff] }
0x1481   :  { %v2648_v47 = vpop.f32.mrb[38].mxu1  ;;  %v2238_v46 = vadd.f32 %v3204_v43, %v5550_v53 }
0x1482   :  { %v2654_v48 = vadd.f32 %v2652_v45, %v5553_v58  ;;  %v3846_v49 = vpop.f32.mrb[39].mxu1  ;;  %v3234_v45 = vld [vmem:[%s4955_s27] ss:$0 sm:$0xff]  ;;  %s4806_s27 = smov [#allocation38]  }
0x1483   :  { %s3037_s17 = sshll.u32 %s4806_s27, 4  ;;  %s3038_s17 = int_to_ptr.vmem [resolvable:$true] %s3037_s17 }
0x1484   :  { %v3232_v50 = vmul.f32 -1.442695, %v2654_v48  ;;  %s4689_s11 = scalar_lea.vmem %s3038_s17, 64  ;;  %p4694_p3 = scmp.lt.s32.totalorder %s3038_s17, %s3038_s17 }
0x1485   :  { %p4690_p2 = scmp.ne.s32.totalorder %s3038_s17, %s4689_s11  ;;  %p4695_p4 = scmp.lt.s32.totalorder %s4689_s11, %s4689_s11 }
0x1486   :  { %4167 = vpow2.f32 %v3232_v50 }
0x1487   :  { %4169 = vtanh.f32 %v2654_v48  ;;  %p4696_p5 = por %p4695_p4, %p4694_p3 }
0x1489   :  { %p4697_p6 = pnand %p4696_p5, %p4690_p2 }
0x1490   :  { %v4168_v51 = vpop.eup %4167 }
0x1491   :  { %v2659_v28 = vadd.f32 1.0, %v4168_v51  ;;  %v4170_v32 = vpop.eup %4169 }
0x1493   :  { %4171 = vrcp.f32 %v2659_v28 }
0x149d   :  { %v4172_v35 = vpop.eup %4171 }
0x149e   :  { %v2662_v52 = vsel %vm5558_vm8, %v4170_v32, %v4172_v35 }
0x149f   :  { %v2664_v54 = vrot.slane %v2662_v52, 4 }
0x14a1   :  { %2666 = vrot.lane.b32.xlu1 %v2664_v54, %s4804_s21  ;;  %2668 = vrot.lane.b32.xlu0 %v2664_v54, %s4803_s8 }
0x14a5   :  { %2670 = vrot.lane.b32.xlu0 %v2664_v54, %s4805_s14  ;;  %v2951_v54 = vrot.slane %v2238_v46, 2 }
0x1513   :  { %v2669_v55 = vpop.permute.xlu0 %2668  ;;  %v2667_v57 = vpop.permute.xlu1 %2666 }
0x1514   :  { %v2674_v56 = vrot.slane %v2669_v55, 4  ;;  %v2672_v60 = vmul.f32 %v2667_v57, %v2607_v38 }
0x1516   :  { %v2676_v59 = vmul.f32 %v2674_v56, %v2662_v52  ;;  %v2864_v52 = vrot.slane %v2238_v46, 1 }
0x1517   :  { %v2671_v2 = vpop.permute.xlu0 %2670 }
0x1518   :  { %v2678_v61 = vrot.slane %v2676_v59, 4 }
0x151a   :  { %v2680_v62 = vadd.f32 %v2678_v61, %v2672_v60  ;;  %v2867_v61 = vsel %vm2866_vm9, %v2238_v46, %v2864_v52 }
0x151c   :  { %4173 = vtanh.f32 %v2680_v62 }
0x1526   :  { %v4174_v63 = vpop.eup %4173 }
0x1527   :  { %v2682_v3 = vmul.f32 %v4174_v63, %v2671_v2 }
0x1529   :  { %v2683_v5 = vpack.c.bf16 %v2682_v3, %v2682_v3  ;;  %v2760_v6 = vrot.slane %v2682_v3, 4 }
0x152b   :  { %v2766_v8 = vsel %vm2327_vm1, %v2765_v7, %v2760_v6  ;;  %3864 = vmatmul.mubr.bf16.vlgmr.msra.gmra.mrb[40].mxu0 %v2683_v5 }
0x152c   :  { %3889 = vmatprep.mubr.msk.f32.mxu0 %vm4794_vm0, %v4793_v0 }
0x15fe   :  { %v2718_v10 = vpop.f32.mrb[40].mxu0 }
0x15ff   :  { %v2725_v11 = vrot.slane %v2718_v10, 2  ;;  %v3865_v12 = vpop.f32.mrb[41].mxu0 }
0x1600   :  { %v2721_v13 = vpop.f32.mrb[42].mxu0 }
0x1601   :  { %v2727_v14 = vadd.f32 %v2725_v11, %v5553_v58  ;;  %v3866_v15 = vpop.f32.mrb[43].mxu0 }
0x1603   :  { %v3233_v16 = vmul.f32 -1.442695, %v2727_v14 }
0x1605   :  { %4175 = vpow2.f32 %v3233_v16 }
0x1606   :  { %4177 = vtanh.f32 %v2727_v14 }
0x160f   :  { %v4176_v17 = vpop.eup %4175 }
0x1610   :  { %v2732_v18 = vadd.f32 1.0, %v4176_v17  ;;  %v4178_v21 = vpop.eup %4177 }
0x1612   :  { %4179 = vrcp.f32 %v2732_v18 }
0x161c   :  { %v4180_v22 = vpop.eup %4179 }
0x161d   :  { %v2735_v58 = vsel %vm5558_vm8, %v4178_v21, %v4180_v22 }
0x161e   :  { %v2737_v24 = vrot.slane %v2735_v58, 6 }
0x1620   :  { %2739 = vrot.lane.b32.xlu0 %v2737_v24, %s4804_s21  ;;  %2741 = vrot.lane.b32.xlu1 %v2737_v24, %s4803_s8 }
0x1624   :  { %2743 = vrot.lane.b32.xlu1 %v2737_v24, %s4805_s14 }
0x1692   :  { %v2742_v27 = vpop.permute.xlu1 %2741  ;;  %v2740_v30 = vpop.permute.xlu0 %2739 }
0x1693   :  { %v2747_v29 = vrot.slane %v2742_v27, 2  ;;  %v2745_v33 = vmul.f32 %v2740_v30, %v2680_v62  ;;  %v2953_v62 = vsel %vm2866_vm9, %v2864_v52, %v2951_v54 }
0x1695   :  { %v2749_v31 = vmul.f32 %v2747_v29, %v2735_v58 }
0x1696   :  { %v2744_v38 = vpop.permute.xlu1 %2743 }
0x1697   :  { %v2751_v34 = vrot.slane %v2749_v31, 6 }
0x1699   :  { %v2753_v36 = vadd.f32 %v2751_v34, %v2745_v33 }
0x169b   :  { %4181 = vtanh.f32 %v2753_v36 }
0x16a5   :  { %v4182_v37 = vpop.eup %4181 }
0x16a6   :  { %v2755_v39 = vmul.f32 %v4182_v37, %v2744_v38 }
0x16a8   :  { %v2763_v40 = vrot.slane %v2755_v39, 2 }
0x16aa   :  { %v2767_v41 = vsel %vm2329_vm2, %v2766_v8, %v2763_v40 }
0x16ab   :  { %v2768_v42 = vpack.c.bf16 %v2767_v41, %v2767_v41 }
0x16ad   :  { %3884 = vmatmul.mubr.bf16.vlgmr.msra.gmra.mrb[40].mxu1 %v2768_v42 }
0x16ae   :  { %3894 = vmatprep.mubr.msk.f32.mxu1 %vm4794_vm0, %v4793_v0 }
0x1780   :  { %v2857_v47 = vpop.f32.mrb[40].mxu1 }
0x1781   :  { %v2858_v48 = vadd.f32 %v3234_v45, %v2857_v47  ;;  %v3885_v49 = vpop.f32.mrb[41].mxu1 }
0x1782   :  { %v2860_v50 = vpop.f32.mrb[42].mxu1 }
0x1783   :  { %v2869_v51 = vrot.slane %v2858_v48, 1  ;;  %v3886_v28 = vpop.f32.mrb[43].mxu1  ;;  %v2871_v32 = vrot.slane %v2858_v48, 2  ;;  %v2873_v35 = vrot.slane %v2858_v48, 3  ;;  %v2954_v56 = vrot.slane %v2858_v48, 4 }
0x1785   :  { %v2875_v55 = vsel %vm2866_vm9, %v2858_v48, %v2869_v51  ;;  %v2956_v57 = vsel %vm2866_vm9, %v2869_v51, %v2871_v32 }
0x1786   :  { %v2876_v0 = vsel %vm492_vm3, %v2875_v55, %v2871_v32  ;;  %v2957_v59 = vsel %vm492_vm3, %v2956_v57, %v2873_v35 }
0x1787   :  { %v2878_v53 = vsel %vm2877_vm10, %v2876_v0, %v2873_v35  ;;  %v2958_v60 = vsel %vm2877_vm10, %v2957_v59, %v2954_v56 }
0x1788   :  { %3888 = vmatpush3.msk.msra.mxu0 %vm2327_vm1, %v2878_v53  ;;  %3893 = vmatpush3.msk.msra.mxu1 %vm2327_vm1, %v2958_v60 }
0x1789   :  { %3890 = vmatmul.mubr.f32.vlgmr.msra.gmra.mrb[44].mxu0 %v2867_v61  ;;  %3895 = vmatmul.mubr.f32.vlgmr.msra.gmra.mrb[44].mxu1 %v2953_v62 }
0x185c   :  { %v2946_v63 = vpop.f32.mrb[44].mxu0  ;;  %v3026_v1 = vpop.f32.mrb[44].mxu1 }
0x185d   :  { %2950 = vst [vmem:[#allocation38] sm:$0x3] %v2946_v63  ;;  %3031 = vst [vmem:[#allocation38 + $0x2] sm:$0x3] %v3026_v1  ;;  %v3891_v2 = vpop.f32.mrb[45].mxu0  ;;  %v3896_v3 = vpop.f32.mrb[45].mxu1 }
0x185e   :  { %4700 = shalt.err (!%p4697_p6)
}
0x185f   :  { %s4701_s12 = scalar_lea.hbm %s4960_s29, 64 }
0x1860   :  { %p4702_p7 = scmp.ne.s32.totalorder %s4960_s29, %s4701_s12  ;;  %p4705_p8 = scmp.lt.u32.totalorder %s4701_s12, %s4960_s29 }
0x1862   :  { %p4707_p9 = pnand %p4705_p8, %p4702_p7 }
0x1864   :  { %4710 = shalt.err (!%p4707_p9)
}
0x1865   :  { %3043 = dma.vmem_to_hbm [thread:$0]  %s3038_s17, 64, %s4960_s29, [#allocation4], %s4768_s18, %s4768_s18, %s4769_s22  }
0x1866   :  { %4735 = dma.done.wait [#allocation4], 64  }
0x1867   :  { %4736 = vsyncadd [#allocation4], 4294967232 }
0x1868   :  { %3047 = vsyncpa [#allocation3], 1 }
0x1869   :  { %3048 = vsyncpa [#allocation6], 1 }
0x186a   :  { %3049 = vsyncpa [#allocation9], 1 }
0x186b   :  { %3050 = vsyncpa [#allocation12], 1 }
0x186c   :  { %3051 = vsyncpa [#allocation15], 1 }
0x186d   :  { %3052 = vsyncpa [#allocation18], 1 }
0x186e   :  { %3053 = vsyncpa [#allocation21], 1 }
0x186f   :  { %3054 = vsyncpa [#allocation24], 1 }
0x1870   :  { %3055 = vsyncpa [#allocation27], 1 }
0x1871   :  { %3056 = vsyncpa [#allocation30], 1 }
0x1872   :  { %3057 = vsyncpa [#allocation33], 1 }
0x1873   :  { %3058 = vsyncpa [#allocation36], 1 }
0x1874   :  { %3059 = vsyncpa [#allocation4], 1 }

</bundles_post_ra>
